<compile_context>
chip_gen: v5e
topology: v5e:2x2
jax: 0.10.0
libtpu: 0.0.40
codegen_flags: <defaults>
</compile_context>

<pallas_src>
import functools

import jax
import jax.numpy as jnp
from jax.experimental import pallas as pl
from jax.experimental.pallas import tpu as pltpu


# ----------------------------------------------------------------------------
# Single fused kernel: whole MSFE block for the full batch, lane-dense layout.
#   x_ref    : (N, C, HW)        activations, channels on sublanes, pixels on lanes
#   w_ref    : (4, C, 9C)        per-stage im2col conv weights (BN scale folded)
#   mats_ref : (5, C, C)         [se_0^T .. se_3^T, (wp^T * proj_scale)]
#   bias_ref : (C, 5)            columns: conv biases b1..b4, projection bias
#   o_ref    : (N, C, HW)        output
#   ext_ref  : (N, C, PADL+HW+PADL)  zero-halo'd flat shift buffer (scratch)
#   ys_ref   : (4, N, C, HW)     y0..y3 resident in VMEM (scratch)
# ----------------------------------------------------------------------------
def _msfe_kernel(x_ref, w_ref, mats_ref, bias_ref, o_ref, ext_ref, ys_ref,
                 *, N, H, W, C, HW, PADL, dils):
    log2w = W.bit_length() - 1
    lane = jax.lax.broadcasted_iota(jnp.int32, (1, HW), 1)
    h_idx = jnp.right_shift(lane, log2w)          # lane // W  (W is a power of 2)
    w_idx = jnp.bitwise_and(lane, W - 1)          # lane %  W

    # Zero the two 128-lane halo strips ONCE; the interior is rewritten per
    # stage, so no full-plane zero-fill is needed.
    zeros_halo = jnp.zeros((N, C, PADL), jnp.float32)
    ext_ref[:, :, 0:PADL] = zeros_halo
    ext_ref[:, :, PADL + HW:PADL + HW + PADL] = zeros_halo

    def conv_stage(stage, n, dil):
        # im2col: 9 shifted taps as lane-offset slices of the halo'd buffer,
        # edge-masked, stacked on sublanes -> one (C,9C)x(9C,HW) MXU matmul.
        patches = []
        for dh in range(3):
            for dw in range(3):
                ro = (dh - 1) * dil
                co = (dw - 1) * dil
                start = PADL + ro * W + co
                patch = ext_ref[n, :, start:start + HW]              # (C, HW)
                conds = []
                if ro > 0:
                    conds.append(h_idx < H - ro)
                elif ro < 0:
                    conds.append(h_idx >= -ro)
                if co > 0:
                    conds.append(w_idx < W - co)
                elif co < 0:
                    conds.append(w_idx >= -co)
                if conds:
                    valid = functools.reduce(jnp.logical_and, conds)
                    patch = jnp.where(valid, patch, 0.0)
                patches.append(patch)
        im2col = jnp.concatenate(patches, axis=0)                    # (9C, HW)
        y = jnp.dot(w_ref[stage], im2col,
                    preferred_element_type=jnp.float32)              # (C, HW)
        return jnp.maximum(y + bias_ref[:, stage:stage + 1], 0.0)

    # ---- 4 dilated conv+BN+ReLU stages with residual re-injection ----------
    inv_hw = 1.0 / HW
    logit_cols = [[None] * N for _ in range(4)]
    for i, dil in enumerate(dils):
        for n in range(N):
            cur = x_ref[n] if i == 0 else ys_ref[i - 1, n] + x_ref[n]
            ext_ref[n, :, PADL:PADL + HW] = cur                      # aligned store
            y = conv_stage(i, n, dil)
            ys_ref[i, n] = y
            # GAP folded through the SE matrix (linearity): mean(se^T @ y).
            se_y = jnp.dot(mats_ref[i], y, preferred_element_type=jnp.float32)
            logit_cols[i][n] = jnp.sum(se_y, axis=1, keepdims=True) * inv_hw

    # ---- sigmoid -> softmax over scales -> weighted fuse -> 1x1 projection --
    for n in range(N):
        s = [jax.nn.sigmoid(logit_cols[i][n]) for i in range(4)]     # 4 x (C,1)
        m = jnp.maximum(jnp.maximum(s[0], s[1]), jnp.maximum(s[2], s[3]))
        e = [jnp.exp(si - m) for si in s]
        inv_denom = 1.0 / (e[0] + e[1] + e[2] + e[3])
        z = x_ref[n]
        for i in range(4):
            z = z + (e[i] * inv_denom) * ys_ref[i, n]                # (C, HW)
        out = jnp.dot(mats_ref[4], z, preferred_element_type=jnp.float32)
        o_ref[n] = jnp.maximum(out + bias_ref[:, 4:5], 0.0)          # aligned store


def msfe_forward(x_nchw, p, rates):
    """Fused MSFE block: x (N,C,H,W) f32 -> (N,C,H,W) f32 (native NCHW)."""
    N, C, H, W = x_nchw.shape
    HW = H * W
    assert W & (W - 1) == 0, "W assumed a power of two (bit-trick h/w indices)"
    assert HW % 128 == 0, "H*W assumed a multiple of 128 (lane-tile aligned)"
    dils = (1,) + tuple(rates)
    PADL = 128                                    # one lane tile of zero halo
    assert max(dils) * (W + 1) <= PADL, "dilation shift must fit in the halo"

    def fold_w(w9, scale):
        # (9,Cin,Cout) taps -> (Cout, 9*Cin) im2col weight, BN scale folded in.
        return jnp.transpose(w9.reshape(9 * C, C)) * scale.reshape(C, 1)

    w_all = jnp.stack([fold_w(p['w1'], p['s1']), fold_w(p['w2'], p['s2']),
                       fold_w(p['w3'], p['s3']), fold_w(p['w4'], p['s4'])],
                      axis=0)                                        # (4, C, 9C)
    wp_t = jnp.transpose(p['wp']) * p['sp'].reshape(C, 1)            # (C, C)
    mats = jnp.concatenate([jnp.transpose(p['se'], (0, 2, 1)),
                            wp_t[None]], axis=0)                     # (5, C, C)
    bias = jnp.concatenate([p['b1'].reshape(C, 1), p['b2'].reshape(C, 1),
                            p['b3'].reshape(C, 1), p['b4'].reshape(C, 1),
                            p['bp'].reshape(C, 1)], axis=1)          # (C, 5)

    kern = functools.partial(_msfe_kernel, N=N, H=H, W=W, C=C, HW=HW,
                             PADL=PADL, dils=dils)
    out = pl.pallas_call(
        kern,
        out_shape=jax.ShapeDtypeStruct((N, C, HW), jnp.float32),
        scratch_shapes=[
            pltpu.VMEM((N, C, PADL + HW + PADL), jnp.float32),  # halo'd shift buffer
            pltpu.VMEM((4, N, C, HW), jnp.float32),             # y0..y3 resident
        ],
    )(x_nchw.reshape(N, C, HW), w_all, mats, bias)
    return out.reshape(N, C, H, W)


# ----------------------------------------------------------------------------
# Pure-JAX reference (NHWC) and parameter construction
# ----------------------------------------------------------------------------
def _ref_conv_bn_relu(x, w9, scale, bias, dil):
    C = x.shape[-1]
    w = w9.reshape(3, 3, C, C)                               # HWIO
    y = jax.lax.conv_general_dilated(
        x, w, window_strides=(1, 1),
        padding=[(dil, dil), (dil, dil)], rhs_dilation=(dil, dil),
        dimension_numbers=('NHWC', 'HWIO', 'NHWC'))
    return jax.nn.relu(y * scale.reshape(1, 1, 1, -1) + bias.reshape(1, 1, 1, -1))


def msfe_forward_ref(x, p, rates):
    y0 = _ref_conv_bn_relu(x, p['w1'], p['s1'], p['b1'], 1)
    y1 = _ref_conv_bn_relu(y0 + x, p['w2'], p['s2'], p['b2'], rates[0])
    y2 = _ref_conv_bn_relu(y1 + x, p['w3'], p['s3'], p['b3'], rates[1])
    y3 = _ref_conv_bn_relu(y2 + x, p['w4'], p['s4'], p['b4'], rates[2])
    ys = [y0, y1, y2, y3]
    gaps = [jnp.mean(y, axis=(1, 2)) for y in ys]                         # (N, C)
    logits = jnp.stack([gaps[i] @ p['se'][i] for i in range(4)], axis=1)  # (N,4,C)
    sm = jax.nn.softmax(jax.nn.sigmoid(logits), axis=1)
    x_att = sum(sm[:, i][:, None, None, :] * ys[i] for i in range(4))
    z = x_att + x
    y = jnp.einsum('nhwc,cd->nhwd', z, p['wp'])
    return jax.nn.relu(y * p['sp'].reshape(1, 1, 1, -1) + p['bp'].reshape(1, 1, 1, -1))


def make_params(key, C):
    ks = jax.random.split(key, 32)
    ki = iter(range(32))

    def bn(k1, k2, k3, k4):
        gamma = 1.0 + 0.1 * jax.random.normal(ks[k1], (C,), jnp.float32)
        beta = 0.05 * jax.random.normal(ks[k2], (C,), jnp.float32)
        mean = 0.1 * jax.random.normal(ks[k3], (C,), jnp.float32)
        var = 1.0 + 0.1 * jnp.abs(jax.random.normal(ks[k4], (C,), jnp.float32))
        scale = gamma / jnp.sqrt(var + 1e-5)
        bias = beta - mean * scale
        return scale.reshape(1, C), bias.reshape(1, C)

    p = {}
    for name in ['1', '2', '3', '4']:
        p['w' + name] = 0.15 * jax.random.normal(ks[next(ki)], (9, C, C), jnp.float32)
        s, b = bn(next(ki), next(ki), next(ki), next(ki))
        p['s' + name], p['b' + name] = s, b
    p['se'] = 0.2 * jax.random.normal(ks[next(ki)], (4, C, C), jnp.float32)
    p['wp'] = 0.2 * jax.random.normal(ks[next(ki)], (C, C), jnp.float32)
    sp, bp = bn(next(ki), next(ki), next(ki), next(ki))
    p['sp'], p['bp'] = sp, bp
    return p


if __name__ == "__main__":
    N, C, H, W = 2, 4, 16, 16
    rates = (2, 4, 6)

    key = jax.random.PRNGKey(0)
    kx, kp = jax.random.split(key)
    x = jax.random.normal(kx, (N, C, H, W), jnp.float32)     # native NCHW (2,4,16,16)
    params = make_params(kp, C)

    fwd = jax.jit(lambda xx, pp: msfe_forward(xx, pp, rates))
    out = jax.block_until_ready(fwd(x, params))

    ref_nhwc = msfe_forward_ref(jnp.transpose(x, (0, 2, 3, 1)), params, rates)
    ref = jax.block_until_ready(jnp.transpose(ref_nhwc, (0, 3, 1, 2)))
    assert out.shape == (N, C, H, W)
    assert jnp.allclose(out, ref, rtol=1e-4, atol=1e-4), (
        "Pallas output mismatch vs JAX reference")

    print("KERNEL_OK")
</pallas_src>

<mosaic_0001>
module attributes {stable_mosaic.version = 11 : i64} {
  func.func @_msfe_kernel(%arg0: memref<2x4x256xf32, #tpu.memory_space<vmem>>, %arg1: memref<4x4x36xf32, #tpu.memory_space<vmem>>, %arg2: memref<5x4x4xf32, #tpu.memory_space<vmem>>, %arg3: memref<4x5xf32, #tpu.memory_space<vmem>>, %arg4: memref<2x4x256xf32, #tpu.memory_space<vmem>>, %arg5: memref<2x4x512xf32, #tpu.memory_space<vmem>>, %arg6: memref<4x2x4x256xf32, #tpu.memory_space<vmem>>) attributes {dimension_semantics = [], scalar_prefetch = 0 : i64, scratch_operands = 2 : i64, tpu.core_type = #tpu.core_type<tc>} {
    %0 = tpu.iota {dimensions = array<i32: 1>} : vector<1x256xi32>
    %c4_i32 = arith.constant 4 : i32
    %1 = vector.broadcast %c4_i32 : i32 to vector<1x256xi32>
    %2 = arith.shrsi %0, %1 : vector<1x256xi32>
    %c15_i32 = arith.constant 15 : i32
    %3 = vector.broadcast %c15_i32 : i32 to vector<1x256xi32>
    %4 = arith.andi %0, %3 : vector<1x256xi32>
    %cst = arith.constant 0.000000e+00 : f32
    %5 = vector.broadcast %cst : f32 to vector<2x4x128xf32>
    %c0 = arith.constant 0 : index
    %c0_0 = arith.constant 0 : index
    %c0_1 = arith.constant 0 : index
    %6 = vector.load %arg5[%c0, %c0_0, %c0_1] : memref<2x4x512xf32, #tpu.memory_space<vmem>>, vector<2x4x128xf32>
    tpu.vector_store %arg5[%c0, %c0_0, %c0_1], %5 {strides = array<i32>} : memref<2x4x512xf32, #tpu.memory_space<vmem>>, vector<2x4x128xf32>,
    %c0_2 = arith.constant 0 : index
    %c0_3 = arith.constant 0 : index
    %c384 = arith.constant 384 : index
    %7 = vector.load %arg5[%c0_2, %c0_3, %c384] : memref<2x4x512xf32, #tpu.memory_space<vmem>>, vector<2x4x128xf32>
    tpu.vector_store %arg5[%c0_2, %c0_3, %c384], %5 {strides = array<i32>} : memref<2x4x512xf32, #tpu.memory_space<vmem>>, vector<2x4x128xf32>,
    %c0_4 = arith.constant 0 : index
    %c0_5 = arith.constant 0 : index
    %c0_6 = arith.constant 0 : index
    %8 = vector.load %arg0[%c0_4, %c0_5, %c0_6] : memref<2x4x256xf32, #tpu.memory_space<vmem>>, vector<1x4x256xf32>
    %9 = vector.shape_cast %8 : vector<1x4x256xf32> to vector<4x256xf32>
    %c0_7 = arith.constant 0 : index
    %c0_8 = arith.constant 0 : index
    %c128 = arith.constant 128 : index
    %10 = vector.load %arg5[%c0_7, %c0_8, %c128] : memref<2x4x512xf32, #tpu.memory_space<vmem>>, vector<1x4x256xf32>
    %11 = vector.shape_cast %10 : vector<1x4x256xf32> to vector<4x256xf32>
    %12 = vector.shape_cast %9 : vector<4x256xf32> to vector<1x4x256xf32>
    tpu.vector_store %arg5[%c0_7, %c0_8, %c128], %12 {strides = array<i32>} : memref<2x4x512xf32, #tpu.memory_space<vmem>>, vector<1x4x256xf32>,
    %c0_9 = arith.constant 0 : index
    %c0_10 = arith.constant 0 : index
    %c111 = arith.constant 111 : index
    %13 = vector.load %arg5[%c0_9, %c0_10, %c111] : memref<2x4x512xf32, #tpu.memory_space<vmem>>, vector<1x4x256xf32>
    %14 = vector.shape_cast %13 : vector<1x4x256xf32> to vector<4x256xf32>
    %c1_i32 = arith.constant 1 : i32
    %15 = vector.broadcast %c1_i32 : i32 to vector<1x256xi32>
    %16 = arith.cmpi sge, %2, %15 : vector<1x256xi32>
    %c1_i32_11 = arith.constant 1 : i32
    %17 = vector.broadcast %c1_i32_11 : i32 to vector<1x256xi32>
    %18 = arith.cmpi sge, %4, %17 : vector<1x256xi32>
    %19 = arith.andi %16, %18 : vector<1x256xi1>
    %cst_12 = arith.constant 0.000000e+00 : f32
    %20 = vector.shape_cast %19 : vector<1x256xi1> to vector<1x256xi1>
    %21 = vector.broadcast %20 : vector<1x256xi1> to vector<4x256xi1>
    %22 = vector.broadcast %cst_12 : f32 to vector<4x256xf32>
    %23 = arith.select %21, %14, %22 : vector<4x256xi1>, vector<4x256xf32>
    %c0_13 = arith.constant 0 : index
    %c0_14 = arith.constant 0 : index
    %c112 = arith.constant 112 : index
    %24 = vector.load %arg5[%c0_13, %c0_14, %c112] : memref<2x4x512xf32, #tpu.memory_space<vmem>>, vector<1x4x256xf32>
    %25 = vector.shape_cast %24 : vector<1x4x256xf32> to vector<4x256xf32>
    %c1_i32_15 = arith.constant 1 : i32
    %26 = vector.broadcast %c1_i32_15 : i32 to vector<1x256xi32>
    %27 = arith.cmpi sge, %2, %26 : vector<1x256xi32>
    %cst_16 = arith.constant 0.000000e+00 : f32
    %28 = vector.shape_cast %27 : vector<1x256xi1> to vector<1x256xi1>
    %29 = vector.broadcast %28 : vector<1x256xi1> to vector<4x256xi1>
    %30 = vector.broadcast %cst_16 : f32 to vector<4x256xf32>
    %31 = arith.select %29, %25, %30 : vector<4x256xi1>, vector<4x256xf32>
    %c0_17 = arith.constant 0 : index
    %c0_18 = arith.constant 0 : index
    %c113 = arith.constant 113 : index
    %32 = vector.load %arg5[%c0_17, %c0_18, %c113] : memref<2x4x512xf32, #tpu.memory_space<vmem>>, vector<1x4x256xf32>
    %33 = vector.shape_cast %32 : vector<1x4x256xf32> to vector<4x256xf32>
    %c1_i32_19 = arith.constant 1 : i32
    %34 = vector.broadcast %c1_i32_19 : i32 to vector<1x256xi32>
    %35 = arith.cmpi sge, %2, %34 : vector<1x256xi32>
    %c15_i32_20 = arith.constant 15 : i32
    %36 = vector.broadcast %c15_i32_20 : i32 to vector<1x256xi32>
    %37 = arith.cmpi slt, %4, %36 : vector<1x256xi32>
    %38 = arith.andi %35, %37 : vector<1x256xi1>
    %cst_21 = arith.constant 0.000000e+00 : f32
    %39 = vector.shape_cast %38 : vector<1x256xi1> to vector<1x256xi1>
    %40 = vector.broadcast %39 : vector<1x256xi1> to vector<4x256xi1>
    %41 = vector.broadcast %cst_21 : f32 to vector<4x256xf32>
    %42 = arith.select %40, %33, %41 : vector<4x256xi1>, vector<4x256xf32>
    %c0_22 = arith.constant 0 : index
    %c0_23 = arith.constant 0 : index
    %c127 = arith.constant 127 : index
    %43 = vector.load %arg5[%c0_22, %c0_23, %c127] : memref<2x4x512xf32, #tpu.memory_space<vmem>>, vector<1x4x256xf32>
    %44 = vector.shape_cast %43 : vector<1x4x256xf32> to vector<4x256xf32>
    %c1_i32_24 = arith.constant 1 : i32
    %45 = vector.broadcast %c1_i32_24 : i32 to vector<1x256xi32>
    %46 = arith.cmpi sge, %4, %45 : vector<1x256xi32>
    %cst_25 = arith.constant 0.000000e+00 : f32
    %47 = vector.shape_cast %46 : vector<1x256xi1> to vector<1x256xi1>
    %48 = vector.broadcast %47 : vector<1x256xi1> to vector<4x256xi1>
    %49 = vector.broadcast %cst_25 : f32 to vector<4x256xf32>
    %50 = arith.select %48, %44, %49 : vector<4x256xi1>, vector<4x256xf32>
    %c0_26 = arith.constant 0 : index
    %c0_27 = arith.constant 0 : index
    %c128_28 = arith.constant 128 : index
    %51 = vector.load %arg5[%c0_26, %c0_27, %c128_28] : memref<2x4x512xf32, #tpu.memory_space<vmem>>, vector<1x4x256xf32>
    %52 = vector.shape_cast %51 : vector<1x4x256xf32> to vector<4x256xf32>
    %c0_29 = arith.constant 0 : index
    %c0_30 = arith.constant 0 : index
    %c129 = arith.constant 129 : index
    %53 = vector.load %arg5[%c0_29, %c0_30, %c129] : memref<2x4x512xf32, #tpu.memory_space<vmem>>, vector<1x4x256xf32>
    %54 = vector.shape_cast %53 : vector<1x4x256xf32> to vector<4x256xf32>
    %c15_i32_31 = arith.constant 15 : i32
    %55 = vector.broadcast %c15_i32_31 : i32 to vector<1x256xi32>
    %56 = arith.cmpi slt, %4, %55 : vector<1x256xi32>
    %cst_32 = arith.constant 0.000000e+00 : f32
    %57 = vector.shape_cast %56 : vector<1x256xi1> to vector<1x256xi1>
    %58 = vector.broadcast %57 : vector<1x256xi1> to vector<4x256xi1>
    %59 = vector.broadcast %cst_32 : f32 to vector<4x256xf32>
    %60 = arith.select %58, %54, %59 : vector<4x256xi1>, vector<4x256xf32>
    %c0_33 = arith.constant 0 : index
    %c0_34 = arith.constant 0 : index
    %c143 = arith.constant 143 : index
    %61 = vector.load %arg5[%c0_33, %c0_34, %c143] : memref<2x4x512xf32, #tpu.memory_space<vmem>>, vector<1x4x256xf32>
    %62 = vector.shape_cast %61 : vector<1x4x256xf32> to vector<4x256xf32>
    %c15_i32_35 = arith.constant 15 : i32
    %63 = vector.broadcast %c15_i32_35 : i32 to vector<1x256xi32>
    %64 = arith.cmpi slt, %2, %63 : vector<1x256xi32>
    %c1_i32_36 = arith.constant 1 : i32
    %65 = vector.broadcast %c1_i32_36 : i32 to vector<1x256xi32>
    %66 = arith.cmpi sge, %4, %65 : vector<1x256xi32>
    %67 = arith.andi %64, %66 : vector<1x256xi1>
    %cst_37 = arith.constant 0.000000e+00 : f32
    %68 = vector.shape_cast %67 : vector<1x256xi1> to vector<1x256xi1>
    %69 = vector.broadcast %68 : vector<1x256xi1> to vector<4x256xi1>
    %70 = vector.broadcast %cst_37 : f32 to vector<4x256xf32>
    %71 = arith.select %69, %62, %70 : vector<4x256xi1>, vector<4x256xf32>
    %c0_38 = arith.constant 0 : index
    %c0_39 = arith.constant 0 : index
    %c144 = arith.constant 144 : index
    %72 = vector.load %arg5[%c0_38, %c0_39, %c144] : memref<2x4x512xf32, #tpu.memory_space<vmem>>, vector<1x4x256xf32>
    %73 = vector.shape_cast %72 : vector<1x4x256xf32> to vector<4x256xf32>
    %c15_i32_40 = arith.constant 15 : i32
    %74 = vector.broadcast %c15_i32_40 : i32 to vector<1x256xi32>
    %75 = arith.cmpi slt, %2, %74 : vector<1x256xi32>
    %cst_41 = arith.constant 0.000000e+00 : f32
    %76 = vector.shape_cast %75 : vector<1x256xi1> to vector<1x256xi1>
    %77 = vector.broadcast %76 : vector<1x256xi1> to vector<4x256xi1>
    %78 = vector.broadcast %cst_41 : f32 to vector<4x256xf32>
    %79 = arith.select %77, %73, %78 : vector<4x256xi1>, vector<4x256xf32>
    %c0_42 = arith.constant 0 : index
    %c0_43 = arith.constant 0 : index
    %c145 = arith.constant 145 : index
    %80 = vector.load %arg5[%c0_42, %c0_43, %c145] : memref<2x4x512xf32, #tpu.memory_space<vmem>>, vector<1x4x256xf32>
    %81 = vector.shape_cast %80 : vector<1x4x256xf32> to vector<4x256xf32>
    %c15_i32_44 = arith.constant 15 : i32
    %82 = vector.broadcast %c15_i32_44 : i32 to vector<1x256xi32>
    %83 = arith.cmpi slt, %2, %82 : vector<1x256xi32>
    %c15_i32_45 = arith.constant 15 : i32
    %84 = vector.broadcast %c15_i32_45 : i32 to vector<1x256xi32>
    %85 = arith.cmpi slt, %4, %84 : vector<1x256xi32>
    %86 = arith.andi %83, %85 : vector<1x256xi1>
    %cst_46 = arith.constant 0.000000e+00 : f32
    %87 = vector.shape_cast %86 : vector<1x256xi1> to vector<1x256xi1>
    %88 = vector.broadcast %87 : vector<1x256xi1> to vector<4x256xi1>
    %89 = vector.broadcast %cst_46 : f32 to vector<4x256xf32>
    %90 = arith.select %88, %81, %89 : vector<4x256xi1>, vector<4x256xf32>
    %91 = tpu.concatenate %23, %31, %42, %50, %52, %60, %71, %79, %90 in 0 : vector<4x256xf32>, vector<4x256xf32>, vector<4x256xf32>, vector<4x256xf32>, vector<4x256xf32>, vector<4x256xf32>, vector<4x256xf32>, vector<4x256xf32>, vector<4x256xf32> -> vector<36x256xf32>
    %c0_47 = arith.constant 0 : index
    %c0_48 = arith.constant 0 : index
    %c0_49 = arith.constant 0 : index
    %92 = vector.load %arg1[%c0_47, %c0_48, %c0_49] : memref<4x4x36xf32, #tpu.memory_space<vmem>>, vector<1x4x36xf32>
    %93 = vector.shape_cast %92 : vector<1x4x36xf32> to vector<4x36xf32>
    %cst_50 = arith.constant dense<0.000000e+00> : vector<4x256xf32>
    %94 = tpu.matmul %93, %91, %cst_50 {dimension_numbers = #tpu.dot_dimension_numbers<[1], [0], [0], [1], [0, 0, 1, 1], [], []>} : vector<4x36xf32>, vector<36x256xf32>, vector<4x256xf32> -> vector<4x256xf32>
    %c0_51 = arith.constant 0 : index
    %c0_52 = arith.constant 0 : index
    %95 = vector.load %arg3[%c0_51, %c0_52] : memref<4x5xf32, #tpu.memory_space<vmem>>, vector<4x1xf32>
    %96 = vector.broadcast %95 : vector<4x1xf32> to vector<4x256xf32>
    %97 = arith.addf %94, %96 : vector<4x256xf32>
    %cst_53 = arith.constant 0.000000e+00 : f32
    %98 = vector.broadcast %cst_53 : f32 to vector<4x256xf32>
    %99 = arith.maximumf %97, %98 : vector<4x256xf32>
    %c0_54 = arith.constant 0 : index
    %c0_55 = arith.constant 0 : index
    %c0_56 = arith.constant 0 : index
    %c0_57 = arith.constant 0 : index
    %100 = vector.load %arg6[%c0_54, %c0_55, %c0_56, %c0_57] : memref<4x2x4x256xf32, #tpu.memory_space<vmem>>, vector<1x1x4x256xf32>
    %101 = vector.shape_cast %100 : vector<1x1x4x256xf32> to vector<4x256xf32>
    %102 = vector.shape_cast %99 : vector<4x256xf32> to vector<1x1x4x256xf32>
    tpu.vector_store %arg6[%c0_54, %c0_55, %c0_56, %c0_57], %102 {strides = array<i32>} : memref<4x2x4x256xf32, #tpu.memory_space<vmem>>, vector<1x1x4x256xf32>,
    %c0_58 = arith.constant 0 : index
    %c0_59 = arith.constant 0 : index
    %c0_60 = arith.constant 0 : index
    %103 = vector.load %arg2[%c0_58, %c0_59, %c0_60] : memref<5x4x4xf32, #tpu.memory_space<vmem>>, vector<1x4x4xf32>
    %104 = vector.shape_cast %103 : vector<1x4x4xf32> to vector<4x4xf32>
    %cst_61 = arith.constant dense<0.000000e+00> : vector<4x256xf32>
    %105 = tpu.matmul %104, %99, %cst_61 {dimension_numbers = #tpu.dot_dimension_numbers<[1], [0], [0], [1], [0, 0, 1, 1], [], []>} : vector<4x4xf32>, vector<4x256xf32>, vector<4x256xf32> -> vector<4x256xf32>
    %cst_62 = arith.constant dense<0.000000e+00> : vector<4xf32>
    %106 = vector.multi_reduction <add>, %105, %cst_62 [1] : vector<4x256xf32> to vector<4xf32>
    %107 = vector.shape_cast %106 : vector<4xf32> to vector<4x1xf32>
    %cst_63 = arith.constant 3.906250e-03 : f32
    %108 = vector.broadcast %cst_63 : f32 to vector<4x1xf32>
    %109 = arith.mulf %107, %108 : vector<4x1xf32>
    %c1 = arith.constant 1 : index
    %c0_64 = arith.constant 0 : index
    %c0_65 = arith.constant 0 : index
    %110 = vector.load %arg0[%c1, %c0_64, %c0_65] : memref<2x4x256xf32, #tpu.memory_space<vmem>>, vector<1x4x256xf32>
    %111 = vector.shape_cast %110 : vector<1x4x256xf32> to vector<4x256xf32>
    %c1_66 = arith.constant 1 : index
    %c0_67 = arith.constant 0 : index
    %c128_68 = arith.constant 128 : index
    %112 = vector.load %arg5[%c1_66, %c0_67, %c128_68] : memref<2x4x512xf32, #tpu.memory_space<vmem>>, vector<1x4x256xf32>
    %113 = vector.shape_cast %112 : vector<1x4x256xf32> to vector<4x256xf32>
    %114 = vector.shape_cast %111 : vector<4x256xf32> to vector<1x4x256xf32>
    tpu.vector_store %arg5[%c1_66, %c0_67, %c128_68], %114 {strides = array<i32>} : memref<2x4x512xf32, #tpu.memory_space<vmem>>, vector<1x4x256xf32>,
    %c1_69 = arith.constant 1 : index
    %c0_70 = arith.constant 0 : index
    %c111_71 = arith.constant 111 : index
    %115 = vector.load %arg5[%c1_69, %c0_70, %c111_71] : memref<2x4x512xf32, #tpu.memory_space<vmem>>, vector<1x4x256xf32>
    %116 = vector.shape_cast %115 : vector<1x4x256xf32> to vector<4x256xf32>
    %c1_i32_72 = arith.constant 1 : i32
    %117 = vector.broadcast %c1_i32_72 : i32 to vector<1x256xi32>
    %118 = arith.cmpi sge, %2, %117 : vector<1x256xi32>
    %c1_i32_73 = arith.constant 1 : i32
    %119 = vector.broadcast %c1_i32_73 : i32 to vector<1x256xi32>
    %120 = arith.cmpi sge, %4, %119 : vector<1x256xi32>
    %121 = arith.andi %118, %120 : vector<1x256xi1>
    %cst_74 = arith.constant 0.000000e+00 : f32
    %122 = vector.shape_cast %121 : vector<1x256xi1> to vector<1x256xi1>
    %123 = vector.broadcast %122 : vector<1x256xi1> to vector<4x256xi1>
    %124 = vector.broadcast %cst_74 : f32 to vector<4x256xf32>
    %125 = arith.select %123, %116, %124 : vector<4x256xi1>, vector<4x256xf32>
    %c1_75 = arith.constant 1 : index
    %c0_76 = arith.constant 0 : index
    %c112_77 = arith.constant 112 : index
    %126 = vector.load %arg5[%c1_75, %c0_76, %c112_77] : memref<2x4x512xf32, #tpu.memory_space<vmem>>, vector<1x4x256xf32>
    %127 = vector.shape_cast %126 : vector<1x4x256xf32> to vector<4x256xf32>
    %c1_i32_78 = arith.constant 1 : i32
    %128 = vector.broadcast %c1_i32_78 : i32 to vector<1x256xi32>
    %129 = arith.cmpi sge, %2, %128 : vector<1x256xi32>
    %cst_79 = arith.constant 0.000000e+00 : f32
    %130 = vector.shape_cast %129 : vector<1x256xi1> to vector<1x256xi1>
    %131 = vector.broadcast %130 : vector<1x256xi1> to vector<4x256xi1>
    %132 = vector.broadcast %cst_79 : f32 to vector<4x256xf32>
    %133 = arith.select %131, %127, %132 : vector<4x256xi1>, vector<4x256xf32>
    %c1_80 = arith.constant 1 : index
    %c0_81 = arith.constant 0 : index
    %c113_82 = arith.constant 113 : index
    %134 = vector.load %arg5[%c1_80, %c0_81, %c113_82] : memref<2x4x512xf32, #tpu.memory_space<vmem>>, vector<1x4x256xf32>
    %135 = vector.shape_cast %134 : vector<1x4x256xf32> to vector<4x256xf32>
    %c1_i32_83 = arith.constant 1 : i32
    %136 = vector.broadcast %c1_i32_83 : i32 to vector<1x256xi32>
    %137 = arith.cmpi sge, %2, %136 : vector<1x256xi32>
    %c15_i32_84 = arith.constant 15 : i32
    %138 = vector.broadcast %c15_i32_84 : i32 to vector<1x256xi32>
    %139 = arith.cmpi slt, %4, %138 : vector<1x256xi32>
    %140 = arith.andi %137, %139 : vector<1x256xi1>
    %cst_85 = arith.constant 0.000000e+00 : f32
    %141 = vector.shape_cast %140 : vector<1x256xi1> to vector<1x256xi1>
    %142 = vector.broadcast %141 : vector<1x256xi1> to vector<4x256xi1>
    %143 = vector.broadcast %cst_85 : f32 to vector<4x256xf32>
    %144 = arith.select %142, %135, %143 : vector<4x256xi1>, vector<4x256xf32>
    %c1_86 = arith.constant 1 : index
    %c0_87 = arith.constant 0 : index
    %c127_88 = arith.constant 127 : index
    %145 = vector.load %arg5[%c1_86, %c0_87, %c127_88] : memref<2x4x512xf32, #tpu.memory_space<vmem>>, vector<1x4x256xf32>
    %146 = vector.shape_cast %145 : vector<1x4x256xf32> to vector<4x256xf32>
    %c1_i32_89 = arith.constant 1 : i32
    %147 = vector.broadcast %c1_i32_89 : i32 to vector<1x256xi32>
    %148 = arith.cmpi sge, %4, %147 : vector<1x256xi32>
    %cst_90 = arith.constant 0.000000e+00 : f32
    %149 = vector.shape_cast %148 : vector<1x256xi1> to vector<1x256xi1>
    %150 = vector.broadcast %149 : vector<1x256xi1> to vector<4x256xi1>
    %151 = vector.broadcast %cst_90 : f32 to vector<4x256xf32>
    %152 = arith.select %150, %146, %151 : vector<4x256xi1>, vector<4x256xf32>
    %c1_91 = arith.constant 1 : index
    %c0_92 = arith.constant 0 : index
    %c128_93 = arith.constant 128 : index
    %153 = vector.load %arg5[%c1_91, %c0_92, %c128_93] : memref<2x4x512xf32, #tpu.memory_space<vmem>>, vector<1x4x256xf32>
    %154 = vector.shape_cast %153 : vector<1x4x256xf32> to vector<4x256xf32>
    %c1_94 = arith.constant 1 : index
    %c0_95 = arith.constant 0 : index
    %c129_96 = arith.constant 129 : index
    %155 = vector.load %arg5[%c1_94, %c0_95, %c129_96] : memref<2x4x512xf32, #tpu.memory_space<vmem>>, vector<1x4x256xf32>
    %156 = vector.shape_cast %155 : vector<1x4x256xf32> to vector<4x256xf32>
    %c15_i32_97 = arith.constant 15 : i32
    %157 = vector.broadcast %c15_i32_97 : i32 to vector<1x256xi32>
    %158 = arith.cmpi slt, %4, %157 : vector<1x256xi32>
    %cst_98 = arith.constant 0.000000e+00 : f32
    %159 = vector.shape_cast %158 : vector<1x256xi1> to vector<1x256xi1>
    %160 = vector.broadcast %159 : vector<1x256xi1> to vector<4x256xi1>
    %161 = vector.broadcast %cst_98 : f32 to vector<4x256xf32>
    %162 = arith.select %160, %156, %161 : vector<4x256xi1>, vector<4x256xf32>
    %c1_99 = arith.constant 1 : index
    %c0_100 = arith.constant 0 : index
    %c143_101 = arith.constant 143 : index
    %163 = vector.load %arg5[%c1_99, %c0_100, %c143_101] : memref<2x4x512xf32, #tpu.memory_space<vmem>>, vector<1x4x256xf32>
    %164 = vector.shape_cast %163 : vector<1x4x256xf32> to vector<4x256xf32>
    %c15_i32_102 = arith.constant 15 : i32
    %165 = vector.broadcast %c15_i32_102 : i32 to vector<1x256xi32>
    %166 = arith.cmpi slt, %2, %165 : vector<1x256xi32>
    %c1_i32_103 = arith.constant 1 : i32
    %167 = vector.broadcast %c1_i32_103 : i32 to vector<1x256xi32>
    %168 = arith.cmpi sge, %4, %167 : vector<1x256xi32>
    %169 = arith.andi %166, %168 : vector<1x256xi1>
    %cst_104 = arith.constant 0.000000e+00 : f32
    %170 = vector.shape_cast %169 : vector<1x256xi1> to vector<1x256xi1>
    %171 = vector.broadcast %170 : vector<1x256xi1> to vector<4x256xi1>
    %172 = vector.broadcast %cst_104 : f32 to vector<4x256xf32>
    %173 = arith.select %171, %164, %172 : vector<4x256xi1>, vector<4x256xf32>
    %c1_105 = arith.constant 1 : index
    %c0_106 = arith.constant 0 : index
    %c144_107 = arith.constant 144 : index
    %174 = vector.load %arg5[%c1_105, %c0_106, %c144_107] : memref<2x4x512xf32, #tpu.memory_space<vmem>>, vector<1x4x256xf32>
    %175 = vector.shape_cast %174 : vector<1x4x256xf32> to vector<4x256xf32>
    %c15_i32_108 = arith.constant 15 : i32
    %176 = vector.broadcast %c15_i32_108 : i32 to vector<1x256xi32>
    %177 = arith.cmpi slt, %2, %176 : vector<1x256xi32>
    %cst_109 = arith.constant 0.000000e+00 : f32
    %178 = vector.shape_cast %177 : vector<1x256xi1> to vector<1x256xi1>
    %179 = vector.broadcast %178 : vector<1x256xi1> to vector<4x256xi1>
    %180 = vector.broadcast %cst_109 : f32 to vector<4x256xf32>
    %181 = arith.select %179, %175, %180 : vector<4x256xi1>, vector<4x256xf32>
    %c1_110 = arith.constant 1 : index
    %c0_111 = arith.constant 0 : index
    %c145_112 = arith.constant 145 : index
    %182 = vector.load %arg5[%c1_110, %c0_111, %c145_112] : memref<2x4x512xf32, #tpu.memory_space<vmem>>, vector<1x4x256xf32>
    %183 = vector.shape_cast %182 : vector<1x4x256xf32> to vector<4x256xf32>
    %c15_i32_113 = arith.constant 15 : i32
    %184 = vector.broadcast %c15_i32_113 : i32 to vector<1x256xi32>
    %185 = arith.cmpi slt, %2, %184 : vector<1x256xi32>
    %c15_i32_114 = arith.constant 15 : i32
    %186 = vector.broadcast %c15_i32_114 : i32 to vector<1x256xi32>
    %187 = arith.cmpi slt, %4, %186 : vector<1x256xi32>
    %188 = arith.andi %185, %187 : vector<1x256xi1>
    %cst_115 = arith.constant 0.000000e+00 : f32
    %189 = vector.shape_cast %188 : vector<1x256xi1> to vector<1x256xi1>
    %190 = vector.broadcast %189 : vector<1x256xi1> to vector<4x256xi1>
    %191 = vector.broadcast %cst_115 : f32 to vector<4x256xf32>
    %192 = arith.select %190, %183, %191 : vector<4x256xi1>, vector<4x256xf32>
    %193 = tpu.concatenate %125, %133, %144, %152, %154, %162, %173, %181, %192 in 0 : vector<4x256xf32>, vector<4x256xf32>, vector<4x256xf32>, vector<4x256xf32>, vector<4x256xf32>, vector<4x256xf32>, vector<4x256xf32>, vector<4x256xf32>, vector<4x256xf32> -> vector<36x256xf32>
    %c0_116 = arith.constant 0 : index
    %c0_117 = arith.constant 0 : index
    %c0_118 = arith.constant 0 : index
    %194 = vector.load %arg1[%c0_116, %c0_117, %c0_118] : memref<4x4x36xf32, #tpu.memory_space<vmem>>, vector<1x4x36xf32>
    %195 = vector.shape_cast %194 : vector<1x4x36xf32> to vector<4x36xf32>
    %cst_119 = arith.constant dense<0.000000e+00> : vector<4x256xf32>
    %196 = tpu.matmul %195, %193, %cst_119 {dimension_numbers = #tpu.dot_dimension_numbers<[1], [0], [0], [1], [0, 0, 1, 1], [], []>} : vector<4x36xf32>, vector<36x256xf32>, vector<4x256xf32> -> vector<4x256xf32>
    %c0_120 = arith.constant 0 : index
    %c0_121 = arith.constant 0 : index
    %197 = vector.load %arg3[%c0_120, %c0_121] : memref<4x5xf32, #tpu.memory_space<vmem>>, vector<4x1xf32>
    %198 = vector.broadcast %197 : vector<4x1xf32> to vector<4x256xf32>
    %199 = arith.addf %196, %198 : vector<4x256xf32>
    %cst_122 = arith.constant 0.000000e+00 : f32
    %200 = vector.broadcast %cst_122 : f32 to vector<4x256xf32>
    %201 = arith.maximumf %199, %200 : vector<4x256xf32>
    %c0_123 = arith.constant 0 : index
    %c1_124 = arith.constant 1 : index
    %c0_125 = arith.constant 0 : index
    %c0_126 = arith.constant 0 : index
    %202 = vector.load %arg6[%c0_123, %c1_124, %c0_125, %c0_126] : memref<4x2x4x256xf32, #tpu.memory_space<vmem>>, vector<1x1x4x256xf32>
    %203 = vector.shape_cast %202 : vector<1x1x4x256xf32> to vector<4x256xf32>
    %204 = vector.shape_cast %201 : vector<4x256xf32> to vector<1x1x4x256xf32>
    tpu.vector_store %arg6[%c0_123, %c1_124, %c0_125, %c0_126], %204 {strides = array<i32>} : memref<4x2x4x256xf32, #tpu.memory_space<vmem>>, vector<1x1x4x256xf32>,
    %c0_127 = arith.constant 0 : index
    %c0_128 = arith.constant 0 : index
    %c0_129 = arith.constant 0 : index
    %205 = vector.load %arg2[%c0_127, %c0_128, %c0_129] : memref<5x4x4xf32, #tpu.memory_space<vmem>>, vector<1x4x4xf32>
    %206 = vector.shape_cast %205 : vector<1x4x4xf32> to vector<4x4xf32>
    %cst_130 = arith.constant dense<0.000000e+00> : vector<4x256xf32>
    %207 = tpu.matmul %206, %201, %cst_130 {dimension_numbers = #tpu.dot_dimension_numbers<[1], [0], [0], [1], [0, 0, 1, 1], [], []>} : vector<4x4xf32>, vector<4x256xf32>, vector<4x256xf32> -> vector<4x256xf32>
    %cst_131 = arith.constant dense<0.000000e+00> : vector<4xf32>
    %208 = vector.multi_reduction <add>, %207, %cst_131 [1] : vector<4x256xf32> to vector<4xf32>
    %209 = vector.shape_cast %208 : vector<4xf32> to vector<4x1xf32>
    %cst_132 = arith.constant 3.906250e-03 : f32
    %210 = vector.broadcast %cst_132 : f32 to vector<4x1xf32>
    %211 = arith.mulf %209, %210 : vector<4x1xf32>
    %c0_133 = arith.constant 0 : index
    %c0_134 = arith.constant 0 : index
    %c0_135 = arith.constant 0 : index
    %c0_136 = arith.constant 0 : index
    %212 = vector.load %arg6[%c0_133, %c0_134, %c0_135, %c0_136] : memref<4x2x4x256xf32, #tpu.memory_space<vmem>>, vector<1x1x4x256xf32>
    %213 = vector.shape_cast %212 : vector<1x1x4x256xf32> to vector<4x256xf32>
    %c0_137 = arith.constant 0 : index
    %c0_138 = arith.constant 0 : index
    %c0_139 = arith.constant 0 : index
    %214 = vector.load %arg0[%c0_137, %c0_138, %c0_139] : memref<2x4x256xf32, #tpu.memory_space<vmem>>, vector<1x4x256xf32>
    %215 = vector.shape_cast %214 : vector<1x4x256xf32> to vector<4x256xf32>
    %216 = arith.addf %213, %215 : vector<4x256xf32>
    %c0_140 = arith.constant 0 : index
    %c0_141 = arith.constant 0 : index
    %c128_142 = arith.constant 128 : index
    %217 = vector.load %arg5[%c0_140, %c0_141, %c128_142] : memref<2x4x512xf32, #tpu.memory_space<vmem>>, vector<1x4x256xf32>
    %218 = vector.shape_cast %217 : vector<1x4x256xf32> to vector<4x256xf32>
    %219 = vector.shape_cast %216 : vector<4x256xf32> to vector<1x4x256xf32>
    tpu.vector_store %arg5[%c0_140, %c0_141, %c128_142], %219 {strides = array<i32>} : memref<2x4x512xf32, #tpu.memory_space<vmem>>, vector<1x4x256xf32>,
    %c0_143 = arith.constant 0 : index
    %c0_144 = arith.constant 0 : index
    %c94 = arith.constant 94 : index
    %220 = vector.load %arg5[%c0_143, %c0_144, %c94] : memref<2x4x512xf32, #tpu.memory_space<vmem>>, vector<1x4x256xf32>
    %221 = vector.shape_cast %220 : vector<1x4x256xf32> to vector<4x256xf32>
    %c2_i32 = arith.constant 2 : i32
    %222 = vector.broadcast %c2_i32 : i32 to vector<1x256xi32>
    %223 = arith.cmpi sge, %2, %222 : vector<1x256xi32>
    %c2_i32_145 = arith.constant 2 : i32
    %224 = vector.broadcast %c2_i32_145 : i32 to vector<1x256xi32>
    %225 = arith.cmpi sge, %4, %224 : vector<1x256xi32>
    %226 = arith.andi %223, %225 : vector<1x256xi1>
    %cst_146 = arith.constant 0.000000e+00 : f32
    %227 = vector.shape_cast %226 : vector<1x256xi1> to vector<1x256xi1>
    %228 = vector.broadcast %227 : vector<1x256xi1> to vector<4x256xi1>
    %229 = vector.broadcast %cst_146 : f32 to vector<4x256xf32>
    %230 = arith.select %228, %221, %229 : vector<4x256xi1>, vector<4x256xf32>
    %c0_147 = arith.constant 0 : index
    %c0_148 = arith.constant 0 : index
    %c96 = arith.constant 96 : index
    %231 = vector.load %arg5[%c0_147, %c0_148, %c96] : memref<2x4x512xf32, #tpu.memory_space<vmem>>, vector<1x4x256xf32>
    %232 = vector.shape_cast %231 : vector<1x4x256xf32> to vector<4x256xf32>
    %c2_i32_149 = arith.constant 2 : i32
    %233 = vector.broadcast %c2_i32_149 : i32 to vector<1x256xi32>
    %234 = arith.cmpi sge, %2, %233 : vector<1x256xi32>
    %cst_150 = arith.constant 0.000000e+00 : f32
    %235 = vector.shape_cast %234 : vector<1x256xi1> to vector<1x256xi1>
    %236 = vector.broadcast %235 : vector<1x256xi1> to vector<4x256xi1>
    %237 = vector.broadcast %cst_150 : f32 to vector<4x256xf32>
    %238 = arith.select %236, %232, %237 : vector<4x256xi1>, vector<4x256xf32>
    %c0_151 = arith.constant 0 : index
    %c0_152 = arith.constant 0 : index
    %c98 = arith.constant 98 : index
    %239 = vector.load %arg5[%c0_151, %c0_152, %c98] : memref<2x4x512xf32, #tpu.memory_space<vmem>>, vector<1x4x256xf32>
    %240 = vector.shape_cast %239 : vector<1x4x256xf32> to vector<4x256xf32>
    %c2_i32_153 = arith.constant 2 : i32
    %241 = vector.broadcast %c2_i32_153 : i32 to vector<1x256xi32>
    %242 = arith.cmpi sge, %2, %241 : vector<1x256xi32>
    %c14_i32 = arith.constant 14 : i32
    %243 = vector.broadcast %c14_i32 : i32 to vector<1x256xi32>
    %244 = arith.cmpi slt, %4, %243 : vector<1x256xi32>
    %245 = arith.andi %242, %244 : vector<1x256xi1>
    %cst_154 = arith.constant 0.000000e+00 : f32
    %246 = vector.shape_cast %245 : vector<1x256xi1> to vector<1x256xi1>
    %247 = vector.broadcast %246 : vector<1x256xi1> to vector<4x256xi1>
    %248 = vector.broadcast %cst_154 : f32 to vector<4x256xf32>
    %249 = arith.select %247, %240, %248 : vector<4x256xi1>, vector<4x256xf32>
    %c0_155 = arith.constant 0 : index
    %c0_156 = arith.constant 0 : index
    %c126 = arith.constant 126 : index
    %250 = vector.load %arg5[%c0_155, %c0_156, %c126] : memref<2x4x512xf32, #tpu.memory_space<vmem>>, vector<1x4x256xf32>
    %251 = vector.shape_cast %250 : vector<1x4x256xf32> to vector<4x256xf32>
    %c2_i32_157 = arith.constant 2 : i32
    %252 = vector.broadcast %c2_i32_157 : i32 to vector<1x256xi32>
    %253 = arith.cmpi sge, %4, %252 : vector<1x256xi32>
    %cst_158 = arith.constant 0.000000e+00 : f32
    %254 = vector.shape_cast %253 : vector<1x256xi1> to vector<1x256xi1>
    %255 = vector.broadcast %254 : vector<1x256xi1> to vector<4x256xi1>
    %256 = vector.broadcast %cst_158 : f32 to vector<4x256xf32>
    %257 = arith.select %255, %251, %256 : vector<4x256xi1>, vector<4x256xf32>
    %c0_159 = arith.constant 0 : index
    %c0_160 = arith.constant 0 : index
    %c128_161 = arith.constant 128 : index
    %258 = vector.load %arg5[%c0_159, %c0_160, %c128_161] : memref<2x4x512xf32, #tpu.memory_space<vmem>>, vector<1x4x256xf32>
    %259 = vector.shape_cast %258 : vector<1x4x256xf32> to vector<4x256xf32>
    %c0_162 = arith.constant 0 : index
    %c0_163 = arith.constant 0 : index
    %c130 = arith.constant 130 : index
    %260 = vector.load %arg5[%c0_162, %c0_163, %c130] : memref<2x4x512xf32, #tpu.memory_space<vmem>>, vector<1x4x256xf32>
    %261 = vector.shape_cast %260 : vector<1x4x256xf32> to vector<4x256xf32>
    %c14_i32_164 = arith.constant 14 : i32
    %262 = vector.broadcast %c14_i32_164 : i32 to vector<1x256xi32>
    %263 = arith.cmpi slt, %4, %262 : vector<1x256xi32>
    %cst_165 = arith.constant 0.000000e+00 : f32
    %264 = vector.shape_cast %263 : vector<1x256xi1> to vector<1x256xi1>
    %265 = vector.broadcast %264 : vector<1x256xi1> to vector<4x256xi1>
    %266 = vector.broadcast %cst_165 : f32 to vector<4x256xf32>
    %267 = arith.select %265, %261, %266 : vector<4x256xi1>, vector<4x256xf32>
    %c0_166 = arith.constant 0 : index
    %c0_167 = arith.constant 0 : index
    %c158 = arith.constant 158 : index
    %268 = vector.load %arg5[%c0_166, %c0_167, %c158] : memref<2x4x512xf32, #tpu.memory_space<vmem>>, vector<1x4x256xf32>
    %269 = vector.shape_cast %268 : vector<1x4x256xf32> to vector<4x256xf32>
    %c14_i32_168 = arith.constant 14 : i32
    %270 = vector.broadcast %c14_i32_168 : i32 to vector<1x256xi32>
    %271 = arith.cmpi slt, %2, %270 : vector<1x256xi32>
    %c2_i32_169 = arith.constant 2 : i32
    %272 = vector.broadcast %c2_i32_169 : i32 to vector<1x256xi32>
    %273 = arith.cmpi sge, %4, %272 : vector<1x256xi32>
    %274 = arith.andi %271, %273 : vector<1x256xi1>
    %cst_170 = arith.constant 0.000000e+00 : f32
    %275 = vector.shape_cast %274 : vector<1x256xi1> to vector<1x256xi1>
    %276 = vector.broadcast %275 : vector<1x256xi1> to vector<4x256xi1>
    %277 = vector.broadcast %cst_170 : f32 to vector<4x256xf32>
    %278 = arith.select %276, %269, %277 : vector<4x256xi1>, vector<4x256xf32>
    %c0_171 = arith.constant 0 : index
    %c0_172 = arith.constant 0 : index
    %c160 = arith.constant 160 : index
    %279 = vector.load %arg5[%c0_171, %c0_172, %c160] : memref<2x4x512xf32, #tpu.memory_space<vmem>>, vector<1x4x256xf32>
    %280 = vector.shape_cast %279 : vector<1x4x256xf32> to vector<4x256xf32>
    %c14_i32_173 = arith.constant 14 : i32
    %281 = vector.broadcast %c14_i32_173 : i32 to vector<1x256xi32>
    %282 = arith.cmpi slt, %2, %281 : vector<1x256xi32>
    %cst_174 = arith.constant 0.000000e+00 : f32
    %283 = vector.shape_cast %282 : vector<1x256xi1> to vector<1x256xi1>
    %284 = vector.broadcast %283 : vector<1x256xi1> to vector<4x256xi1>
    %285 = vector.broadcast %cst_174 : f32 to vector<4x256xf32>
    %286 = arith.select %284, %280, %285 : vector<4x256xi1>, vector<4x256xf32>
    %c0_175 = arith.constant 0 : index
    %c0_176 = arith.constant 0 : index
    %c162 = arith.constant 162 : index
    %287 = vector.load %arg5[%c0_175, %c0_176, %c162] : memref<2x4x512xf32, #tpu.memory_space<vmem>>, vector<1x4x256xf32>
    %288 = vector.shape_cast %287 : vector<1x4x256xf32> to vector<4x256xf32>
    %c14_i32_177 = arith.constant 14 : i32
    %289 = vector.broadcast %c14_i32_177 : i32 to vector<1x256xi32>
    %290 = arith.cmpi slt, %2, %289 : vector<1x256xi32>
    %c14_i32_178 = arith.constant 14 : i32
    %291 = vector.broadcast %c14_i32_178 : i32 to vector<1x256xi32>
    %292 = arith.cmpi slt, %4, %291 : vector<1x256xi32>
    %293 = arith.andi %290, %292 : vector<1x256xi1>
    %cst_179 = arith.constant 0.000000e+00 : f32
    %294 = vector.shape_cast %293 : vector<1x256xi1> to vector<1x256xi1>
    %295 = vector.broadcast %294 : vector<1x256xi1> to vector<4x256xi1>
    %296 = vector.broadcast %cst_179 : f32 to vector<4x256xf32>
    %297 = arith.select %295, %288, %296 : vector<4x256xi1>, vector<4x256xf32>
    %298 = tpu.concatenate %230, %238, %249, %257, %259, %267, %278, %286, %297 in 0 : vector<4x256xf32>, vector<4x256xf32>, vector<4x256xf32>, vector<4x256xf32>, vector<4x256xf32>, vector<4x256xf32>, vector<4x256xf32>, vector<4x256xf32>, vector<4x256xf32> -> vector<36x256xf32>
    %c1_180 = arith.constant 1 : index
    %c0_181 = arith.constant 0 : index
    %c0_182 = arith.constant 0 : index
    %299 = vector.load %arg1[%c1_180, %c0_181, %c0_182] : memref<4x4x36xf32, #tpu.memory_space<vmem>>, vector<1x4x36xf32>
    %300 = vector.shape_cast %299 : vector<1x4x36xf32> to vector<4x36xf32>
    %cst_183 = arith.constant dense<0.000000e+00> : vector<4x256xf32>
    %301 = tpu.matmul %300, %298, %cst_183 {dimension_numbers = #tpu.dot_dimension_numbers<[1], [0], [0], [1], [0, 0, 1, 1], [], []>} : vector<4x36xf32>, vector<36x256xf32>, vector<4x256xf32> -> vector<4x256xf32>
    %c0_184 = arith.constant 0 : index
    %c1_185 = arith.constant 1 : index
    %302 = vector.load %arg3[%c0_184, %c1_185] : memref<4x5xf32, #tpu.memory_space<vmem>>, vector<4x1xf32>
    %303 = vector.broadcast %302 : vector<4x1xf32> to vector<4x256xf32>
    %304 = arith.addf %301, %303 : vector<4x256xf32>
    %cst_186 = arith.constant 0.000000e+00 : f32
    %305 = vector.broadcast %cst_186 : f32 to vector<4x256xf32>
    %306 = arith.maximumf %304, %305 : vector<4x256xf32>
    %c1_187 = arith.constant 1 : index
    %c0_188 = arith.constant 0 : index
    %c0_189 = arith.constant 0 : index
    %c0_190 = arith.constant 0 : index
    %307 = vector.load %arg6[%c1_187, %c0_188, %c0_189, %c0_190] : memref<4x2x4x256xf32, #tpu.memory_space<vmem>>, vector<1x1x4x256xf32>
    %308 = vector.shape_cast %307 : vector<1x1x4x256xf32> to vector<4x256xf32>
    %309 = vector.shape_cast %306 : vector<4x256xf32> to vector<1x1x4x256xf32>
    tpu.vector_store %arg6[%c1_187, %c0_188, %c0_189, %c0_190], %309 {strides = array<i32>} : memref<4x2x4x256xf32, #tpu.memory_space<vmem>>, vector<1x1x4x256xf32>,
    %c1_191 = arith.constant 1 : index
    %c0_192 = arith.constant 0 : index
    %c0_193 = arith.constant 0 : index
    %310 = vector.load %arg2[%c1_191, %c0_192, %c0_193] : memref<5x4x4xf32, #tpu.memory_space<vmem>>, vector<1x4x4xf32>
    %311 = vector.shape_cast %310 : vector<1x4x4xf32> to vector<4x4xf32>
    %cst_194 = arith.constant dense<0.000000e+00> : vector<4x256xf32>
    %312 = tpu.matmul %311, %306, %cst_194 {dimension_numbers = #tpu.dot_dimension_numbers<[1], [0], [0], [1], [0, 0, 1, 1], [], []>} : vector<4x4xf32>, vector<4x256xf32>, vector<4x256xf32> -> vector<4x256xf32>
    %cst_195 = arith.constant dense<0.000000e+00> : vector<4xf32>
    %313 = vector.multi_reduction <add>, %312, %cst_195 [1] : vector<4x256xf32> to vector<4xf32>
    %314 = vector.shape_cast %313 : vector<4xf32> to vector<4x1xf32>
    %cst_196 = arith.constant 3.906250e-03 : f32
    %315 = vector.broadcast %cst_196 : f32 to vector<4x1xf32>
    %316 = arith.mulf %314, %315 : vector<4x1xf32>
    %c0_197 = arith.constant 0 : index
    %c1_198 = arith.constant 1 : index
    %c0_199 = arith.constant 0 : index
    %c0_200 = arith.constant 0 : index
    %317 = vector.load %arg6[%c0_197, %c1_198, %c0_199, %c0_200] : memref<4x2x4x256xf32, #tpu.memory_space<vmem>>, vector<1x1x4x256xf32>
    %318 = vector.shape_cast %317 : vector<1x1x4x256xf32> to vector<4x256xf32>
    %c1_201 = arith.constant 1 : index
    %c0_202 = arith.constant 0 : index
    %c0_203 = arith.constant 0 : index
    %319 = vector.load %arg0[%c1_201, %c0_202, %c0_203] : memref<2x4x256xf32, #tpu.memory_space<vmem>>, vector<1x4x256xf32>
    %320 = vector.shape_cast %319 : vector<1x4x256xf32> to vector<4x256xf32>
    %321 = arith.addf %318, %320 : vector<4x256xf32>
    %c1_204 = arith.constant 1 : index
    %c0_205 = arith.constant 0 : index
    %c128_206 = arith.constant 128 : index
    %322 = vector.load %arg5[%c1_204, %c0_205, %c128_206] : memref<2x4x512xf32, #tpu.memory_space<vmem>>, vector<1x4x256xf32>
    %323 = vector.shape_cast %322 : vector<1x4x256xf32> to vector<4x256xf32>
    %324 = vector.shape_cast %321 : vector<4x256xf32> to vector<1x4x256xf32>
    tpu.vector_store %arg5[%c1_204, %c0_205, %c128_206], %324 {strides = array<i32>} : memref<2x4x512xf32, #tpu.memory_space<vmem>>, vector<1x4x256xf32>,
    %c1_207 = arith.constant 1 : index
    %c0_208 = arith.constant 0 : index
    %c94_209 = arith.constant 94 : index
    %325 = vector.load %arg5[%c1_207, %c0_208, %c94_209] : memref<2x4x512xf32, #tpu.memory_space<vmem>>, vector<1x4x256xf32>
    %326 = vector.shape_cast %325 : vector<1x4x256xf32> to vector<4x256xf32>
    %c2_i32_210 = arith.constant 2 : i32
    %327 = vector.broadcast %c2_i32_210 : i32 to vector<1x256xi32>
    %328 = arith.cmpi sge, %2, %327 : vector<1x256xi32>
    %c2_i32_211 = arith.constant 2 : i32
    %329 = vector.broadcast %c2_i32_211 : i32 to vector<1x256xi32>
    %330 = arith.cmpi sge, %4, %329 : vector<1x256xi32>
    %331 = arith.andi %328, %330 : vector<1x256xi1>
    %cst_212 = arith.constant 0.000000e+00 : f32
    %332 = vector.shape_cast %331 : vector<1x256xi1> to vector<1x256xi1>
    %333 = vector.broadcast %332 : vector<1x256xi1> to vector<4x256xi1>
    %334 = vector.broadcast %cst_212 : f32 to vector<4x256xf32>
    %335 = arith.select %333, %326, %334 : vector<4x256xi1>, vector<4x256xf32>
    %c1_213 = arith.constant 1 : index
    %c0_214 = arith.constant 0 : index
    %c96_215 = arith.constant 96 : index
    %336 = vector.load %arg5[%c1_213, %c0_214, %c96_215] : memref<2x4x512xf32, #tpu.memory_space<vmem>>, vector<1x4x256xf32>
    %337 = vector.shape_cast %336 : vector<1x4x256xf32> to vector<4x256xf32>
    %c2_i32_216 = arith.constant 2 : i32
    %338 = vector.broadcast %c2_i32_216 : i32 to vector<1x256xi32>
    %339 = arith.cmpi sge, %2, %338 : vector<1x256xi32>
    %cst_217 = arith.constant 0.000000e+00 : f32
    %340 = vector.shape_cast %339 : vector<1x256xi1> to vector<1x256xi1>
    %341 = vector.broadcast %340 : vector<1x256xi1> to vector<4x256xi1>
    %342 = vector.broadcast %cst_217 : f32 to vector<4x256xf32>
    %343 = arith.select %341, %337, %342 : vector<4x256xi1>, vector<4x256xf32>
    %c1_218 = arith.constant 1 : index
    %c0_219 = arith.constant 0 : index
    %c98_220 = arith.constant 98 : index
    %344 = vector.load %arg5[%c1_218, %c0_219, %c98_220] : memref<2x4x512xf32, #tpu.memory_space<vmem>>, vector<1x4x256xf32>
    %345 = vector.shape_cast %344 : vector<1x4x256xf32> to vector<4x256xf32>
    %c2_i32_221 = arith.constant 2 : i32
    %346 = vector.broadcast %c2_i32_221 : i32 to vector<1x256xi32>
    %347 = arith.cmpi sge, %2, %346 : vector<1x256xi32>
    %c14_i32_222 = arith.constant 14 : i32
    %348 = vector.broadcast %c14_i32_222 : i32 to vector<1x256xi32>
    %349 = arith.cmpi slt, %4, %348 : vector<1x256xi32>
    %350 = arith.andi %347, %349 : vector<1x256xi1>
    %cst_223 = arith.constant 0.000000e+00 : f32
    %351 = vector.shape_cast %350 : vector<1x256xi1> to vector<1x256xi1>
    %352 = vector.broadcast %351 : vector<1x256xi1> to vector<4x256xi1>
    %353 = vector.broadcast %cst_223 : f32 to vector<4x256xf32>
    %354 = arith.select %352, %345, %353 : vector<4x256xi1>, vector<4x256xf32>
    %c1_224 = arith.constant 1 : index
    %c0_225 = arith.constant 0 : index
    %c126_226 = arith.constant 126 : index
    %355 = vector.load %arg5[%c1_224, %c0_225, %c126_226] : memref<2x4x512xf32, #tpu.memory_space<vmem>>, vector<1x4x256xf32>
    %356 = vector.shape_cast %355 : vector<1x4x256xf32> to vector<4x256xf32>
    %c2_i32_227 = arith.constant 2 : i32
    %357 = vector.broadcast %c2_i32_227 : i32 to vector<1x256xi32>
    %358 = arith.cmpi sge, %4, %357 : vector<1x256xi32>
    %cst_228 = arith.constant 0.000000e+00 : f32
    %359 = vector.shape_cast %358 : vector<1x256xi1> to vector<1x256xi1>
    %360 = vector.broadcast %359 : vector<1x256xi1> to vector<4x256xi1>
    %361 = vector.broadcast %cst_228 : f32 to vector<4x256xf32>
    %362 = arith.select %360, %356, %361 : vector<4x256xi1>, vector<4x256xf32>
    %c1_229 = arith.constant 1 : index
    %c0_230 = arith.constant 0 : index
    %c128_231 = arith.constant 128 : index
    %363 = vector.load %arg5[%c1_229, %c0_230, %c128_231] : memref<2x4x512xf32, #tpu.memory_space<vmem>>, vector<1x4x256xf32>
    %364 = vector.shape_cast %363 : vector<1x4x256xf32> to vector<4x256xf32>
    %c1_232 = arith.constant 1 : index
    %c0_233 = arith.constant 0 : index
    %c130_234 = arith.constant 130 : index
    %365 = vector.load %arg5[%c1_232, %c0_233, %c130_234] : memref<2x4x512xf32, #tpu.memory_space<vmem>>, vector<1x4x256xf32>
    %366 = vector.shape_cast %365 : vector<1x4x256xf32> to vector<4x256xf32>
    %c14_i32_235 = arith.constant 14 : i32
    %367 = vector.broadcast %c14_i32_235 : i32 to vector<1x256xi32>
    %368 = arith.cmpi slt, %4, %367 : vector<1x256xi32>
    %cst_236 = arith.constant 0.000000e+00 : f32
    %369 = vector.shape_cast %368 : vector<1x256xi1> to vector<1x256xi1>
    %370 = vector.broadcast %369 : vector<1x256xi1> to vector<4x256xi1>
    %371 = vector.broadcast %cst_236 : f32 to vector<4x256xf32>
    %372 = arith.select %370, %366, %371 : vector<4x256xi1>, vector<4x256xf32>
    %c1_237 = arith.constant 1 : index
    %c0_238 = arith.constant 0 : index
    %c158_239 = arith.constant 158 : index
    %373 = vector.load %arg5[%c1_237, %c0_238, %c158_239] : memref<2x4x512xf32, #tpu.memory_space<vmem>>, vector<1x4x256xf32>
    %374 = vector.shape_cast %373 : vector<1x4x256xf32> to vector<4x256xf32>
    %c14_i32_240 = arith.constant 14 : i32
    %375 = vector.broadcast %c14_i32_240 : i32 to vector<1x256xi32>
    %376 = arith.cmpi slt, %2, %375 : vector<1x256xi32>
    %c2_i32_241 = arith.constant 2 : i32
    %377 = vector.broadcast %c2_i32_241 : i32 to vector<1x256xi32>
    %378 = arith.cmpi sge, %4, %377 : vector<1x256xi32>
    %379 = arith.andi %376, %378 : vector<1x256xi1>
    %cst_242 = arith.constant 0.000000e+00 : f32
    %380 = vector.shape_cast %379 : vector<1x256xi1> to vector<1x256xi1>
    %381 = vector.broadcast %380 : vector<1x256xi1> to vector<4x256xi1>
    %382 = vector.broadcast %cst_242 : f32 to vector<4x256xf32>
    %383 = arith.select %381, %374, %382 : vector<4x256xi1>, vector<4x256xf32>
    %c1_243 = arith.constant 1 : index
    %c0_244 = arith.constant 0 : index
    %c160_245 = arith.constant 160 : index
    %384 = vector.load %arg5[%c1_243, %c0_244, %c160_245] : memref<2x4x512xf32, #tpu.memory_space<vmem>>, vector<1x4x256xf32>
    %385 = vector.shape_cast %384 : vector<1x4x256xf32> to vector<4x256xf32>
    %c14_i32_246 = arith.constant 14 : i32
    %386 = vector.broadcast %c14_i32_246 : i32 to vector<1x256xi32>
    %387 = arith.cmpi slt, %2, %386 : vector<1x256xi32>
    %cst_247 = arith.constant 0.000000e+00 : f32
    %388 = vector.shape_cast %387 : vector<1x256xi1> to vector<1x256xi1>
    %389 = vector.broadcast %388 : vector<1x256xi1> to vector<4x256xi1>
    %390 = vector.broadcast %cst_247 : f32 to vector<4x256xf32>
    %391 = arith.select %389, %385, %390 : vector<4x256xi1>, vector<4x256xf32>
    %c1_248 = arith.constant 1 : index
    %c0_249 = arith.constant 0 : index
    %c162_250 = arith.constant 162 : index
    %392 = vector.load %arg5[%c1_248, %c0_249, %c162_250] : memref<2x4x512xf32, #tpu.memory_space<vmem>>, vector<1x4x256xf32>
    %393 = vector.shape_cast %392 : vector<1x4x256xf32> to vector<4x256xf32>
    %c14_i32_251 = arith.constant 14 : i32
    %394 = vector.broadcast %c14_i32_251 : i32 to vector<1x256xi32>
    %395 = arith.cmpi slt, %2, %394 : vector<1x256xi32>
    %c14_i32_252 = arith.constant 14 : i32
    %396 = vector.broadcast %c14_i32_252 : i32 to vector<1x256xi32>
    %397 = arith.cmpi slt, %4, %396 : vector<1x256xi32>
    %398 = arith.andi %395, %397 : vector<1x256xi1>
    %cst_253 = arith.constant 0.000000e+00 : f32
    %399 = vector.shape_cast %398 : vector<1x256xi1> to vector<1x256xi1>
    %400 = vector.broadcast %399 : vector<1x256xi1> to vector<4x256xi1>
    %401 = vector.broadcast %cst_253 : f32 to vector<4x256xf32>
    %402 = arith.select %400, %393, %401 : vector<4x256xi1>, vector<4x256xf32>
    %403 = tpu.concatenate %335, %343, %354, %362, %364, %372, %383, %391, %402 in 0 : vector<4x256xf32>, vector<4x256xf32>, vector<4x256xf32>, vector<4x256xf32>, vector<4x256xf32>, vector<4x256xf32>, vector<4x256xf32>, vector<4x256xf32>, vector<4x256xf32> -> vector<36x256xf32>
    %c1_254 = arith.constant 1 : index
    %c0_255 = arith.constant 0 : index
    %c0_256 = arith.constant 0 : index
    %404 = vector.load %arg1[%c1_254, %c0_255, %c0_256] : memref<4x4x36xf32, #tpu.memory_space<vmem>>, vector<1x4x36xf32>
    %405 = vector.shape_cast %404 : vector<1x4x36xf32> to vector<4x36xf32>
    %cst_257 = arith.constant dense<0.000000e+00> : vector<4x256xf32>
    %406 = tpu.matmul %405, %403, %cst_257 {dimension_numbers = #tpu.dot_dimension_numbers<[1], [0], [0], [1], [0, 0, 1, 1], [], []>} : vector<4x36xf32>, vector<36x256xf32>, vector<4x256xf32> -> vector<4x256xf32>
    %c0_258 = arith.constant 0 : index
    %c1_259 = arith.constant 1 : index
    %407 = vector.load %arg3[%c0_258, %c1_259] : memref<4x5xf32, #tpu.memory_space<vmem>>, vector<4x1xf32>
    %408 = vector.broadcast %407 : vector<4x1xf32> to vector<4x256xf32>
    %409 = arith.addf %406, %408 : vector<4x256xf32>
    %cst_260 = arith.constant 0.000000e+00 : f32
    %410 = vector.broadcast %cst_260 : f32 to vector<4x256xf32>
    %411 = arith.maximumf %409, %410 : vector<4x256xf32>
    %c1_261 = arith.constant 1 : index
    %c1_262 = arith.constant 1 : index
    %c0_263 = arith.constant 0 : index
    %c0_264 = arith.constant 0 : index
    %412 = vector.load %arg6[%c1_261, %c1_262, %c0_263, %c0_264] : memref<4x2x4x256xf32, #tpu.memory_space<vmem>>, vector<1x1x4x256xf32>
    %413 = vector.shape_cast %412 : vector<1x1x4x256xf32> to vector<4x256xf32>
    %414 = vector.shape_cast %411 : vector<4x256xf32> to vector<1x1x4x256xf32>
    tpu.vector_store %arg6[%c1_261, %c1_262, %c0_263, %c0_264], %414 {strides = array<i32>} : memref<4x2x4x256xf32, #tpu.memory_space<vmem>>, vector<1x1x4x256xf32>,
    %c1_265 = arith.constant 1 : index
    %c0_266 = arith.constant 0 : index
    %c0_267 = arith.constant 0 : index
    %415 = vector.load %arg2[%c1_265, %c0_266, %c0_267] : memref<5x4x4xf32, #tpu.memory_space<vmem>>, vector<1x4x4xf32>
    %416 = vector.shape_cast %415 : vector<1x4x4xf32> to vector<4x4xf32>
    %cst_268 = arith.constant dense<0.000000e+00> : vector<4x256xf32>
    %417 = tpu.matmul %416, %411, %cst_268 {dimension_numbers = #tpu.dot_dimension_numbers<[1], [0], [0], [1], [0, 0, 1, 1], [], []>} : vector<4x4xf32>, vector<4x256xf32>, vector<4x256xf32> -> vector<4x256xf32>
    %cst_269 = arith.constant dense<0.000000e+00> : vector<4xf32>
    %418 = vector.multi_reduction <add>, %417, %cst_269 [1] : vector<4x256xf32> to vector<4xf32>
    %419 = vector.shape_cast %418 : vector<4xf32> to vector<4x1xf32>
    %cst_270 = arith.constant 3.906250e-03 : f32
    %420 = vector.broadcast %cst_270 : f32 to vector<4x1xf32>
    %421 = arith.mulf %419, %420 : vector<4x1xf32>
    %c1_271 = arith.constant 1 : index
    %c0_272 = arith.constant 0 : index
    %c0_273 = arith.constant 0 : index
    %c0_274 = arith.constant 0 : index
    %422 = vector.load %arg6[%c1_271, %c0_272, %c0_273, %c0_274] : memref<4x2x4x256xf32, #tpu.memory_space<vmem>>, vector<1x1x4x256xf32>
    %423 = vector.shape_cast %422 : vector<1x1x4x256xf32> to vector<4x256xf32>
    %c0_275 = arith.constant 0 : index
    %c0_276 = arith.constant 0 : index
    %c0_277 = arith.constant 0 : index
    %424 = vector.load %arg0[%c0_275, %c0_276, %c0_277] : memref<2x4x256xf32, #tpu.memory_space<vmem>>, vector<1x4x256xf32>
    %425 = vector.shape_cast %424 : vector<1x4x256xf32> to vector<4x256xf32>
    %426 = arith.addf %423, %425 : vector<4x256xf32>
    %c0_278 = arith.constant 0 : index
    %c0_279 = arith.constant 0 : index
    %c128_280 = arith.constant 128 : index
    %427 = vector.load %arg5[%c0_278, %c0_279, %c128_280] : memref<2x4x512xf32, #tpu.memory_space<vmem>>, vector<1x4x256xf32>
    %428 = vector.shape_cast %427 : vector<1x4x256xf32> to vector<4x256xf32>
    %429 = vector.shape_cast %426 : vector<4x256xf32> to vector<1x4x256xf32>
    tpu.vector_store %arg5[%c0_278, %c0_279, %c128_280], %429 {strides = array<i32>} : memref<2x4x512xf32, #tpu.memory_space<vmem>>, vector<1x4x256xf32>,
    %c0_281 = arith.constant 0 : index
    %c0_282 = arith.constant 0 : index
    %c60 = arith.constant 60 : index
    %430 = vector.load %arg5[%c0_281, %c0_282, %c60] : memref<2x4x512xf32, #tpu.memory_space<vmem>>, vector<1x4x256xf32>
    %431 = vector.shape_cast %430 : vector<1x4x256xf32> to vector<4x256xf32>
    %c4_i32_283 = arith.constant 4 : i32
    %432 = vector.broadcast %c4_i32_283 : i32 to vector<1x256xi32>
    %433 = arith.cmpi sge, %2, %432 : vector<1x256xi32>
    %c4_i32_284 = arith.constant 4 : i32
    %434 = vector.broadcast %c4_i32_284 : i32 to vector<1x256xi32>
    %435 = arith.cmpi sge, %4, %434 : vector<1x256xi32>
    %436 = arith.andi %433, %435 : vector<1x256xi1>
    %cst_285 = arith.constant 0.000000e+00 : f32
    %437 = vector.shape_cast %436 : vector<1x256xi1> to vector<1x256xi1>
    %438 = vector.broadcast %437 : vector<1x256xi1> to vector<4x256xi1>
    %439 = vector.broadcast %cst_285 : f32 to vector<4x256xf32>
    %440 = arith.select %438, %431, %439 : vector<4x256xi1>, vector<4x256xf32>
    %c0_286 = arith.constant 0 : index
    %c0_287 = arith.constant 0 : index
    %c64 = arith.constant 64 : index
    %441 = vector.load %arg5[%c0_286, %c0_287, %c64] : memref<2x4x512xf32, #tpu.memory_space<vmem>>, vector<1x4x256xf32>
    %442 = vector.shape_cast %441 : vector<1x4x256xf32> to vector<4x256xf32>
    %c4_i32_288 = arith.constant 4 : i32
    %443 = vector.broadcast %c4_i32_288 : i32 to vector<1x256xi32>
    %444 = arith.cmpi sge, %2, %443 : vector<1x256xi32>
    %cst_289 = arith.constant 0.000000e+00 : f32
    %445 = vector.shape_cast %444 : vector<1x256xi1> to vector<1x256xi1>
    %446 = vector.broadcast %445 : vector<1x256xi1> to vector<4x256xi1>
    %447 = vector.broadcast %cst_289 : f32 to vector<4x256xf32>
    %448 = arith.select %446, %442, %447 : vector<4x256xi1>, vector<4x256xf32>
    %c0_290 = arith.constant 0 : index
    %c0_291 = arith.constant 0 : index
    %c68 = arith.constant 68 : index
    %449 = vector.load %arg5[%c0_290, %c0_291, %c68] : memref<2x4x512xf32, #tpu.memory_space<vmem>>, vector<1x4x256xf32>
    %450 = vector.shape_cast %449 : vector<1x4x256xf32> to vector<4x256xf32>
    %c4_i32_292 = arith.constant 4 : i32
    %451 = vector.broadcast %c4_i32_292 : i32 to vector<1x256xi32>
    %452 = arith.cmpi sge, %2, %451 : vector<1x256xi32>
    %c12_i32 = arith.constant 12 : i32
    %453 = vector.broadcast %c12_i32 : i32 to vector<1x256xi32>
    %454 = arith.cmpi slt, %4, %453 : vector<1x256xi32>
    %455 = arith.andi %452, %454 : vector<1x256xi1>
    %cst_293 = arith.constant 0.000000e+00 : f32
    %456 = vector.shape_cast %455 : vector<1x256xi1> to vector<1x256xi1>
    %457 = vector.broadcast %456 : vector<1x256xi1> to vector<4x256xi1>
    %458 = vector.broadcast %cst_293 : f32 to vector<4x256xf32>
    %459 = arith.select %457, %450, %458 : vector<4x256xi1>, vector<4x256xf32>
    %c0_294 = arith.constant 0 : index
    %c0_295 = arith.constant 0 : index
    %c124 = arith.constant 124 : index
    %460 = vector.load %arg5[%c0_294, %c0_295, %c124] : memref<2x4x512xf32, #tpu.memory_space<vmem>>, vector<1x4x256xf32>
    %461 = vector.shape_cast %460 : vector<1x4x256xf32> to vector<4x256xf32>
    %c4_i32_296 = arith.constant 4 : i32
    %462 = vector.broadcast %c4_i32_296 : i32 to vector<1x256xi32>
    %463 = arith.cmpi sge, %4, %462 : vector<1x256xi32>
    %cst_297 = arith.constant 0.000000e+00 : f32
    %464 = vector.shape_cast %463 : vector<1x256xi1> to vector<1x256xi1>
    %465 = vector.broadcast %464 : vector<1x256xi1> to vector<4x256xi1>
    %466 = vector.broadcast %cst_297 : f32 to vector<4x256xf32>
    %467 = arith.select %465, %461, %466 : vector<4x256xi1>, vector<4x256xf32>
    %c0_298 = arith.constant 0 : index
    %c0_299 = arith.constant 0 : index
    %c128_300 = arith.constant 128 : index
    %468 = vector.load %arg5[%c0_298, %c0_299, %c128_300] : memref<2x4x512xf32, #tpu.memory_space<vmem>>, vector<1x4x256xf32>
    %469 = vector.shape_cast %468 : vector<1x4x256xf32> to vector<4x256xf32>
    %c0_301 = arith.constant 0 : index
    %c0_302 = arith.constant 0 : index
    %c132 = arith.constant 132 : index
    %470 = vector.load %arg5[%c0_301, %c0_302, %c132] : memref<2x4x512xf32, #tpu.memory_space<vmem>>, vector<1x4x256xf32>
    %471 = vector.shape_cast %470 : vector<1x4x256xf32> to vector<4x256xf32>
    %c12_i32_303 = arith.constant 12 : i32
    %472 = vector.broadcast %c12_i32_303 : i32 to vector<1x256xi32>
    %473 = arith.cmpi slt, %4, %472 : vector<1x256xi32>
    %cst_304 = arith.constant 0.000000e+00 : f32
    %474 = vector.shape_cast %473 : vector<1x256xi1> to vector<1x256xi1>
    %475 = vector.broadcast %474 : vector<1x256xi1> to vector<4x256xi1>
    %476 = vector.broadcast %cst_304 : f32 to vector<4x256xf32>
    %477 = arith.select %475, %471, %476 : vector<4x256xi1>, vector<4x256xf32>
    %c0_305 = arith.constant 0 : index
    %c0_306 = arith.constant 0 : index
    %c188 = arith.constant 188 : index
    %478 = vector.load %arg5[%c0_305, %c0_306, %c188] : memref<2x4x512xf32, #tpu.memory_space<vmem>>, vector<1x4x256xf32>
    %479 = vector.shape_cast %478 : vector<1x4x256xf32> to vector<4x256xf32>
    %c12_i32_307 = arith.constant 12 : i32
    %480 = vector.broadcast %c12_i32_307 : i32 to vector<1x256xi32>
    %481 = arith.cmpi slt, %2, %480 : vector<1x256xi32>
    %c4_i32_308 = arith.constant 4 : i32
    %482 = vector.broadcast %c4_i32_308 : i32 to vector<1x256xi32>
    %483 = arith.cmpi sge, %4, %482 : vector<1x256xi32>
    %484 = arith.andi %481, %483 : vector<1x256xi1>
    %cst_309 = arith.constant 0.000000e+00 : f32
    %485 = vector.shape_cast %484 : vector<1x256xi1> to vector<1x256xi1>
    %486 = vector.broadcast %485 : vector<1x256xi1> to vector<4x256xi1>
    %487 = vector.broadcast %cst_309 : f32 to vector<4x256xf32>
    %488 = arith.select %486, %479, %487 : vector<4x256xi1>, vector<4x256xf32>
    %c0_310 = arith.constant 0 : index
    %c0_311 = arith.constant 0 : index
    %c192 = arith.constant 192 : index
    %489 = vector.load %arg5[%c0_310, %c0_311, %c192] : memref<2x4x512xf32, #tpu.memory_space<vmem>>, vector<1x4x256xf32>
    %490 = vector.shape_cast %489 : vector<1x4x256xf32> to vector<4x256xf32>
    %c12_i32_312 = arith.constant 12 : i32
    %491 = vector.broadcast %c12_i32_312 : i32 to vector<1x256xi32>
    %492 = arith.cmpi slt, %2, %491 : vector<1x256xi32>
    %cst_313 = arith.constant 0.000000e+00 : f32
    %493 = vector.shape_cast %492 : vector<1x256xi1> to vector<1x256xi1>
    %494 = vector.broadcast %493 : vector<1x256xi1> to vector<4x256xi1>
    %495 = vector.broadcast %cst_313 : f32 to vector<4x256xf32>
    %496 = arith.select %494, %490, %495 : vector<4x256xi1>, vector<4x256xf32>
    %c0_314 = arith.constant 0 : index
    %c0_315 = arith.constant 0 : index
    %c196 = arith.constant 196 : index
    %497 = vector.load %arg5[%c0_314, %c0_315, %c196] : memref<2x4x512xf32, #tpu.memory_space<vmem>>, vector<1x4x256xf32>
    %498 = vector.shape_cast %497 : vector<1x4x256xf32> to vector<4x256xf32>
    %c12_i32_316 = arith.constant 12 : i32
    %499 = vector.broadcast %c12_i32_316 : i32 to vector<1x256xi32>
    %500 = arith.cmpi slt, %2, %499 : vector<1x256xi32>
    %c12_i32_317 = arith.constant 12 : i32
    %501 = vector.broadcast %c12_i32_317 : i32 to vector<1x256xi32>
    %502 = arith.cmpi slt, %4, %501 : vector<1x256xi32>
    %503 = arith.andi %500, %502 : vector<1x256xi1>
    %cst_318 = arith.constant 0.000000e+00 : f32
    %504 = vector.shape_cast %503 : vector<1x256xi1> to vector<1x256xi1>
    %505 = vector.broadcast %504 : vector<1x256xi1> to vector<4x256xi1>
    %506 = vector.broadcast %cst_318 : f32 to vector<4x256xf32>
    %507 = arith.select %505, %498, %506 : vector<4x256xi1>, vector<4x256xf32>
    %508 = tpu.concatenate %440, %448, %459, %467, %469, %477, %488, %496, %507 in 0 : vector<4x256xf32>, vector<4x256xf32>, vector<4x256xf32>, vector<4x256xf32>, vector<4x256xf32>, vector<4x256xf32>, vector<4x256xf32>, vector<4x256xf32>, vector<4x256xf32> -> vector<36x256xf32>
    %c2 = arith.constant 2 : index
    %c0_319 = arith.constant 0 : index
    %c0_320 = arith.constant 0 : index
    %509 = vector.load %arg1[%c2, %c0_319, %c0_320] : memref<4x4x36xf32, #tpu.memory_space<vmem>>, vector<1x4x36xf32>
    %510 = vector.shape_cast %509 : vector<1x4x36xf32> to vector<4x36xf32>
    %cst_321 = arith.constant dense<0.000000e+00> : vector<4x256xf32>
    %511 = tpu.matmul %510, %508, %cst_321 {dimension_numbers = #tpu.dot_dimension_numbers<[1], [0], [0], [1], [0, 0, 1, 1], [], []>} : vector<4x36xf32>, vector<36x256xf32>, vector<4x256xf32> -> vector<4x256xf32>
    %c0_322 = arith.constant 0 : index
    %c2_323 = arith.constant 2 : index
    %512 = vector.load %arg3[%c0_322, %c2_323] : memref<4x5xf32, #tpu.memory_space<vmem>>, vector<4x1xf32>
    %513 = vector.broadcast %512 : vector<4x1xf32> to vector<4x256xf32>
    %514 = arith.addf %511, %513 : vector<4x256xf32>
    %cst_324 = arith.constant 0.000000e+00 : f32
    %515 = vector.broadcast %cst_324 : f32 to vector<4x256xf32>
    %516 = arith.maximumf %514, %515 : vector<4x256xf32>
    %c2_325 = arith.constant 2 : index
    %c0_326 = arith.constant 0 : index
    %c0_327 = arith.constant 0 : index
    %c0_328 = arith.constant 0 : index
    %517 = vector.load %arg6[%c2_325, %c0_326, %c0_327, %c0_328] : memref<4x2x4x256xf32, #tpu.memory_space<vmem>>, vector<1x1x4x256xf32>
    %518 = vector.shape_cast %517 : vector<1x1x4x256xf32> to vector<4x256xf32>
    %519 = vector.shape_cast %516 : vector<4x256xf32> to vector<1x1x4x256xf32>
    tpu.vector_store %arg6[%c2_325, %c0_326, %c0_327, %c0_328], %519 {strides = array<i32>} : memref<4x2x4x256xf32, #tpu.memory_space<vmem>>, vector<1x1x4x256xf32>,
    %c2_329 = arith.constant 2 : index
    %c0_330 = arith.constant 0 : index
    %c0_331 = arith.constant 0 : index
    %520 = vector.load %arg2[%c2_329, %c0_330, %c0_331] : memref<5x4x4xf32, #tpu.memory_space<vmem>>, vector<1x4x4xf32>
    %521 = vector.shape_cast %520 : vector<1x4x4xf32> to vector<4x4xf32>
    %cst_332 = arith.constant dense<0.000000e+00> : vector<4x256xf32>
    %522 = tpu.matmul %521, %516, %cst_332 {dimension_numbers = #tpu.dot_dimension_numbers<[1], [0], [0], [1], [0, 0, 1, 1], [], []>} : vector<4x4xf32>, vector<4x256xf32>, vector<4x256xf32> -> vector<4x256xf32>
    %cst_333 = arith.constant dense<0.000000e+00> : vector<4xf32>
    %523 = vector.multi_reduction <add>, %522, %cst_333 [1] : vector<4x256xf32> to vector<4xf32>
    %524 = vector.shape_cast %523 : vector<4xf32> to vector<4x1xf32>
    %cst_334 = arith.constant 3.906250e-03 : f32
    %525 = vector.broadcast %cst_334 : f32 to vector<4x1xf32>
    %526 = arith.mulf %524, %525 : vector<4x1xf32>
    %c1_335 = arith.constant 1 : index
    %c1_336 = arith.constant 1 : index
    %c0_337 = arith.constant 0 : index
    %c0_338 = arith.constant 0 : index
    %527 = vector.load %arg6[%c1_335, %c1_336, %c0_337, %c0_338] : memref<4x2x4x256xf32, #tpu.memory_space<vmem>>, vector<1x1x4x256xf32>
    %528 = vector.shape_cast %527 : vector<1x1x4x256xf32> to vector<4x256xf32>
    %c1_339 = arith.constant 1 : index
    %c0_340 = arith.constant 0 : index
    %c0_341 = arith.constant 0 : index
    %529 = vector.load %arg0[%c1_339, %c0_340, %c0_341] : memref<2x4x256xf32, #tpu.memory_space<vmem>>, vector<1x4x256xf32>
    %530 = vector.shape_cast %529 : vector<1x4x256xf32> to vector<4x256xf32>
    %531 = arith.addf %528, %530 : vector<4x256xf32>
    %c1_342 = arith.constant 1 : index
    %c0_343 = arith.constant 0 : index
    %c128_344 = arith.constant 128 : index
    %532 = vector.load %arg5[%c1_342, %c0_343, %c128_344] : memref<2x4x512xf32, #tpu.memory_space<vmem>>, vector<1x4x256xf32>
    %533 = vector.shape_cast %532 : vector<1x4x256xf32> to vector<4x256xf32>
    %534 = vector.shape_cast %531 : vector<4x256xf32> to vector<1x4x256xf32>
    tpu.vector_store %arg5[%c1_342, %c0_343, %c128_344], %534 {strides = array<i32>} : memref<2x4x512xf32, #tpu.memory_space<vmem>>, vector<1x4x256xf32>,
    %c1_345 = arith.constant 1 : index
    %c0_346 = arith.constant 0 : index
    %c60_347 = arith.constant 60 : index
    %535 = vector.load %arg5[%c1_345, %c0_346, %c60_347] : memref<2x4x512xf32, #tpu.memory_space<vmem>>, vector<1x4x256xf32>
    %536 = vector.shape_cast %535 : vector<1x4x256xf32> to vector<4x256xf32>
    %c4_i32_348 = arith.constant 4 : i32
    %537 = vector.broadcast %c4_i32_348 : i32 to vector<1x256xi32>
    %538 = arith.cmpi sge, %2, %537 : vector<1x256xi32>
    %c4_i32_349 = arith.constant 4 : i32
    %539 = vector.broadcast %c4_i32_349 : i32 to vector<1x256xi32>
    %540 = arith.cmpi sge, %4, %539 : vector<1x256xi32>
    %541 = arith.andi %538, %540 : vector<1x256xi1>
    %cst_350 = arith.constant 0.000000e+00 : f32
    %542 = vector.shape_cast %541 : vector<1x256xi1> to vector<1x256xi1>
    %543 = vector.broadcast %542 : vector<1x256xi1> to vector<4x256xi1>
    %544 = vector.broadcast %cst_350 : f32 to vector<4x256xf32>
    %545 = arith.select %543, %536, %544 : vector<4x256xi1>, vector<4x256xf32>
    %c1_351 = arith.constant 1 : index
    %c0_352 = arith.constant 0 : index
    %c64_353 = arith.constant 64 : index
    %546 = vector.load %arg5[%c1_351, %c0_352, %c64_353] : memref<2x4x512xf32, #tpu.memory_space<vmem>>, vector<1x4x256xf32>
    %547 = vector.shape_cast %546 : vector<1x4x256xf32> to vector<4x256xf32>
    %c4_i32_354 = arith.constant 4 : i32
    %548 = vector.broadcast %c4_i32_354 : i32 to vector<1x256xi32>
    %549 = arith.cmpi sge, %2, %548 : vector<1x256xi32>
    %cst_355 = arith.constant 0.000000e+00 : f32
    %550 = vector.shape_cast %549 : vector<1x256xi1> to vector<1x256xi1>
    %551 = vector.broadcast %550 : vector<1x256xi1> to vector<4x256xi1>
    %552 = vector.broadcast %cst_355 : f32 to vector<4x256xf32>
    %553 = arith.select %551, %547, %552 : vector<4x256xi1>, vector<4x256xf32>
    %c1_356 = arith.constant 1 : index
    %c0_357 = arith.constant 0 : index
    %c68_358 = arith.constant 68 : index
    %554 = vector.load %arg5[%c1_356, %c0_357, %c68_358] : memref<2x4x512xf32, #tpu.memory_space<vmem>>, vector<1x4x256xf32>
    %555 = vector.shape_cast %554 : vector<1x4x256xf32> to vector<4x256xf32>
    %c4_i32_359 = arith.constant 4 : i32
    %556 = vector.broadcast %c4_i32_359 : i32 to vector<1x256xi32>
    %557 = arith.cmpi sge, %2, %556 : vector<1x256xi32>
    %c12_i32_360 = arith.constant 12 : i32
    %558 = vector.broadcast %c12_i32_360 : i32 to vector<1x256xi32>
    %559 = arith.cmpi slt, %4, %558 : vector<1x256xi32>
    %560 = arith.andi %557, %559 : vector<1x256xi1>
    %cst_361 = arith.constant 0.000000e+00 : f32
    %561 = vector.shape_cast %560 : vector<1x256xi1> to vector<1x256xi1>
    %562 = vector.broadcast %561 : vector<1x256xi1> to vector<4x256xi1>
    %563 = vector.broadcast %cst_361 : f32 to vector<4x256xf32>
    %564 = arith.select %562, %555, %563 : vector<4x256xi1>, vector<4x256xf32>
    %c1_362 = arith.constant 1 : index
    %c0_363 = arith.constant 0 : index
    %c124_364 = arith.constant 124 : index
    %565 = vector.load %arg5[%c1_362, %c0_363, %c124_364] : memref<2x4x512xf32, #tpu.memory_space<vmem>>, vector<1x4x256xf32>
    %566 = vector.shape_cast %565 : vector<1x4x256xf32> to vector<4x256xf32>
    %c4_i32_365 = arith.constant 4 : i32
    %567 = vector.broadcast %c4_i32_365 : i32 to vector<1x256xi32>
    %568 = arith.cmpi sge, %4, %567 : vector<1x256xi32>
    %cst_366 = arith.constant 0.000000e+00 : f32
    %569 = vector.shape_cast %568 : vector<1x256xi1> to vector<1x256xi1>
    %570 = vector.broadcast %569 : vector<1x256xi1> to vector<4x256xi1>
    %571 = vector.broadcast %cst_366 : f32 to vector<4x256xf32>
    %572 = arith.select %570, %566, %571 : vector<4x256xi1>, vector<4x256xf32>
    %c1_367 = arith.constant 1 : index
    %c0_368 = arith.constant 0 : index
    %c128_369 = arith.constant 128 : index
    %573 = vector.load %arg5[%c1_367, %c0_368, %c128_369] : memref<2x4x512xf32, #tpu.memory_space<vmem>>, vector<1x4x256xf32>
    %574 = vector.shape_cast %573 : vector<1x4x256xf32> to vector<4x256xf32>
    %c1_370 = arith.constant 1 : index
    %c0_371 = arith.constant 0 : index
    %c132_372 = arith.constant 132 : index
    %575 = vector.load %arg5[%c1_370, %c0_371, %c132_372] : memref<2x4x512xf32, #tpu.memory_space<vmem>>, vector<1x4x256xf32>
    %576 = vector.shape_cast %575 : vector<1x4x256xf32> to vector<4x256xf32>
    %c12_i32_373 = arith.constant 12 : i32
    %577 = vector.broadcast %c12_i32_373 : i32 to vector<1x256xi32>
    %578 = arith.cmpi slt, %4, %577 : vector<1x256xi32>
    %cst_374 = arith.constant 0.000000e+00 : f32
    %579 = vector.shape_cast %578 : vector<1x256xi1> to vector<1x256xi1>
    %580 = vector.broadcast %579 : vector<1x256xi1> to vector<4x256xi1>
    %581 = vector.broadcast %cst_374 : f32 to vector<4x256xf32>
    %582 = arith.select %580, %576, %581 : vector<4x256xi1>, vector<4x256xf32>
    %c1_375 = arith.constant 1 : index
    %c0_376 = arith.constant 0 : index
    %c188_377 = arith.constant 188 : index
    %583 = vector.load %arg5[%c1_375, %c0_376, %c188_377] : memref<2x4x512xf32, #tpu.memory_space<vmem>>, vector<1x4x256xf32>
    %584 = vector.shape_cast %583 : vector<1x4x256xf32> to vector<4x256xf32>
    %c12_i32_378 = arith.constant 12 : i32
    %585 = vector.broadcast %c12_i32_378 : i32 to vector<1x256xi32>
    %586 = arith.cmpi slt, %2, %585 : vector<1x256xi32>
    %c4_i32_379 = arith.constant 4 : i32
    %587 = vector.broadcast %c4_i32_379 : i32 to vector<1x256xi32>
    %588 = arith.cmpi sge, %4, %587 : vector<1x256xi32>
    %589 = arith.andi %586, %588 : vector<1x256xi1>
    %cst_380 = arith.constant 0.000000e+00 : f32
    %590 = vector.shape_cast %589 : vector<1x256xi1> to vector<1x256xi1>
    %591 = vector.broadcast %590 : vector<1x256xi1> to vector<4x256xi1>
    %592 = vector.broadcast %cst_380 : f32 to vector<4x256xf32>
    %593 = arith.select %591, %584, %592 : vector<4x256xi1>, vector<4x256xf32>
    %c1_381 = arith.constant 1 : index
    %c0_382 = arith.constant 0 : index
    %c192_383 = arith.constant 192 : index
    %594 = vector.load %arg5[%c1_381, %c0_382, %c192_383] : memref<2x4x512xf32, #tpu.memory_space<vmem>>, vector<1x4x256xf32>
    %595 = vector.shape_cast %594 : vector<1x4x256xf32> to vector<4x256xf32>
    %c12_i32_384 = arith.constant 12 : i32
    %596 = vector.broadcast %c12_i32_384 : i32 to vector<1x256xi32>
    %597 = arith.cmpi slt, %2, %596 : vector<1x256xi32>
    %cst_385 = arith.constant 0.000000e+00 : f32
    %598 = vector.shape_cast %597 : vector<1x256xi1> to vector<1x256xi1>
    %599 = vector.broadcast %598 : vector<1x256xi1> to vector<4x256xi1>
    %600 = vector.broadcast %cst_385 : f32 to vector<4x256xf32>
    %601 = arith.select %599, %595, %600 : vector<4x256xi1>, vector<4x256xf32>
    %c1_386 = arith.constant 1 : index
    %c0_387 = arith.constant 0 : index
    %c196_388 = arith.constant 196 : index
    %602 = vector.load %arg5[%c1_386, %c0_387, %c196_388] : memref<2x4x512xf32, #tpu.memory_space<vmem>>, vector<1x4x256xf32>
    %603 = vector.shape_cast %602 : vector<1x4x256xf32> to vector<4x256xf32>
    %c12_i32_389 = arith.constant 12 : i32
    %604 = vector.broadcast %c12_i32_389 : i32 to vector<1x256xi32>
    %605 = arith.cmpi slt, %2, %604 : vector<1x256xi32>
    %c12_i32_390 = arith.constant 12 : i32
    %606 = vector.broadcast %c12_i32_390 : i32 to vector<1x256xi32>
    %607 = arith.cmpi slt, %4, %606 : vector<1x256xi32>
    %608 = arith.andi %605, %607 : vector<1x256xi1>
    %cst_391 = arith.constant 0.000000e+00 : f32
    %609 = vector.shape_cast %608 : vector<1x256xi1> to vector<1x256xi1>
    %610 = vector.broadcast %609 : vector<1x256xi1> to vector<4x256xi1>
    %611 = vector.broadcast %cst_391 : f32 to vector<4x256xf32>
    %612 = arith.select %610, %603, %611 : vector<4x256xi1>, vector<4x256xf32>
    %613 = tpu.concatenate %545, %553, %564, %572, %574, %582, %593, %601, %612 in 0 : vector<4x256xf32>, vector<4x256xf32>, vector<4x256xf32>, vector<4x256xf32>, vector<4x256xf32>, vector<4x256xf32>, vector<4x256xf32>, vector<4x256xf32>, vector<4x256xf32> -> vector<36x256xf32>
    %c2_392 = arith.constant 2 : index
    %c0_393 = arith.constant 0 : index
    %c0_394 = arith.constant 0 : index
    %614 = vector.load %arg1[%c2_392, %c0_393, %c0_394] : memref<4x4x36xf32, #tpu.memory_space<vmem>>, vector<1x4x36xf32>
    %615 = vector.shape_cast %614 : vector<1x4x36xf32> to vector<4x36xf32>
    %cst_395 = arith.constant dense<0.000000e+00> : vector<4x256xf32>
    %616 = tpu.matmul %615, %613, %cst_395 {dimension_numbers = #tpu.dot_dimension_numbers<[1], [0], [0], [1], [0, 0, 1, 1], [], []>} : vector<4x36xf32>, vector<36x256xf32>, vector<4x256xf32> -> vector<4x256xf32>
    %c0_396 = arith.constant 0 : index
    %c2_397 = arith.constant 2 : index
    %617 = vector.load %arg3[%c0_396, %c2_397] : memref<4x5xf32, #tpu.memory_space<vmem>>, vector<4x1xf32>
    %618 = vector.broadcast %617 : vector<4x1xf32> to vector<4x256xf32>
    %619 = arith.addf %616, %618 : vector<4x256xf32>
    %cst_398 = arith.constant 0.000000e+00 : f32
    %620 = vector.broadcast %cst_398 : f32 to vector<4x256xf32>
    %621 = arith.maximumf %619, %620 : vector<4x256xf32>
    %c2_399 = arith.constant 2 : index
    %c1_400 = arith.constant 1 : index
    %c0_401 = arith.constant 0 : index
    %c0_402 = arith.constant 0 : index
    %622 = vector.load %arg6[%c2_399, %c1_400, %c0_401, %c0_402] : memref<4x2x4x256xf32, #tpu.memory_space<vmem>>, vector<1x1x4x256xf32>
    %623 = vector.shape_cast %622 : vector<1x1x4x256xf32> to vector<4x256xf32>
    %624 = vector.shape_cast %621 : vector<4x256xf32> to vector<1x1x4x256xf32>
    tpu.vector_store %arg6[%c2_399, %c1_400, %c0_401, %c0_402], %624 {strides = array<i32>} : memref<4x2x4x256xf32, #tpu.memory_space<vmem>>, vector<1x1x4x256xf32>,
    %c2_403 = arith.constant 2 : index
    %c0_404 = arith.constant 0 : index
    %c0_405 = arith.constant 0 : index
    %625 = vector.load %arg2[%c2_403, %c0_404, %c0_405] : memref<5x4x4xf32, #tpu.memory_space<vmem>>, vector<1x4x4xf32>
    %626 = vector.shape_cast %625 : vector<1x4x4xf32> to vector<4x4xf32>
    %cst_406 = arith.constant dense<0.000000e+00> : vector<4x256xf32>
    %627 = tpu.matmul %626, %621, %cst_406 {dimension_numbers = #tpu.dot_dimension_numbers<[1], [0], [0], [1], [0, 0, 1, 1], [], []>} : vector<4x4xf32>, vector<4x256xf32>, vector<4x256xf32> -> vector<4x256xf32>
    %cst_407 = arith.constant dense<0.000000e+00> : vector<4xf32>
    %628 = vector.multi_reduction <add>, %627, %cst_407 [1] : vector<4x256xf32> to vector<4xf32>
    %629 = vector.shape_cast %628 : vector<4xf32> to vector<4x1xf32>
    %cst_408 = arith.constant 3.906250e-03 : f32
    %630 = vector.broadcast %cst_408 : f32 to vector<4x1xf32>
    %631 = arith.mulf %629, %630 : vector<4x1xf32>
    %c2_409 = arith.constant 2 : index
    %c0_410 = arith.constant 0 : index
    %c0_411 = arith.constant 0 : index
    %c0_412 = arith.constant 0 : index
    %632 = vector.load %arg6[%c2_409, %c0_410, %c0_411, %c0_412] : memref<4x2x4x256xf32, #tpu.memory_space<vmem>>, vector<1x1x4x256xf32>
    %633 = vector.shape_cast %632 : vector<1x1x4x256xf32> to vector<4x256xf32>
    %c0_413 = arith.constant 0 : index
    %c0_414 = arith.constant 0 : index
    %c0_415 = arith.constant 0 : index
    %634 = vector.load %arg0[%c0_413, %c0_414, %c0_415] : memref<2x4x256xf32, #tpu.memory_space<vmem>>, vector<1x4x256xf32>
    %635 = vector.shape_cast %634 : vector<1x4x256xf32> to vector<4x256xf32>
    %636 = arith.addf %633, %635 : vector<4x256xf32>
    %c0_416 = arith.constant 0 : index
    %c0_417 = arith.constant 0 : index
    %c128_418 = arith.constant 128 : index
    %637 = vector.load %arg5[%c0_416, %c0_417, %c128_418] : memref<2x4x512xf32, #tpu.memory_space<vmem>>, vector<1x4x256xf32>
    %638 = vector.shape_cast %637 : vector<1x4x256xf32> to vector<4x256xf32>
    %639 = vector.shape_cast %636 : vector<4x256xf32> to vector<1x4x256xf32>
    tpu.vector_store %arg5[%c0_416, %c0_417, %c128_418], %639 {strides = array<i32>} : memref<2x4x512xf32, #tpu.memory_space<vmem>>, vector<1x4x256xf32>,
    %c0_419 = arith.constant 0 : index
    %c0_420 = arith.constant 0 : index
    %c26 = arith.constant 26 : index
    %640 = vector.load %arg5[%c0_419, %c0_420, %c26] : memref<2x4x512xf32, #tpu.memory_space<vmem>>, vector<1x4x256xf32>
    %641 = vector.shape_cast %640 : vector<1x4x256xf32> to vector<4x256xf32>
    %c6_i32 = arith.constant 6 : i32
    %642 = vector.broadcast %c6_i32 : i32 to vector<1x256xi32>
    %643 = arith.cmpi sge, %2, %642 : vector<1x256xi32>
    %c6_i32_421 = arith.constant 6 : i32
    %644 = vector.broadcast %c6_i32_421 : i32 to vector<1x256xi32>
    %645 = arith.cmpi sge, %4, %644 : vector<1x256xi32>
    %646 = arith.andi %643, %645 : vector<1x256xi1>
    %cst_422 = arith.constant 0.000000e+00 : f32
    %647 = vector.shape_cast %646 : vector<1x256xi1> to vector<1x256xi1>
    %648 = vector.broadcast %647 : vector<1x256xi1> to vector<4x256xi1>
    %649 = vector.broadcast %cst_422 : f32 to vector<4x256xf32>
    %650 = arith.select %648, %641, %649 : vector<4x256xi1>, vector<4x256xf32>
    %c0_423 = arith.constant 0 : index
    %c0_424 = arith.constant 0 : index
    %c32 = arith.constant 32 : index
    %651 = vector.load %arg5[%c0_423, %c0_424, %c32] : memref<2x4x512xf32, #tpu.memory_space<vmem>>, vector<1x4x256xf32>
    %652 = vector.shape_cast %651 : vector<1x4x256xf32> to vector<4x256xf32>
    %c6_i32_425 = arith.constant 6 : i32
    %653 = vector.broadcast %c6_i32_425 : i32 to vector<1x256xi32>
    %654 = arith.cmpi sge, %2, %653 : vector<1x256xi32>
    %cst_426 = arith.constant 0.000000e+00 : f32
    %655 = vector.shape_cast %654 : vector<1x256xi1> to vector<1x256xi1>
    %656 = vector.broadcast %655 : vector<1x256xi1> to vector<4x256xi1>
    %657 = vector.broadcast %cst_426 : f32 to vector<4x256xf32>
    %658 = arith.select %656, %652, %657 : vector<4x256xi1>, vector<4x256xf32>
    %c0_427 = arith.constant 0 : index
    %c0_428 = arith.constant 0 : index
    %c38 = arith.constant 38 : index
    %659 = vector.load %arg5[%c0_427, %c0_428, %c38] : memref<2x4x512xf32, #tpu.memory_space<vmem>>, vector<1x4x256xf32>
    %660 = vector.shape_cast %659 : vector<1x4x256xf32> to vector<4x256xf32>
    %c6_i32_429 = arith.constant 6 : i32
    %661 = vector.broadcast %c6_i32_429 : i32 to vector<1x256xi32>
    %662 = arith.cmpi sge, %2, %661 : vector<1x256xi32>
    %c10_i32 = arith.constant 10 : i32
    %663 = vector.broadcast %c10_i32 : i32 to vector<1x256xi32>
    %664 = arith.cmpi slt, %4, %663 : vector<1x256xi32>
    %665 = arith.andi %662, %664 : vector<1x256xi1>
    %cst_430 = arith.constant 0.000000e+00 : f32
    %666 = vector.shape_cast %665 : vector<1x256xi1> to vector<1x256xi1>
    %667 = vector.broadcast %666 : vector<1x256xi1> to vector<4x256xi1>
    %668 = vector.broadcast %cst_430 : f32 to vector<4x256xf32>
    %669 = arith.select %667, %660, %668 : vector<4x256xi1>, vector<4x256xf32>
    %c0_431 = arith.constant 0 : index
    %c0_432 = arith.constant 0 : index
    %c122 = arith.constant 122 : index
    %670 = vector.load %arg5[%c0_431, %c0_432, %c122] : memref<2x4x512xf32, #tpu.memory_space<vmem>>, vector<1x4x256xf32>
    %671 = vector.shape_cast %670 : vector<1x4x256xf32> to vector<4x256xf32>
    %c6_i32_433 = arith.constant 6 : i32
    %672 = vector.broadcast %c6_i32_433 : i32 to vector<1x256xi32>
    %673 = arith.cmpi sge, %4, %672 : vector<1x256xi32>
    %cst_434 = arith.constant 0.000000e+00 : f32
    %674 = vector.shape_cast %673 : vector<1x256xi1> to vector<1x256xi1>
    %675 = vector.broadcast %674 : vector<1x256xi1> to vector<4x256xi1>
    %676 = vector.broadcast %cst_434 : f32 to vector<4x256xf32>
    %677 = arith.select %675, %671, %676 : vector<4x256xi1>, vector<4x256xf32>
    %c0_435 = arith.constant 0 : index
    %c0_436 = arith.constant 0 : index
    %c128_437 = arith.constant 128 : index
    %678 = vector.load %arg5[%c0_435, %c0_436, %c128_437] : memref<2x4x512xf32, #tpu.memory_space<vmem>>, vector<1x4x256xf32>
    %679 = vector.shape_cast %678 : vector<1x4x256xf32> to vector<4x256xf32>
    %c0_438 = arith.constant 0 : index
    %c0_439 = arith.constant 0 : index
    %c134 = arith.constant 134 : index
    %680 = vector.load %arg5[%c0_438, %c0_439, %c134] : memref<2x4x512xf32, #tpu.memory_space<vmem>>, vector<1x4x256xf32>
    %681 = vector.shape_cast %680 : vector<1x4x256xf32> to vector<4x256xf32>
    %c10_i32_440 = arith.constant 10 : i32
    %682 = vector.broadcast %c10_i32_440 : i32 to vector<1x256xi32>
    %683 = arith.cmpi slt, %4, %682 : vector<1x256xi32>
    %cst_441 = arith.constant 0.000000e+00 : f32
    %684 = vector.shape_cast %683 : vector<1x256xi1> to vector<1x256xi1>
    %685 = vector.broadcast %684 : vector<1x256xi1> to vector<4x256xi1>
    %686 = vector.broadcast %cst_441 : f32 to vector<4x256xf32>
    %687 = arith.select %685, %681, %686 : vector<4x256xi1>, vector<4x256xf32>
    %c0_442 = arith.constant 0 : index
    %c0_443 = arith.constant 0 : index
    %c218 = arith.constant 218 : index
    %688 = vector.load %arg5[%c0_442, %c0_443, %c218] : memref<2x4x512xf32, #tpu.memory_space<vmem>>, vector<1x4x256xf32>
    %689 = vector.shape_cast %688 : vector<1x4x256xf32> to vector<4x256xf32>
    %c10_i32_444 = arith.constant 10 : i32
    %690 = vector.broadcast %c10_i32_444 : i32 to vector<1x256xi32>
    %691 = arith.cmpi slt, %2, %690 : vector<1x256xi32>
    %c6_i32_445 = arith.constant 6 : i32
    %692 = vector.broadcast %c6_i32_445 : i32 to vector<1x256xi32>
    %693 = arith.cmpi sge, %4, %692 : vector<1x256xi32>
    %694 = arith.andi %691, %693 : vector<1x256xi1>
    %cst_446 = arith.constant 0.000000e+00 : f32
    %695 = vector.shape_cast %694 : vector<1x256xi1> to vector<1x256xi1>
    %696 = vector.broadcast %695 : vector<1x256xi1> to vector<4x256xi1>
    %697 = vector.broadcast %cst_446 : f32 to vector<4x256xf32>
    %698 = arith.select %696, %689, %697 : vector<4x256xi1>, vector<4x256xf32>
    %c0_447 = arith.constant 0 : index
    %c0_448 = arith.constant 0 : index
    %c224 = arith.constant 224 : index
    %699 = vector.load %arg5[%c0_447, %c0_448, %c224] : memref<2x4x512xf32, #tpu.memory_space<vmem>>, vector<1x4x256xf32>
    %700 = vector.shape_cast %699 : vector<1x4x256xf32> to vector<4x256xf32>
    %c10_i32_449 = arith.constant 10 : i32
    %701 = vector.broadcast %c10_i32_449 : i32 to vector<1x256xi32>
    %702 = arith.cmpi slt, %2, %701 : vector<1x256xi32>
    %cst_450 = arith.constant 0.000000e+00 : f32
    %703 = vector.shape_cast %702 : vector<1x256xi1> to vector<1x256xi1>
    %704 = vector.broadcast %703 : vector<1x256xi1> to vector<4x256xi1>
    %705 = vector.broadcast %cst_450 : f32 to vector<4x256xf32>
    %706 = arith.select %704, %700, %705 : vector<4x256xi1>, vector<4x256xf32>
    %c0_451 = arith.constant 0 : index
    %c0_452 = arith.constant 0 : index
    %c230 = arith.constant 230 : index
    %707 = vector.load %arg5[%c0_451, %c0_452, %c230] : memref<2x4x512xf32, #tpu.memory_space<vmem>>, vector<1x4x256xf32>
    %708 = vector.shape_cast %707 : vector<1x4x256xf32> to vector<4x256xf32>
    %c10_i32_453 = arith.constant 10 : i32
    %709 = vector.broadcast %c10_i32_453 : i32 to vector<1x256xi32>
    %710 = arith.cmpi slt, %2, %709 : vector<1x256xi32>
    %c10_i32_454 = arith.constant 10 : i32
    %711 = vector.broadcast %c10_i32_454 : i32 to vector<1x256xi32>
    %712 = arith.cmpi slt, %4, %711 : vector<1x256xi32>
    %713 = arith.andi %710, %712 : vector<1x256xi1>
    %cst_455 = arith.constant 0.000000e+00 : f32
    %714 = vector.shape_cast %713 : vector<1x256xi1> to vector<1x256xi1>
    %715 = vector.broadcast %714 : vector<1x256xi1> to vector<4x256xi1>
    %716 = vector.broadcast %cst_455 : f32 to vector<4x256xf32>
    %717 = arith.select %715, %708, %716 : vector<4x256xi1>, vector<4x256xf32>
    %718 = tpu.concatenate %650, %658, %669, %677, %679, %687, %698, %706, %717 in 0 : vector<4x256xf32>, vector<4x256xf32>, vector<4x256xf32>, vector<4x256xf32>, vector<4x256xf32>, vector<4x256xf32>, vector<4x256xf32>, vector<4x256xf32>, vector<4x256xf32> -> vector<36x256xf32>
    %c3 = arith.constant 3 : index
    %c0_456 = arith.constant 0 : index
    %c0_457 = arith.constant 0 : index
    %719 = vector.load %arg1[%c3, %c0_456, %c0_457] : memref<4x4x36xf32, #tpu.memory_space<vmem>>, vector<1x4x36xf32>
    %720 = vector.shape_cast %719 : vector<1x4x36xf32> to vector<4x36xf32>
    %cst_458 = arith.constant dense<0.000000e+00> : vector<4x256xf32>
    %721 = tpu.matmul %720, %718, %cst_458 {dimension_numbers = #tpu.dot_dimension_numbers<[1], [0], [0], [1], [0, 0, 1, 1], [], []>} : vector<4x36xf32>, vector<36x256xf32>, vector<4x256xf32> -> vector<4x256xf32>
    %c0_459 = arith.constant 0 : index
    %c3_460 = arith.constant 3 : index
    %722 = vector.load %arg3[%c0_459, %c3_460] : memref<4x5xf32, #tpu.memory_space<vmem>>, vector<4x1xf32>
    %723 = vector.broadcast %722 : vector<4x1xf32> to vector<4x256xf32>
    %724 = arith.addf %721, %723 : vector<4x256xf32>
    %cst_461 = arith.constant 0.000000e+00 : f32
    %725 = vector.broadcast %cst_461 : f32 to vector<4x256xf32>
    %726 = arith.maximumf %724, %725 : vector<4x256xf32>
    %c3_462 = arith.constant 3 : index
    %c0_463 = arith.constant 0 : index
    %c0_464 = arith.constant 0 : index
    %c0_465 = arith.constant 0 : index
    %727 = vector.load %arg6[%c3_462, %c0_463, %c0_464, %c0_465] : memref<4x2x4x256xf32, #tpu.memory_space<vmem>>, vector<1x1x4x256xf32>
    %728 = vector.shape_cast %727 : vector<1x1x4x256xf32> to vector<4x256xf32>
    %729 = vector.shape_cast %726 : vector<4x256xf32> to vector<1x1x4x256xf32>
    tpu.vector_store %arg6[%c3_462, %c0_463, %c0_464, %c0_465], %729 {strides = array<i32>} : memref<4x2x4x256xf32, #tpu.memory_space<vmem>>, vector<1x1x4x256xf32>,
    %c3_466 = arith.constant 3 : index
    %c0_467 = arith.constant 0 : index
    %c0_468 = arith.constant 0 : index
    %730 = vector.load %arg2[%c3_466, %c0_467, %c0_468] : memref<5x4x4xf32, #tpu.memory_space<vmem>>, vector<1x4x4xf32>
    %731 = vector.shape_cast %730 : vector<1x4x4xf32> to vector<4x4xf32>
    %cst_469 = arith.constant dense<0.000000e+00> : vector<4x256xf32>
    %732 = tpu.matmul %731, %726, %cst_469 {dimension_numbers = #tpu.dot_dimension_numbers<[1], [0], [0], [1], [0, 0, 1, 1], [], []>} : vector<4x4xf32>, vector<4x256xf32>, vector<4x256xf32> -> vector<4x256xf32>
    %cst_470 = arith.constant dense<0.000000e+00> : vector<4xf32>
    %733 = vector.multi_reduction <add>, %732, %cst_470 [1] : vector<4x256xf32> to vector<4xf32>
    %734 = vector.shape_cast %733 : vector<4xf32> to vector<4x1xf32>
    %cst_471 = arith.constant 3.906250e-03 : f32
    %735 = vector.broadcast %cst_471 : f32 to vector<4x1xf32>
    %736 = arith.mulf %734, %735 : vector<4x1xf32>
    %c2_472 = arith.constant 2 : index
    %c1_473 = arith.constant 1 : index
    %c0_474 = arith.constant 0 : index
    %c0_475 = arith.constant 0 : index
    %737 = vector.load %arg6[%c2_472, %c1_473, %c0_474, %c0_475] : memref<4x2x4x256xf32, #tpu.memory_space<vmem>>, vector<1x1x4x256xf32>
    %738 = vector.shape_cast %737 : vector<1x1x4x256xf32> to vector<4x256xf32>
    %c1_476 = arith.constant 1 : index
    %c0_477 = arith.constant 0 : index
    %c0_478 = arith.constant 0 : index
    %739 = vector.load %arg0[%c1_476, %c0_477, %c0_478] : memref<2x4x256xf32, #tpu.memory_space<vmem>>, vector<1x4x256xf32>
    %740 = vector.shape_cast %739 : vector<1x4x256xf32> to vector<4x256xf32>
    %741 = arith.addf %738, %740 : vector<4x256xf32>
    %c1_479 = arith.constant 1 : index
    %c0_480 = arith.constant 0 : index
    %c128_481 = arith.constant 128 : index
    %742 = vector.load %arg5[%c1_479, %c0_480, %c128_481] : memref<2x4x512xf32, #tpu.memory_space<vmem>>, vector<1x4x256xf32>
    %743 = vector.shape_cast %742 : vector<1x4x256xf32> to vector<4x256xf32>
    %744 = vector.shape_cast %741 : vector<4x256xf32> to vector<1x4x256xf32>
    tpu.vector_store %arg5[%c1_479, %c0_480, %c128_481], %744 {strides = array<i32>} : memref<2x4x512xf32, #tpu.memory_space<vmem>>, vector<1x4x256xf32>,
    %c1_482 = arith.constant 1 : index
    %c0_483 = arith.constant 0 : index
    %c26_484 = arith.constant 26 : index
    %745 = vector.load %arg5[%c1_482, %c0_483, %c26_484] : memref<2x4x512xf32, #tpu.memory_space<vmem>>, vector<1x4x256xf32>
    %746 = vector.shape_cast %745 : vector<1x4x256xf32> to vector<4x256xf32>
    %c6_i32_485 = arith.constant 6 : i32
    %747 = vector.broadcast %c6_i32_485 : i32 to vector<1x256xi32>
    %748 = arith.cmpi sge, %2, %747 : vector<1x256xi32>
    %c6_i32_486 = arith.constant 6 : i32
    %749 = vector.broadcast %c6_i32_486 : i32 to vector<1x256xi32>
    %750 = arith.cmpi sge, %4, %749 : vector<1x256xi32>
    %751 = arith.andi %748, %750 : vector<1x256xi1>
    %cst_487 = arith.constant 0.000000e+00 : f32
    %752 = vector.shape_cast %751 : vector<1x256xi1> to vector<1x256xi1>
    %753 = vector.broadcast %752 : vector<1x256xi1> to vector<4x256xi1>
    %754 = vector.broadcast %cst_487 : f32 to vector<4x256xf32>
    %755 = arith.select %753, %746, %754 : vector<4x256xi1>, vector<4x256xf32>
    %c1_488 = arith.constant 1 : index
    %c0_489 = arith.constant 0 : index
    %c32_490 = arith.constant 32 : index
    %756 = vector.load %arg5[%c1_488, %c0_489, %c32_490] : memref<2x4x512xf32, #tpu.memory_space<vmem>>, vector<1x4x256xf32>
    %757 = vector.shape_cast %756 : vector<1x4x256xf32> to vector<4x256xf32>
    %c6_i32_491 = arith.constant 6 : i32
    %758 = vector.broadcast %c6_i32_491 : i32 to vector<1x256xi32>
    %759 = arith.cmpi sge, %2, %758 : vector<1x256xi32>
    %cst_492 = arith.constant 0.000000e+00 : f32
    %760 = vector.shape_cast %759 : vector<1x256xi1> to vector<1x256xi1>
    %761 = vector.broadcast %760 : vector<1x256xi1> to vector<4x256xi1>
    %762 = vector.broadcast %cst_492 : f32 to vector<4x256xf32>
    %763 = arith.select %761, %757, %762 : vector<4x256xi1>, vector<4x256xf32>
    %c1_493 = arith.constant 1 : index
    %c0_494 = arith.constant 0 : index
    %c38_495 = arith.constant 38 : index
    %764 = vector.load %arg5[%c1_493, %c0_494, %c38_495] : memref<2x4x512xf32, #tpu.memory_space<vmem>>, vector<1x4x256xf32>
    %765 = vector.shape_cast %764 : vector<1x4x256xf32> to vector<4x256xf32>
    %c6_i32_496 = arith.constant 6 : i32
    %766 = vector.broadcast %c6_i32_496 : i32 to vector<1x256xi32>
    %767 = arith.cmpi sge, %2, %766 : vector<1x256xi32>
    %c10_i32_497 = arith.constant 10 : i32
    %768 = vector.broadcast %c10_i32_497 : i32 to vector<1x256xi32>
    %769 = arith.cmpi slt, %4, %768 : vector<1x256xi32>
    %770 = arith.andi %767, %769 : vector<1x256xi1>
    %cst_498 = arith.constant 0.000000e+00 : f32
    %771 = vector.shape_cast %770 : vector<1x256xi1> to vector<1x256xi1>
    %772 = vector.broadcast %771 : vector<1x256xi1> to vector<4x256xi1>
    %773 = vector.broadcast %cst_498 : f32 to vector<4x256xf32>
    %774 = arith.select %772, %765, %773 : vector<4x256xi1>, vector<4x256xf32>
    %c1_499 = arith.constant 1 : index
    %c0_500 = arith.constant 0 : index
    %c122_501 = arith.constant 122 : index
    %775 = vector.load %arg5[%c1_499, %c0_500, %c122_501] : memref<2x4x512xf32, #tpu.memory_space<vmem>>, vector<1x4x256xf32>
    %776 = vector.shape_cast %775 : vector<1x4x256xf32> to vector<4x256xf32>
    %c6_i32_502 = arith.constant 6 : i32
    %777 = vector.broadcast %c6_i32_502 : i32 to vector<1x256xi32>
    %778 = arith.cmpi sge, %4, %777 : vector<1x256xi32>
    %cst_503 = arith.constant 0.000000e+00 : f32
    %779 = vector.shape_cast %778 : vector<1x256xi1> to vector<1x256xi1>
    %780 = vector.broadcast %779 : vector<1x256xi1> to vector<4x256xi1>
    %781 = vector.broadcast %cst_503 : f32 to vector<4x256xf32>
    %782 = arith.select %780, %776, %781 : vector<4x256xi1>, vector<4x256xf32>
    %c1_504 = arith.constant 1 : index
    %c0_505 = arith.constant 0 : index
    %c128_506 = arith.constant 128 : index
    %783 = vector.load %arg5[%c1_504, %c0_505, %c128_506] : memref<2x4x512xf32, #tpu.memory_space<vmem>>, vector<1x4x256xf32>
    %784 = vector.shape_cast %783 : vector<1x4x256xf32> to vector<4x256xf32>
    %c1_507 = arith.constant 1 : index
    %c0_508 = arith.constant 0 : index
    %c134_509 = arith.constant 134 : index
    %785 = vector.load %arg5[%c1_507, %c0_508, %c134_509] : memref<2x4x512xf32, #tpu.memory_space<vmem>>, vector<1x4x256xf32>
    %786 = vector.shape_cast %785 : vector<1x4x256xf32> to vector<4x256xf32>
    %c10_i32_510 = arith.constant 10 : i32
    %787 = vector.broadcast %c10_i32_510 : i32 to vector<1x256xi32>
    %788 = arith.cmpi slt, %4, %787 : vector<1x256xi32>
    %cst_511 = arith.constant 0.000000e+00 : f32
    %789 = vector.shape_cast %788 : vector<1x256xi1> to vector<1x256xi1>
    %790 = vector.broadcast %789 : vector<1x256xi1> to vector<4x256xi1>
    %791 = vector.broadcast %cst_511 : f32 to vector<4x256xf32>
    %792 = arith.select %790, %786, %791 : vector<4x256xi1>, vector<4x256xf32>
    %c1_512 = arith.constant 1 : index
    %c0_513 = arith.constant 0 : index
    %c218_514 = arith.constant 218 : index
    %793 = vector.load %arg5[%c1_512, %c0_513, %c218_514] : memref<2x4x512xf32, #tpu.memory_space<vmem>>, vector<1x4x256xf32>
    %794 = vector.shape_cast %793 : vector<1x4x256xf32> to vector<4x256xf32>
    %c10_i32_515 = arith.constant 10 : i32
    %795 = vector.broadcast %c10_i32_515 : i32 to vector<1x256xi32>
    %796 = arith.cmpi slt, %2, %795 : vector<1x256xi32>
    %c6_i32_516 = arith.constant 6 : i32
    %797 = vector.broadcast %c6_i32_516 : i32 to vector<1x256xi32>
    %798 = arith.cmpi sge, %4, %797 : vector<1x256xi32>
    %799 = arith.andi %796, %798 : vector<1x256xi1>
    %cst_517 = arith.constant 0.000000e+00 : f32
    %800 = vector.shape_cast %799 : vector<1x256xi1> to vector<1x256xi1>
    %801 = vector.broadcast %800 : vector<1x256xi1> to vector<4x256xi1>
    %802 = vector.broadcast %cst_517 : f32 to vector<4x256xf32>
    %803 = arith.select %801, %794, %802 : vector<4x256xi1>, vector<4x256xf32>
    %c1_518 = arith.constant 1 : index
    %c0_519 = arith.constant 0 : index
    %c224_520 = arith.constant 224 : index
    %804 = vector.load %arg5[%c1_518, %c0_519, %c224_520] : memref<2x4x512xf32, #tpu.memory_space<vmem>>, vector<1x4x256xf32>
    %805 = vector.shape_cast %804 : vector<1x4x256xf32> to vector<4x256xf32>
    %c10_i32_521 = arith.constant 10 : i32
    %806 = vector.broadcast %c10_i32_521 : i32 to vector<1x256xi32>
    %807 = arith.cmpi slt, %2, %806 : vector<1x256xi32>
    %cst_522 = arith.constant 0.000000e+00 : f32
    %808 = vector.shape_cast %807 : vector<1x256xi1> to vector<1x256xi1>
    %809 = vector.broadcast %808 : vector<1x256xi1> to vector<4x256xi1>
    %810 = vector.broadcast %cst_522 : f32 to vector<4x256xf32>
    %811 = arith.select %809, %805, %810 : vector<4x256xi1>, vector<4x256xf32>
    %c1_523 = arith.constant 1 : index
    %c0_524 = arith.constant 0 : index
    %c230_525 = arith.constant 230 : index
    %812 = vector.load %arg5[%c1_523, %c0_524, %c230_525] : memref<2x4x512xf32, #tpu.memory_space<vmem>>, vector<1x4x256xf32>
    %813 = vector.shape_cast %812 : vector<1x4x256xf32> to vector<4x256xf32>
    %c10_i32_526 = arith.constant 10 : i32
    %814 = vector.broadcast %c10_i32_526 : i32 to vector<1x256xi32>
    %815 = arith.cmpi slt, %2, %814 : vector<1x256xi32>
    %c10_i32_527 = arith.constant 10 : i32
    %816 = vector.broadcast %c10_i32_527 : i32 to vector<1x256xi32>
    %817 = arith.cmpi slt, %4, %816 : vector<1x256xi32>
    %818 = arith.andi %815, %817 : vector<1x256xi1>
    %cst_528 = arith.constant 0.000000e+00 : f32
    %819 = vector.shape_cast %818 : vector<1x256xi1> to vector<1x256xi1>
    %820 = vector.broadcast %819 : vector<1x256xi1> to vector<4x256xi1>
    %821 = vector.broadcast %cst_528 : f32 to vector<4x256xf32>
    %822 = arith.select %820, %813, %821 : vector<4x256xi1>, vector<4x256xf32>
    %823 = tpu.concatenate %755, %763, %774, %782, %784, %792, %803, %811, %822 in 0 : vector<4x256xf32>, vector<4x256xf32>, vector<4x256xf32>, vector<4x256xf32>, vector<4x256xf32>, vector<4x256xf32>, vector<4x256xf32>, vector<4x256xf32>, vector<4x256xf32> -> vector<36x256xf32>
    %c3_529 = arith.constant 3 : index
    %c0_530 = arith.constant 0 : index
    %c0_531 = arith.constant 0 : index
    %824 = vector.load %arg1[%c3_529, %c0_530, %c0_531] : memref<4x4x36xf32, #tpu.memory_space<vmem>>, vector<1x4x36xf32>
    %825 = vector.shape_cast %824 : vector<1x4x36xf32> to vector<4x36xf32>
    %cst_532 = arith.constant dense<0.000000e+00> : vector<4x256xf32>
    %826 = tpu.matmul %825, %823, %cst_532 {dimension_numbers = #tpu.dot_dimension_numbers<[1], [0], [0], [1], [0, 0, 1, 1], [], []>} : vector<4x36xf32>, vector<36x256xf32>, vector<4x256xf32> -> vector<4x256xf32>
    %c0_533 = arith.constant 0 : index
    %c3_534 = arith.constant 3 : index
    %827 = vector.load %arg3[%c0_533, %c3_534] : memref<4x5xf32, #tpu.memory_space<vmem>>, vector<4x1xf32>
    %828 = vector.broadcast %827 : vector<4x1xf32> to vector<4x256xf32>
    %829 = arith.addf %826, %828 : vector<4x256xf32>
    %cst_535 = arith.constant 0.000000e+00 : f32
    %830 = vector.broadcast %cst_535 : f32 to vector<4x256xf32>
    %831 = arith.maximumf %829, %830 : vector<4x256xf32>
    %c3_536 = arith.constant 3 : index
    %c1_537 = arith.constant 1 : index
    %c0_538 = arith.constant 0 : index
    %c0_539 = arith.constant 0 : index
    %832 = vector.load %arg6[%c3_536, %c1_537, %c0_538, %c0_539] : memref<4x2x4x256xf32, #tpu.memory_space<vmem>>, vector<1x1x4x256xf32>
    %833 = vector.shape_cast %832 : vector<1x1x4x256xf32> to vector<4x256xf32>
    %834 = vector.shape_cast %831 : vector<4x256xf32> to vector<1x1x4x256xf32>
    tpu.vector_store %arg6[%c3_536, %c1_537, %c0_538, %c0_539], %834 {strides = array<i32>} : memref<4x2x4x256xf32, #tpu.memory_space<vmem>>, vector<1x1x4x256xf32>,
    %c3_540 = arith.constant 3 : index
    %c0_541 = arith.constant 0 : index
    %c0_542 = arith.constant 0 : index
    %835 = vector.load %arg2[%c3_540, %c0_541, %c0_542] : memref<5x4x4xf32, #tpu.memory_space<vmem>>, vector<1x4x4xf32>
    %836 = vector.shape_cast %835 : vector<1x4x4xf32> to vector<4x4xf32>
    %cst_543 = arith.constant dense<0.000000e+00> : vector<4x256xf32>
    %837 = tpu.matmul %836, %831, %cst_543 {dimension_numbers = #tpu.dot_dimension_numbers<[1], [0], [0], [1], [0, 0, 1, 1], [], []>} : vector<4x4xf32>, vector<4x256xf32>, vector<4x256xf32> -> vector<4x256xf32>
    %cst_544 = arith.constant dense<0.000000e+00> : vector<4xf32>
    %838 = vector.multi_reduction <add>, %837, %cst_544 [1] : vector<4x256xf32> to vector<4xf32>
    %839 = vector.shape_cast %838 : vector<4xf32> to vector<4x1xf32>
    %cst_545 = arith.constant 3.906250e-03 : f32
    %840 = vector.broadcast %cst_545 : f32 to vector<4x1xf32>
    %841 = arith.mulf %839, %840 : vector<4x1xf32>
    %842 = arith.negf %109 : vector<4x1xf32>
    %843 = math.exp %842 : vector<4x1xf32>
    %cst_546 = arith.constant 1.000000e+00 : f32
    %844 = vector.broadcast %cst_546 : f32 to vector<4x1xf32>
    %845 = arith.addf %844, %843 : vector<4x1xf32>
    %846 = arith.divf %844, %845 : vector<4x1xf32>
    %847 = arith.negf %316 : vector<4x1xf32>
    %848 = math.exp %847 : vector<4x1xf32>
    %cst_547 = arith.constant 1.000000e+00 : f32
    %849 = vector.broadcast %cst_547 : f32 to vector<4x1xf32>
    %850 = arith.addf %849, %848 : vector<4x1xf32>
    %851 = arith.divf %849, %850 : vector<4x1xf32>
    %852 = arith.negf %526 : vector<4x1xf32>
    %853 = math.exp %852 : vector<4x1xf32>
    %cst_548 = arith.constant 1.000000e+00 : f32
    %854 = vector.broadcast %cst_548 : f32 to vector<4x1xf32>
    %855 = arith.addf %854, %853 : vector<4x1xf32>
    %856 = arith.divf %854, %855 : vector<4x1xf32>
    %857 = arith.negf %736 : vector<4x1xf32>
    %858 = math.exp %857 : vector<4x1xf32>
    %cst_549 = arith.constant 1.000000e+00 : f32
    %859 = vector.broadcast %cst_549 : f32 to vector<4x1xf32>
    %860 = arith.addf %859, %858 : vector<4x1xf32>
    %861 = arith.divf %859, %860 : vector<4x1xf32>
    %862 = arith.maximumf %846, %851 : vector<4x1xf32>
    %863 = arith.maximumf %856, %861 : vector<4x1xf32>
    %864 = arith.maximumf %862, %863 : vector<4x1xf32>
    %865 = arith.subf %846, %864 : vector<4x1xf32>
    %866 = math.exp %865 : vector<4x1xf32>
    %867 = arith.subf %851, %864 : vector<4x1xf32>
    %868 = math.exp %867 : vector<4x1xf32>
    %869 = arith.subf %856, %864 : vector<4x1xf32>
    %870 = math.exp %869 : vector<4x1xf32>
    %871 = arith.subf %861, %864 : vector<4x1xf32>
    %872 = math.exp %871 : vector<4x1xf32>
    %873 = arith.addf %866, %868 : vector<4x1xf32>
    %874 = arith.addf %873, %870 : vector<4x1xf32>
    %875 = arith.addf %874, %872 : vector<4x1xf32>
    %cst_550 = arith.constant 1.000000e+00 : f32
    %876 = vector.broadcast %cst_550 : f32 to vector<4x1xf32>
    %877 = arith.divf %876, %875 : vector<4x1xf32>
    %c0_551 = arith.constant 0 : index
    %c0_552 = arith.constant 0 : index
    %c0_553 = arith.constant 0 : index
    %878 = vector.load %arg0[%c0_551, %c0_552, %c0_553] : memref<2x4x256xf32, #tpu.memory_space<vmem>>, vector<1x4x256xf32>
    %879 = vector.shape_cast %878 : vector<1x4x256xf32> to vector<4x256xf32>
    %880 = arith.mulf %866, %877 : vector<4x1xf32>
    %c0_554 = arith.constant 0 : index
    %c0_555 = arith.constant 0 : index
    %c0_556 = arith.constant 0 : index
    %c0_557 = arith.constant 0 : index
    %881 = vector.load %arg6[%c0_554, %c0_555, %c0_556, %c0_557] : memref<4x2x4x256xf32, #tpu.memory_space<vmem>>, vector<1x1x4x256xf32>
    %882 = vector.shape_cast %881 : vector<1x1x4x256xf32> to vector<4x256xf32>
    %883 = vector.broadcast %880 : vector<4x1xf32> to vector<4x256xf32>
    %884 = arith.mulf %883, %882 : vector<4x256xf32>
    %885 = arith.addf %879, %884 : vector<4x256xf32>
    %886 = arith.mulf %868, %877 : vector<4x1xf32>
    %c1_558 = arith.constant 1 : index
    %c0_559 = arith.constant 0 : index
    %c0_560 = arith.constant 0 : index
    %c0_561 = arith.constant 0 : index
    %887 = vector.load %arg6[%c1_558, %c0_559, %c0_560, %c0_561] : memref<4x2x4x256xf32, #tpu.memory_space<vmem>>, vector<1x1x4x256xf32>
    %888 = vector.shape_cast %887 : vector<1x1x4x256xf32> to vector<4x256xf32>
    %889 = vector.broadcast %886 : vector<4x1xf32> to vector<4x256xf32>
    %890 = arith.mulf %889, %888 : vector<4x256xf32>
    %891 = arith.addf %885, %890 : vector<4x256xf32>
    %892 = arith.mulf %870, %877 : vector<4x1xf32>
    %c2_562 = arith.constant 2 : index
    %c0_563 = arith.constant 0 : index
    %c0_564 = arith.constant 0 : index
    %c0_565 = arith.constant 0 : index
    %893 = vector.load %arg6[%c2_562, %c0_563, %c0_564, %c0_565] : memref<4x2x4x256xf32, #tpu.memory_space<vmem>>, vector<1x1x4x256xf32>
    %894 = vector.shape_cast %893 : vector<1x1x4x256xf32> to vector<4x256xf32>
    %895 = vector.broadcast %892 : vector<4x1xf32> to vector<4x256xf32>
    %896 = arith.mulf %895, %894 : vector<4x256xf32>
    %897 = arith.addf %891, %896 : vector<4x256xf32>
    %898 = arith.mulf %872, %877 : vector<4x1xf32>
    %c3_566 = arith.constant 3 : index
    %c0_567 = arith.constant 0 : index
    %c0_568 = arith.constant 0 : index
    %c0_569 = arith.constant 0 : index
    %899 = vector.load %arg6[%c3_566, %c0_567, %c0_568, %c0_569] : memref<4x2x4x256xf32, #tpu.memory_space<vmem>>, vector<1x1x4x256xf32>
    %900 = vector.shape_cast %899 : vector<1x1x4x256xf32> to vector<4x256xf32>
    %901 = vector.broadcast %898 : vector<4x1xf32> to vector<4x256xf32>
    %902 = arith.mulf %901, %900 : vector<4x256xf32>
    %903 = arith.addf %897, %902 : vector<4x256xf32>
    %c4 = arith.constant 4 : index
    %c0_570 = arith.constant 0 : index
    %c0_571 = arith.constant 0 : index
    %904 = vector.load %arg2[%c4, %c0_570, %c0_571] : memref<5x4x4xf32, #tpu.memory_space<vmem>>, vector<1x4x4xf32>
    %905 = vector.shape_cast %904 : vector<1x4x4xf32> to vector<4x4xf32>
    %cst_572 = arith.constant dense<0.000000e+00> : vector<4x256xf32>
    %906 = tpu.matmul %905, %903, %cst_572 {dimension_numbers = #tpu.dot_dimension_numbers<[1], [0], [0], [1], [0, 0, 1, 1], [], []>} : vector<4x4xf32>, vector<4x256xf32>, vector<4x256xf32> -> vector<4x256xf32>
    %c0_573 = arith.constant 0 : index
    %c4_574 = arith.constant 4 : index
    %907 = vector.load %arg3[%c0_573, %c4_574] : memref<4x5xf32, #tpu.memory_space<vmem>>, vector<4x1xf32>
    %908 = vector.broadcast %907 : vector<4x1xf32> to vector<4x256xf32>
    %909 = arith.addf %906, %908 : vector<4x256xf32>
    %cst_575 = arith.constant 0.000000e+00 : f32
    %910 = vector.broadcast %cst_575 : f32 to vector<4x256xf32>
    %911 = arith.maximumf %909, %910 : vector<4x256xf32>
    %c0_576 = arith.constant 0 : index
    %c0_577 = arith.constant 0 : index
    %c0_578 = arith.constant 0 : index
    %912 = vector.load %arg4[%c0_576, %c0_577, %c0_578] : memref<2x4x256xf32, #tpu.memory_space<vmem>>, vector<1x4x256xf32>
    %913 = vector.shape_cast %912 : vector<1x4x256xf32> to vector<4x256xf32>
    %914 = vector.shape_cast %911 : vector<4x256xf32> to vector<1x4x256xf32>
    tpu.vector_store %arg4[%c0_576, %c0_577, %c0_578], %914 {strides = array<i32>} : memref<2x4x256xf32, #tpu.memory_space<vmem>>, vector<1x4x256xf32>,
    %915 = arith.negf %211 : vector<4x1xf32>
    %916 = math.exp %915 : vector<4x1xf32>
    %cst_579 = arith.constant 1.000000e+00 : f32
    %917 = vector.broadcast %cst_579 : f32 to vector<4x1xf32>
    %918 = arith.addf %917, %916 : vector<4x1xf32>
    %919 = arith.divf %917, %918 : vector<4x1xf32>
    %920 = arith.negf %421 : vector<4x1xf32>
    %921 = math.exp %920 : vector<4x1xf32>
    %cst_580 = arith.constant 1.000000e+00 : f32
    %922 = vector.broadcast %cst_580 : f32 to vector<4x1xf32>
    %923 = arith.addf %922, %921 : vector<4x1xf32>
    %924 = arith.divf %922, %923 : vector<4x1xf32>
    %925 = arith.negf %631 : vector<4x1xf32>
    %926 = math.exp %925 : vector<4x1xf32>
    %cst_581 = arith.constant 1.000000e+00 : f32
    %927 = vector.broadcast %cst_581 : f32 to vector<4x1xf32>
    %928 = arith.addf %927, %926 : vector<4x1xf32>
    %929 = arith.divf %927, %928 : vector<4x1xf32>
    %930 = arith.negf %841 : vector<4x1xf32>
    %931 = math.exp %930 : vector<4x1xf32>
    %cst_582 = arith.constant 1.000000e+00 : f32
    %932 = vector.broadcast %cst_582 : f32 to vector<4x1xf32>
    %933 = arith.addf %932, %931 : vector<4x1xf32>
    %934 = arith.divf %932, %933 : vector<4x1xf32>
    %935 = arith.maximumf %919, %924 : vector<4x1xf32>
    %936 = arith.maximumf %929, %934 : vector<4x1xf32>
    %937 = arith.maximumf %935, %936 : vector<4x1xf32>
    %938 = arith.subf %919, %937 : vector<4x1xf32>
    %939 = math.exp %938 : vector<4x1xf32>
    %940 = arith.subf %924, %937 : vector<4x1xf32>
    %941 = math.exp %940 : vector<4x1xf32>
    %942 = arith.subf %929, %937 : vector<4x1xf32>
    %943 = math.exp %942 : vector<4x1xf32>
    %944 = arith.subf %934, %937 : vector<4x1xf32>
    %945 = math.exp %944 : vector<4x1xf32>
    %946 = arith.addf %939, %941 : vector<4x1xf32>
    %947 = arith.addf %946, %943 : vector<4x1xf32>
    %948 = arith.addf %947, %945 : vector<4x1xf32>
    %cst_583 = arith.constant 1.000000e+00 : f32
    %949 = vector.broadcast %cst_583 : f32 to vector<4x1xf32>
    %950 = arith.divf %949, %948 : vector<4x1xf32>
    %c1_584 = arith.constant 1 : index
    %c0_585 = arith.constant 0 : index
    %c0_586 = arith.constant 0 : index
    %951 = vector.load %arg0[%c1_584, %c0_585, %c0_586] : memref<2x4x256xf32, #tpu.memory_space<vmem>>, vector<1x4x256xf32>
    %952 = vector.shape_cast %951 : vector<1x4x256xf32> to vector<4x256xf32>
    %953 = arith.mulf %939, %950 : vector<4x1xf32>
    %c0_587 = arith.constant 0 : index
    %c1_588 = arith.constant 1 : index
    %c0_589 = arith.constant 0 : index
    %c0_590 = arith.constant 0 : index
    %954 = vector.load %arg6[%c0_587, %c1_588, %c0_589, %c0_590] : memref<4x2x4x256xf32, #tpu.memory_space<vmem>>, vector<1x1x4x256xf32>
    %955 = vector.shape_cast %954 : vector<1x1x4x256xf32> to vector<4x256xf32>
    %956 = vector.broadcast %953 : vector<4x1xf32> to vector<4x256xf32>
    %957 = arith.mulf %956, %955 : vector<4x256xf32>
    %958 = arith.addf %952, %957 : vector<4x256xf32>
    %959 = arith.mulf %941, %950 : vector<4x1xf32>
    %c1_591 = arith.constant 1 : index
    %c1_592 = arith.constant 1 : index
    %c0_593 = arith.constant 0 : index
    %c0_594 = arith.constant 0 : index
    %960 = vector.load %arg6[%c1_591, %c1_592, %c0_593, %c0_594] : memref<4x2x4x256xf32, #tpu.memory_space<vmem>>, vector<1x1x4x256xf32>
    %961 = vector.shape_cast %960 : vector<1x1x4x256xf32> to vector<4x256xf32>
    %962 = vector.broadcast %959 : vector<4x1xf32> to vector<4x256xf32>
    %963 = arith.mulf %962, %961 : vector<4x256xf32>
    %964 = arith.addf %958, %963 : vector<4x256xf32>
    %965 = arith.mulf %943, %950 : vector<4x1xf32>
    %c2_595 = arith.constant 2 : index
    %c1_596 = arith.constant 1 : index
    %c0_597 = arith.constant 0 : index
    %c0_598 = arith.constant 0 : index
    %966 = vector.load %arg6[%c2_595, %c1_596, %c0_597, %c0_598] : memref<4x2x4x256xf32, #tpu.memory_space<vmem>>, vector<1x1x4x256xf32>
    %967 = vector.shape_cast %966 : vector<1x1x4x256xf32> to vector<4x256xf32>
    %968 = vector.broadcast %965 : vector<4x1xf32> to vector<4x256xf32>
    %969 = arith.mulf %968, %967 : vector<4x256xf32>
    %970 = arith.addf %964, %969 : vector<4x256xf32>
    %971 = arith.mulf %945, %950 : vector<4x1xf32>
    %c3_599 = arith.constant 3 : index
    %c1_600 = arith.constant 1 : index
    %c0_601 = arith.constant 0 : index
    %c0_602 = arith.constant 0 : index
    %972 = vector.load %arg6[%c3_599, %c1_600, %c0_601, %c0_602] : memref<4x2x4x256xf32, #tpu.memory_space<vmem>>, vector<1x1x4x256xf32>
    %973 = vector.shape_cast %972 : vector<1x1x4x256xf32> to vector<4x256xf32>
    %974 = vector.broadcast %971 : vector<4x1xf32> to vector<4x256xf32>
    %975 = arith.mulf %974, %973 : vector<4x256xf32>
    %976 = arith.addf %970, %975 : vector<4x256xf32>
    %c4_603 = arith.constant 4 : index
    %c0_604 = arith.constant 0 : index
    %c0_605 = arith.constant 0 : index
    %977 = vector.load %arg2[%c4_603, %c0_604, %c0_605] : memref<5x4x4xf32, #tpu.memory_space<vmem>>, vector<1x4x4xf32>
    %978 = vector.shape_cast %977 : vector<1x4x4xf32> to vector<4x4xf32>
    %cst_606 = arith.constant dense<0.000000e+00> : vector<4x256xf32>
    %979 = tpu.matmul %978, %976, %cst_606 {dimension_numbers = #tpu.dot_dimension_numbers<[1], [0], [0], [1], [0, 0, 1, 1], [], []>} : vector<4x4xf32>, vector<4x256xf32>, vector<4x256xf32> -> vector<4x256xf32>
    %c0_607 = arith.constant 0 : index
    %c4_608 = arith.constant 4 : index
    %980 = vector.load %arg3[%c0_607, %c4_608] : memref<4x5xf32, #tpu.memory_space<vmem>>, vector<4x1xf32>
    %981 = vector.broadcast %980 : vector<4x1xf32> to vector<4x256xf32>
    %982 = arith.addf %979, %981 : vector<4x256xf32>
    %cst_609 = arith.constant 0.000000e+00 : f32
    %983 = vector.broadcast %cst_609 : f32 to vector<4x256xf32>
    %984 = arith.maximumf %982, %983 : vector<4x256xf32>
    %c1_610 = arith.constant 1 : index
    %c0_611 = arith.constant 0 : index
    %c0_612 = arith.constant 0 : index
    %985 = vector.load %arg4[%c1_610, %c0_611, %c0_612] : memref<2x4x256xf32, #tpu.memory_space<vmem>>, vector<1x4x256xf32>
    %986 = vector.shape_cast %985 : vector<1x4x256xf32> to vector<4x256xf32>
    %987 = vector.shape_cast %984 : vector<4x256xf32> to vector<1x4x256xf32>
    tpu.vector_store %arg4[%c1_610, %c0_611, %c0_612], %987 {strides = array<i32>} : memref<2x4x256xf32, #tpu.memory_space<vmem>>, vector<1x4x256xf32>,
    return
  }
}

</mosaic_0001>

<bundles_post_ra>
// kernel: _lambda_.1
= control target key start
LH: loop header
LB: loop body
LE: loop exit
PB: predicated region body
PF: predicated region fallthrough
CT: control target
= control target key end

     0   :  { %v3921_v0 = vmov 0.0   ;;  %s3922_s19 = smov 16   ;;  %s3923_s20 = smov 15   ;;  %v17_v62 = vlaneseq  ;;  %vm5588_vm0 = vcmask 7168   ;;  %vm5583_vm1 = vcmask 916480   ;;  %s5575_s0 = inlined_call_operand.vmem [shape: f32[2,4,256], index: 0, kind: input, shape index: {}]   ;;  %s5576_s3 = inlined_call_operand.vmem [shape: f32[4,5], index: 3, kind: input, shape index: {}]   ;;  %s5577_s1 = inlined_call_operand.vmem [shape: f32[4,4,36], index: 1, kind: input, shape index: {}]   ;;  %s5578_s2 = inlined_call_operand.vmem [shape: f32[5,4,4], index: 2, kind: input, shape index: {}]   ;;  %s5579_s4 = inlined_call_operand.vmem [shape: f32[2,4,256], index: 4, kind: output, shape index: {}]  }
   0x1   :  { %24 = vst [vmem:[#allocation2] sm:$0xf] %v3921_v0  ;;  %v3982_v1 = vld [vmem:[%s5575_s0] sm:$0xff]  ;;  %v3987_v2 = vld [vmem:[%s5575_s0 + $0x8] sm:$0xff]  ;;  %s3924_s21 = smov 1   ;;  %s3925_s22 = smov 127  }
   0x2   :  { %25 = vst [vmem:[#allocation2 + $0x10] sm:$0xf] %v3921_v0  ;;  %s3926_s23 = smov 113   ;;  %s3927_s24 = smov 112   ;;  %vm5582_vm2 = vcmask 1039360   ;;  %vm5590_vm4 = vcmask 924672  }
   0x3   :  { %29 = vst [vmem:[#allocation2 + $0x4] sm:$0xff] %v3982_v1  ;;  %s3928_s25 = smov 111   ;;  %s3929_s26 = smov 17   ;;  %vm5584_vm7 = vcmask 121856   ;;  %vm255_vm8 = vcmask 908288   ;;  %vm5589_vm11 = vcmask 130048  }
   0x4   :  { %423 = vst [vmem:[#allocation2 + $0x14] sm:$0xff] %v3987_v2  ;;  %vm5606_vm13 = vcmask 1043456   ;;  %s3931_s5 = smov 32   ;;  %s3932_s8 = smov 30  }
   0x5   :  { %26 = vst [vmem:[#allocation2 + $0xc] sm:$0xf] %v3921_v0  ;;  %s3933_s11 = smov 2   ;;  %s3934_s12 = smov 126  }
   0x6   :  { %27 = vst [vmem:[#allocation2 + $0x1c] sm:$0xf] %v3921_v0  ;;  %v18_v0 = vand.u32 127, %v17_v62  ;;  %s3935_s13 = smov 98   ;;  %s3936_s14 = smov 96  }
   0x7   :  { %s3937_s15 = smov 94   ;;  %s3938_s16 = smov 34  }
   0x8   :  { %s3940_s27 = smov 64   ;;  %s3941_s28 = smov 4  }
   0x9   :  { %s3942_s29 = smov 124   ;;  %s3943_s30 = smov 68  }
   0xa   :  { %v30_v3 = vld [vmem:[#allocation2] sm:$0xff]  ;;  %v31_v4 = vld [vmem:[#allocation2 + $0x8] sm:$0xf]  ;;  %s3950_s7 = smov 26  }
   0xb   :  { %44 = vst [vmem:[#allocation1] ss:$2 sm:$0xff] %v30_v3  ;;  %v64_v5 = vld [vmem:[#allocation2 + $0x8] sm:$0xf]  ;;  %v424_v42 = vld [vmem:[#allocation2 + $0x10] sm:$0xff] }
   0xc   :  { %46 = vst [vmem:[#allocation1 + $0x10] ss:$2 sm:$0xff] %v31_v4  ;;  %v91_v9 = vld [vmem:[#allocation2 + $0x8] sm:$0xf]  ;;  %v149_v19 = vld [vmem:[#allocation2 + $0xc] sm:$0xf] }
   0xd   :  { %v122_v14 = vld [vmem:[#allocation2 + $0x8] sm:$0xf]  ;;  %v176_v24 = vld [vmem:[#allocation2 + $0xc] sm:$0xf]  ;;  %v425_v52 = vld [vmem:[#allocation2 + $0x18] sm:$0xf] }
   0xe   :  { %v207_v29 = vld [vmem:[#allocation2 + $0xc] sm:$0xf]  ;;  %v447_v56 = vld [vmem:[#allocation2 + $0x18] sm:$0xf] }
   0xf   :  { %v234_v34 = vld [vmem:[#allocation2 + $0xc] sm:$0xf]  ;;  %v469_v59 = vld [vmem:[#allocation2 + $0x18] sm:$0xf] }
  0x10   :  { %v491_v4 = vld [vmem:[#allocation2 + $0x18] sm:$0xf] }
  0x12   :  { %v3991_v6 = vld.sshfl [vmem:[#allocation1] sm:$0xff pattern:$0x75316420]  ;;  %v3993_v7 = vld.sshfl [vmem:[#allocation1 + $0x8] sm:$0xff pattern:$0x75316420] }
  0x13   :  { %v3995_v8 = vld.sshfl [vmem:[#allocation1 + $0x10] sm:$0xff pattern:$0x75316420]  ;;  %71 = vst [vmem:[#allocation1] ss:$2 sm:$0xff] %v30_v3 }
  0x14   :  { %73 = vst [vmem:[#allocation1 + $0x10] ss:$2 sm:$0xff] %v64_v5  ;;  %v3589_v43 = vpack.i.bf16 %v3995_v8, %v3993_v7 }
  0x1a   :  { %v75_v10 = vld.sshfl [vmem:[#allocation1 + $0x8] sm:$0xff pattern:$0x75316420]  ;;  %v74_v11 = vld.sshfl [vmem:[#allocation1] sm:$0xff pattern:$0x75316420] }
  0x1b   :  { %v76_v12 = vld.sshfl [vmem:[#allocation1 + $0x10] sm:$0xff pattern:$0x75316420]  ;;  %102 = vst [vmem:[#allocation1] ss:$2 sm:$0xff] %v30_v3 }
  0x1c   :  { %v3559_v13 = vpack.i.bf16 %v76_v12, %v75_v10  ;;  %104 = vst [vmem:[#allocation1 + $0x10] ss:$2 sm:$0xff] %v91_v9 }
  0x1e   :  { %3560 = vrot.lane.b32.xlu1 %v3559_v13, %s3922_s19  ;;  %v4061_v13 = vand.u32 15, %v18_v0 }
  0x20   :  { %vm5585_vm15 = vcmp.lt.s32.totalorder %v4061_v13, 15 }
  0x22   :  { %v3998_v15 = vld.sshfl [vmem:[#allocation1] sm:$0xff pattern:$0x75316420]  ;;  %v106_v16 = vld.sshfl [vmem:[#allocation1 + $0x8] sm:$0xff pattern:$0x75316420] }
  0x23   :  { %129 = vst [vmem:[#allocation1] ss:$2 sm:$0xff] %v30_v3  ;;  %v107_v17 = vld.sshfl [vmem:[#allocation1 + $0x10] sm:$0xff pattern:$0x75316420] }
  0x24   :  { %v3564_v18 = vpack.i.bf16 %v107_v17, %v106_v16  ;;  %131 = vst [vmem:[#allocation1 + $0x10] ss:$2 sm:$0xff] %v122_v14 }
  0x26   :  { %3565 = vrot.lane.b32.xlu2 %v3564_v18, %s3923_s20 }
  0x2a   :  { %v132_v20 = vld.sshfl [vmem:[#allocation1] sm:$0xff pattern:$0x75316420]  ;;  %v133_v21 = vld.sshfl [vmem:[#allocation1 + $0x8] sm:$0xff pattern:$0x75316420] }
  0x2b   :  { %156 = vst [vmem:[#allocation1] ss:$2 sm:$0xff] %v3982_v1  ;;  %v134_v22 = vld.sshfl [vmem:[#allocation1 + $0x10] sm:$0xff pattern:$0x75316420]  ;;  %135 = vrot.lane.b32.xlu0 %v132_v20, %s3924_s21 }
  0x2c   :  { %v3569_v23 = vpack.i.bf16 %v134_v22, %v133_v21  ;;  %158 = vst [vmem:[#allocation1 + $0x10] ss:$2 sm:$0xff] %v149_v19  ;;  %v513_v20 = vld [vmem:[#allocation2 + $0x1c] sm:$0xf] }
  0x2e   :  { %3570 = vrot.lane.b32.xlu1 %v3569_v23, %s3924_s21 }
  0x32   :  { %v159_v25 = vld.sshfl [vmem:[#allocation1] sm:$0xff pattern:$0x75316420]  ;;  %v160_v26 = vld.sshfl [vmem:[#allocation1 + $0x8] sm:$0xff pattern:$0x75316420] }
  0x33   :  { %187 = vst [vmem:[#allocation1] ss:$2 sm:$0xff] %v3982_v1  ;;  %162 = vrot.lane.b32.xlu2 %v159_v25, %s3925_s22  ;;  %v161_v27 = vld.sshfl [vmem:[#allocation1 + $0x10] sm:$0xff pattern:$0x75316420] }
  0x34   :  { %189 = vst [vmem:[#allocation1 + $0x10] ss:$2 sm:$0xff] %v176_v24  ;;  %v3574_v28 = vpack.i.bf16 %v161_v27, %v160_v26  ;;  %v4079_v24 = vshra.s32 %v18_v0, 4 }
  0x36   :  { %3575 = vrot.lane.b32.xlu1 %v3574_v28, %s3925_s22  ;;  %v3930_v28 = vmov 0  }
  0x37   :  { %3594 = vset.pattern.permute.xlu2 %v3930_v28  ;;  %3665 = vset.pattern.permute.xlu1 %v3930_v28 }
  0x3a   :  { %v190_v30 = vld.sshfl [vmem:[#allocation1] sm:$0xff pattern:$0x75316420]  ;;  %v191_v31 = vld.sshfl [vmem:[#allocation1 + $0x8] sm:$0xff pattern:$0x75316420] }
  0x3b   :  { %214 = vst [vmem:[#allocation1] ss:$2 sm:$0xff] %v3982_v1  ;;  %193 = vrot.lane.b32.xlu0 %v190_v30, %s3926_s23  ;;  %v192_v32 = vld.sshfl [vmem:[#allocation1 + $0x10] sm:$0xff pattern:$0x75316420] }
  0x3c   :  { %v3579_v33 = vpack.i.bf16 %v192_v32, %v191_v31  ;;  %216 = vst [vmem:[#allocation1 + $0x10] ss:$2 sm:$0xff] %v207_v29  ;;  %v301_v29 = vld [vmem:[%s5576_s3] sm:$0xf] }
  0x3e   :  { %3580 = vrot.lane.b32.xlu2 %v3579_v33, %s3926_s23 }
  0x42   :  { %v217_v35 = vld.sshfl [vmem:[#allocation1] sm:$0xff pattern:$0x75316420]  ;;  %v218_v36 = vld.sshfl [vmem:[#allocation1 + $0x8] sm:$0xff pattern:$0x75316420] }
  0x43   :  { %243 = vst [vmem:[#allocation1] ss:$2 sm:$0xff] %v3982_v1  ;;  %v219_v37 = vld.sshfl [vmem:[#allocation1 + $0x10] sm:$0xff pattern:$0x75316420] }
  0x44   :  { %v3584_v38 = vpack.i.bf16 %v219_v37, %v218_v36  ;;  %245 = vst [vmem:[#allocation1 + $0x10] ss:$2 sm:$0xff] %v234_v34 }
  0x46   :  { %3585 = vrot.lane.b32.xlu0 %v3584_v38, %s3927_s24  ;;  %220 = vrot.lane.b32.xlu2 %v217_v35, %s3927_s24 }
  0x4a   :  { %v246_v39 = vld.sshfl [vmem:[#allocation1] sm:$0xff pattern:$0x75316420]  ;;  %v247_v40 = vld.sshfl [vmem:[#allocation1 + $0x8] sm:$0xff pattern:$0x75316420] }
  0x4b   :  { %274 = vst [vmem:[#allocation1] ss:$2 sm:$0xff] %v3982_v1  ;;  %v248_v41 = vld.sshfl [vmem:[#allocation1 + $0x10] sm:$0xff pattern:$0x75316420] }
  0x4c   :  { %253 = vrot.lane.b32.xlu1 %v248_v41, %s3928_s25  ;;  %430 = vst [vmem:[#allocation1 + $0x10] ss:$2 sm:$0xff] %v425_v52 }
  0x4e   :  { %251 = vrot.lane.b32.xlu0 %v247_v40, %s3928_s25  ;;  %77 = vrot.lane.b32.xlu2 %v74_v11, %s3922_s19 }
  0x52   :  { %v4019_v44 = vld.sshfl [vmem:[#allocation1] sm:$0xff pattern:$0x75316420]  ;;  %v4021_v45 = vld.sshfl [vmem:[#allocation1 + $0x8] sm:$0xff pattern:$0x75316420] }
  0x53   :  { %428 = vst [vmem:[#allocation1] ss:$2 sm:$0xff] %v424_v42  ;;  %v4043_v55 = vld.sshfl [vmem:[#allocation1 + $0x10] sm:$0xff pattern:$0x75316420] }
  0x54   :  { %3590 = vrot.lane.b32.xlu1 %v3589_v43, %s3929_s26  ;;  %452 = vst [vmem:[#allocation1 + $0x10] ss:$2 sm:$0xff] %v447_v56 }
  0x56   :  { %249 = vrot.lane.b32.xlu0 %v246_v39, %s3928_s25  ;;  %304 = vperm.xlu2 %3594, %v301_v29  }
  0x5a   :  { %v4025_v46 = vld.sshfl [vmem:[#allocation1] sm:$0xff pattern:$0x75316420]  ;;  %v4027_v47 = vld.sshfl [vmem:[#allocation1 + $0x8] sm:$0xff pattern:$0x75316420] }
  0x5b   :  { %450 = vst [vmem:[#allocation1] ss:$2 sm:$0xff] %v424_v42  ;;  %v455_v58 = vld.sshfl [vmem:[#allocation1 + $0x10] sm:$0xff pattern:$0x75316420] }
  0x5c   :  { %50 = vrot.lane.b32.xlu1 %v3991_v6, %s3929_s26  ;;  %474 = vst [vmem:[#allocation1 + $0x10] ss:$2 sm:$0xff] %v469_v59  ;;  %v19_v6 = vadd.s32 128, %v18_v0 }
  0x5e   :  { %108 = vrot.lane.b32.xlu0 %v3998_v15, %s3923_s20  ;;  %v4065_v15 = vshra.s32 %v19_v6, 4  ;;  %v4067_v16 = vand.u32 15, %v19_v6 }
  0x60   :  { %vm5581_vm3 = vcmp.lt.s32.totalorder %v4065_v15, 15  ;;  %vm5587_vm5 = vcmp.ge.s32.totalorder %v4067_v16, 1  ;;  %vm5580_vm6 = vcmp.lt.s32.totalorder %v4067_v16, 15  ;;  %vm5586_vm12 = vcmp.ge.s32.totalorder %v4065_v15, 1 }
  0x61   :  { %vm4096_vm9 = vmand %vm5581_vm3, %vm5587_vm5 }
  0x62   :  { %v4033_v48 = vld.sshfl [vmem:[#allocation1] sm:$0xff pattern:$0x75316420]  ;;  %v454_v49 = vld.sshfl [vmem:[#allocation1 + $0x8] sm:$0xff pattern:$0x75316420]  ;;  %vm4114_vm10 = vmand %vm5581_vm3, %vm5580_vm6 }
  0x63   :  { %472 = vst [vmem:[#allocation1] ss:$2 sm:$0xff] %v424_v42  ;;  %v4053_v3 = vld.sshfl [vmem:[#allocation1 + $0x10] sm:$0xff pattern:$0x75316420]  ;;  %v3595_v12 = vpack.i.bf16 %v455_v58, %v454_v49  ;;  %vm4139_vm14 = vmand %vm5586_vm12, %vm5580_vm6 }
  0x64   :  { %496 = vst [vmem:[#allocation1 + $0x10] ss:$2 sm:$0xff] %v491_v4 }
  0x65   :  { %3596 = vrot.lane.b32.xlu1 %v3595_v12, %s3922_s19 }
  0x6a   :  { %v4035_v50 = vld.sshfl [vmem:[#allocation1] sm:$0xff pattern:$0x75316420]  ;;  %v4037_v51 = vld.sshfl [vmem:[#allocation1 + $0x8] sm:$0xff pattern:$0x75316420] }
  0x6b   :  { %494 = vst [vmem:[#allocation1] ss:$2 sm:$0xff] %v424_v42  ;;  %v499_v27 = vld.sshfl [vmem:[#allocation1 + $0x10] sm:$0xff pattern:$0x75316420]  ;;  %v3600_v58 = vpack.i.bf16 %v4053_v3, %v4037_v51 }
  0x6c   :  { %518 = vst [vmem:[#allocation1 + $0x10] ss:$2 sm:$0xff] %v513_v20 }
  0x6d   :  { %3601 = vrot.lane.b32.xlu2 %v3600_v58, %s3923_s20  ;;  %v300_v58 = vld [vmem:[%s5577_s1] sm:$0xf] }
  0x72   :  { %v497_v10 = vld.sshfl [vmem:[#allocation1] sm:$0xff pattern:$0x75316420]  ;;  %v498_v11 = vld.sshfl [vmem:[#allocation1 + $0x8] sm:$0xff pattern:$0x75316420] }
  0x73   :  { %500 = vrot.lane.b32.xlu0 %v497_v10, %s3924_s21  ;;  %516 = vst [vmem:[#allocation1] ss:$2 sm:$0xff] %v3987_v2  ;;  %v3605_v33 = vpack.i.bf16 %v499_v27, %v498_v11  ;;  %v521_v11 = vld.sshfl [vmem:[#allocation1 + $0x10] sm:$0xff pattern:$0x75316420] }
  0x75   :  { %3606 = vrot.lane.b32.xlu1 %v3605_v33, %s3924_s21 }
  0x7a   :  { %v520_v42 = vld.sshfl [vmem:[#allocation1 + $0x8] sm:$0xff pattern:$0x75316420]  ;;  %v4118_v43 = vld.sshfl [vmem:[#allocation1] sm:$0xff pattern:$0x75316420] }
  0x7b   :  { %538 = vst [vmem:[#allocation1] ss:$2 sm:$0xff] %v3987_v2  ;;  %522 = vrot.lane.b32.xlu2 %v4118_v43, %s3925_s22 }
  0x80   :  { %v4039_v53 = vpop.permute.xlu2 %3565 }
  0x81   :  { %v3568_v8 = vunpack.i.h.bf16 %v4039_v53  ;;  %v3567_v23 = vunpack.i.l.bf16 %v4039_v53 }
  0x82   :  { %v541_v28 = vld.sshfl [vmem:[#allocation1] sm:$0xff pattern:$0x75316420]  ;;  %v542_v29 = vld.sshfl [vmem:[#allocation1 + $0x8] sm:$0xff pattern:$0x75316420] }
  0x83   :  { %v116_v0 = vsel %vm5584_vm7, %v3567_v23, %v3568_v8  ;;  %vm4178_vm7 = vmand %vm5586_vm12, %vm5587_vm5  ;;  %560 = vst [vmem:[#allocation1] ss:$2 sm:$0xff] %v3987_v2 }
  0x8d   :  { %v4047_v60 = vpop.permute.xlu2 %162 }
  0x90   :  { %v4041_v54 = vpop.permute.xlu1 %3560 }
  0x91   :  { %v3563_v39 = vunpack.i.h.bf16 %v4041_v54  ;;  %v3562_v40 = vunpack.i.l.bf16 %v4041_v54 }
  0x98   :  { %v4057_v7 = vpop.permute.xlu2 %3580 }
  0x99   :  { %v3583_v21 = vunpack.i.h.bf16 %v4057_v7  ;;  %v3582_v30 = vunpack.i.l.bf16 %v4057_v7 }
  0x9b   :  { %v201_v36 = vsel %vm5590_vm4, %v3582_v30, %v3583_v21 }
  0x9c   :  { %v205_v62 = vsel %vm4096_vm9, %v201_v36, 0.0 }
  0x9d   :  { %v4045_v57 = vpop.permute.xlu0 %135 }
  0xa0   :  { %v4049_v61 = vpop.permute.xlu1 %3570  ;;  %v221_v49 = vpop.permute.xlu2 %220 }
  0xa1   :  { %v3573_v22 = vunpack.i.h.bf16 %v4049_v61  ;;  %v3572_v31 = vunpack.i.l.bf16 %v4049_v61 }
  0xa3   :  { %v143_v38 = vsel %vm5588_vm0, %v3572_v31, %v3573_v22 }
  0xa4   :  { %v147_v4 = vsel %vm5587_vm5, %v143_v38, 0.0  ;;  %vm32_vm5 = vcmp.ge.s32.totalorder %v4079_v24, 1 }
  0xa8   :  { %v4055_v5 = vpop.permute.xlu1 %3575 }
  0xa9   :  { %v3578_v9 = vunpack.i.h.bf16 %v4055_v5  ;;  %v3577_v17 = vunpack.i.l.bf16 %v4055_v5  ;;  %v535_v5 = vld [vmem:[#allocation2 + $0x1c] sm:$0xf] }
  0xaa   :  { %540 = vst [vmem:[#allocation1 + $0x10] ss:$2 sm:$0xff] %v535_v5 }
  0xab   :  { %v170_v26 = vsel %vm5582_vm2, %v3577_v17, %v3578_v9  ;;  %v85_v9 = vsel %vm5589_vm11, %v3562_v40, %v3563_v39  ;;  %v169_v10 = vsel %vm5582_vm2, %v4047_v60, %v3577_v17  ;;  %v78_v39 = vpop.permute.xlu2 %77 }
  0xac   :  { %v174_v37 = vsel %vm5580_vm6, %v170_v26, 0.0  ;;  %vm177_vm6 = vcmp.lt.s32.totalorder %v4079_v24, 15  ;;  %v89_v22 = vsel %vm5586_vm12, %v85_v9, 0.0  ;;  %vm5592_vm12 = vcmask 293888  }
  0xad   :  { %v4051_v63 = vpop.permute.xlu0 %193  ;;  %v282_v51 = vrot.slane %v174_v37, 4  ;;  %vm4165_vm2 = vmand %vm177_vm6, %vm5585_vm15 }
  0xaf   :  { %v297_v17 = vsel %vm5606_vm13, %v4021_v45, %v282_v51  ;;  %v563_v51 = vld.sshfl [vmem:[#allocation1] sm:$0xff pattern:$0x75316420] }
  0xb8   :  { %v4063_v14 = vpop.permute.xlu0 %3585 }
  0xb9   :  { %v3588_v18 = vunpack.i.h.bf16 %v4063_v14  ;;  %v3587_v19 = vunpack.i.l.bf16 %v4063_v14  ;;  %v271_v14 = vrot.slane %v147_v4, 4 }
  0xbb   :  { %v228_v25 = vsel %vm5583_vm1, %v3587_v19, %v3588_v18  ;;  %v227_v8 = vsel %vm5583_vm1, %v221_v49, %v3587_v19  ;;  %v3610_v18 = vpack.i.bf16 %v521_v11, %v520_v42  ;;  %v120_v19 = vsel %vm4139_vm14, %v116_v0, 0.0  ;;  %v543_v0 = vld.sshfl [vmem:[#allocation1 + $0x10] sm:$0xff pattern:$0x75316420] }
  0xbc   :  { %v232_v32 = vsel %vm5581_vm3, %v228_v25, 0.0  ;;  %vm5591_vm3 = vcmp.ge.s32.totalorder %v4061_v13, 1  ;;  %v231_v20 = vsel %vm177_vm6, %v227_v8, 0.0  ;;  %vm56_vm1 = vcmask 138240  }
  0xbd   :  { %v288_v56 = vrot.slane %v232_v32, 4  ;;  %v173_v25 = vsel %vm5585_vm15, %v169_v10, 0.0  ;;  %3611 = vrot.lane.b32.xlu0 %v3610_v18, %s3925_s22  ;;  %v200_v32 = vsel %vm5590_vm4, %v4051_v63, %v3582_v30  ;;  %vm4191_vm15 = vmand %vm177_vm6, %vm5591_vm3  ;;  %v287_v37 = vrot.slane %v231_v20, 4  ;;  %v557_v30 = vld [vmem:[#allocation2 + $0x1c] sm:$0xf] }
  0xbe   :  { %v254_v34 = vpop.permute.xlu1 %253  ;;  %v265_v63 = vrot.slane %v89_v22, 4  ;;  %v3615_v5 = vpack.i.bf16 %v543_v0, %v542_v29  ;;  %562 = vst [vmem:[#allocation1 + $0x10] ss:$2 sm:$0xff] %v557_v30 }
  0xbf   :  { %v299_v12 = vsel %vm5606_vm13, %v205_v62, %v288_v56  ;;  %v281_v56 = vrot.slane %v173_v25, 4  ;;  %v204_v62 = vsel %vm4191_vm15, %v200_v32, 0.0 }
  0xc0   :  { %v252_v52 = vpop.permute.xlu0 %251  ;;  %v298_v4 = vsel %vm5606_vm13, %v204_v62, %v287_v37  ;;  %3616 = vrot.lane.b32.xlu1 %v3615_v5, %s3926_s23 }
  0xc1   :  { %v257_v59 = vsel %vm255_vm8, %v252_v52, %v254_v34  ;;  %v295_v34 = vsel %vm5606_vm13, %v120_v19, %v271_v14 }
  0xc2   :  { %v261_v6 = vsel %vm4114_vm10, %v257_v59, 0.0 }
  0xc3   :  { %3428 = vmatpush.msk.msra.mxu1 %vm5606_vm13, %v261_v6  ;;  %v296_v6 = vsel %vm5606_vm13, %v4019_v44, %v281_v56 }
  0xc5   :  { %349 = vmatpush.msra.mxu1 %v299_v12  ;;  %544 = vrot.lane.b32.xlu0 %v541_v28, %s3926_s23  ;;  %v579_v12 = vld [vmem:[#allocation2 + $0x1c] sm:$0xf] }
  0xc6   :  { %v3591_v60 = vpop.permute.xlu1 %3590 }
  0xc7   :  { %v3593_v26 = vunpack.i.h.bf16 %v3591_v60  ;;  %v3592_v27 = vunpack.i.l.bf16 %v3591_v60  ;;  %350 = vmatpush.msra.mxu1 %v297_v17  ;;  %v565_v60 = vld.sshfl [vmem:[#allocation1 + $0x10] sm:$0xff pattern:$0x75316420] }
  0xc8   :  { %v250_v33 = vpop.permute.xlu0 %249  ;;  %584 = vst [vmem:[#allocation1 + $0x10] ss:$2 sm:$0xff] %v579_v12 }
  0xc9   :  { %351 = vmatpush.msra.mxu1 %v295_v34  ;;  %v256_v7 = vsel %vm255_vm8, %v250_v33, %v252_v52  ;;  %v58_v38 = vsel %vm56_vm1, %v3592_v27, %v3593_v26  ;;  %v142_v52 = vsel %vm5588_vm0, %v4045_v57, %v3572_v31  ;;  %v84_v57 = vsel %vm5589_vm11, %v78_v39, %v3562_v40  ;;  %vm4229_vm0 = vmand %vm32_vm5, %vm5591_vm3  ;;  %v564_v40 = vld.sshfl [vmem:[#allocation1 + $0x8] sm:$0xff pattern:$0x75316420] }
  0xca   :  { %v260_v42 = vsel %vm4165_vm2, %v256_v7, 0.0  ;;  %v62_v49 = vsel %vm4178_vm7, %v58_v38, 0.0  ;;  %v146_v61 = vsel %vm5591_vm3, %v142_v52, 0.0  ;;  %vm5645_vm11 = vcmp.lt.s32.totalorder %v4061_v13, 15  ;;  %582 = vst [vmem:[#allocation1] ss:$2 sm:$0xff] %v3987_v2 }
  0xcb   :  { %3426 = vmatpush.msk.msra.mxu0 %vm5606_vm13, %v260_v42  ;;  %v293_v59 = vsel %vm5606_vm13, %v62_v49, %v265_v63  ;;  %vm4240_vm4 = vmand %vm32_vm5, %vm5645_vm11  ;;  %v88_v8 = vsel %vm32_vm5, %v84_v57, 0.0  ;;  %v270_v10 = vrot.slane %v146_v61, 4  ;;  %vm5648_vm3 = vcmask 121856  }
  0xcc   :  { %352 = vmatpush.msra.mxu1 %v293_v59  ;;  %v264_v19 = vrot.slane %v88_v8, 4  ;;  %v3620_v17 = vpack.i.bf16 %v565_v60, %v564_v40  ;;  %v3625_v26 = vpack.i.bf16 %v4043_v55, %v4027_v47  ;;  %v305_v47 = vpop.permute.xlu2 %304  ;;  %vm5650_vm11 = vcmask 1039360  }
  0xcd   :  { %329 = vmatpush.msra.mxu0 %v298_v4  ;;  %3429 = vmatmul.msk.f32.vlgmr.msra.gmra.mxu1 %vm5592_vm12, %v300_v58 }
  0xce   :  { %v51_v31 = vpop.permute.xlu1 %50  ;;  %3621 = vrot.lane.b32.xlu0 %v3620_v17, %s3927_s24 }
  0xcf   :  { %v57_v54 = vsel %vm56_vm1, %v51_v31, %v3592_v27  ;;  %330 = vmatpush.msra.mxu0 %v296_v6  ;;  %v587_v25 = vld.sshfl [vmem:[#allocation1 + $0x10] sm:$0xff pattern:$0x75316420] }
  0xd0   :  { %v109_v9 = vpop.permute.xlu0 %108  ;;  %v61_v18 = vsel %vm4229_vm0, %v57_v54, 0.0  ;;  %592 = vrot.lane.b32.xlu2 %v587_v25, %s3928_s25 }
  0xd1   :  { %v115_v11 = vsel %vm5648_vm3, %v109_v9, %v3567_v23  ;;  %v292_v22 = vsel %vm5606_vm13, %v61_v18, %v264_v19  ;;  %v586_v53 = vld.sshfl [vmem:[#allocation1 + $0x8] sm:$0xff pattern:$0x75316420]  ;;  %v585_v23 = vld.sshfl [vmem:[#allocation1] sm:$0xff pattern:$0x75316420] }
  0xd2   :  { %v119_v14 = vsel %vm4240_vm4, %v115_v11, 0.0  ;;  %590 = vrot.lane.b32.xlu1 %v586_v53, %s3928_s25  ;;  %612 = vst [vmem:[#allocation1] ss:$2 sm:$0xff] %v3987_v2  ;;  %vm5649_vm3 = vcmask 916480  }
  0xd3   :  { %v294_v20 = vsel %vm5606_vm13, %v119_v14, %v270_v10 }
  0xd4   :  { %331 = vmatpush.msra.mxu0 %v294_v20  ;;  %v4278_v28 = vpop.permute.xlu2 %3601 }
  0xd5   :  { %v3603_v11 = vunpack.i.l.bf16 %v4278_v28  ;;  %v3604_v21 = vunpack.i.h.bf16 %v4278_v28 }
  0xd6   :  { %332 = vmatpush.msra.mxu0 %v292_v22  ;;  %588 = vrot.lane.b32.xlu0 %v585_v23, %s3928_s25 }
  0xd7   :  { %3427 = vmatmul.msk.f32.vlgmr.msra.gmra.mxu0 %vm5592_vm12, %v300_v58  ;;  %v4274_v55 = vpop.permute.xlu1 %3596  ;;  %vm5651_vm12 = vcmp.lt.s32.totalorder %v4061_v13, 15 }
  0xd8   :  { %566 = vrot.lane.b32.xlu2 %v563_v51, %s3927_s24  ;;  %v3599_v39 = vunpack.i.h.bf16 %v4274_v55  ;;  %v3598_v42 = vunpack.i.l.bf16 %v4274_v55 }
  0xd9   :  { %v613_v53 = vld.sshfl [vmem:[#allocation1] sm:$0xff pattern:$0x75316420] }
  0xda   :  { %3626 = vrot.lane.b32.xlu1 %v3625_v26, %s3929_s26 }
  0xdc   :  { %v523_v33 = vpop.permute.xlu2 %522 }
  0xde   :  { %478 = vrot.lane.b32.xlu0 %v4035_v50, %s3923_s20 }
  0xe0   :  { %456 = vrot.lane.b32.xlu2 %v4033_v48, %s3922_s19 }
  0xe2   :  { %434 = vrot.lane.b32.xlu1 %v4025_v46, %s3929_s26  ;;  %s3946_s26 = smov 90  }
  0xe5   :  { %v4272_v2 = vpop.permute.xlu0 %500 }
  0xe7   :  { %v4280_v29 = vpop.permute.xlu1 %3606 }
  0xe8   :  { %v3608_v6 = vunpack.i.l.bf16 %v4280_v29  ;;  %v3609_v12 = vunpack.i.h.bf16 %v4280_v29 }
 0x12a   :  { %v593_v7 = vpop.permute.xlu2 %592 }
 0x12f   :  { %v4276_v27 = vpop.permute.xlu0 %3611 }
 0x130   :  { %v3613_v52 = vunpack.i.l.bf16 %v4276_v27  ;;  %v3614_v31 = vunpack.i.h.bf16 %v4276_v27 }
 0x132   :  { %v3617_v50 = vpop.permute.xlu1 %3616  ;;  %v567_v49 = vpop.permute.xlu2 %566  ;;  %v528_v54 = vsel %vm5650_vm11, %v523_v33, %v3613_v52 }
 0x133   :  { %v3618_v59 = vunpack.i.l.bf16 %v3617_v50  ;;  %v3619_v40 = vunpack.i.h.bf16 %v3617_v50  ;;  %v532_v8 = vsel %vm5651_vm12, %v528_v54, 0.0  ;;  %vm5656_vm12 = vcmask 130048  }
 0x134   :  { %v619_v14 = vrot.slane %v532_v8, 4 }
 0x136   :  { %v633_v27 = vsel %vm5606_vm13, %v613_v53, %v619_v14 }
 0x137   :  { %v545_v32 = vpop.permute.xlu0 %544 }
 0x140   :  { %v3622_v34 = vpop.permute.xlu0 %3621 }
 0x141   :  { %v3623_v30 = vunpack.i.l.bf16 %v3622_v34  ;;  %v3624_v4 = vunpack.i.h.bf16 %v3622_v34 }
 0x143   :  { %v572_v62 = vsel %vm5649_vm3, %v567_v49, %v3623_v30 }
 0x144   :  { %v591_v48 = vpop.permute.xlu1 %590  ;;  %v576_v57 = vsel %vm177_vm6, %v572_v62, 0.0  ;;  %vm5652_vm6 = vcmask 924672  }
 0x145   :  { %v595_v9 = vsel %vm255_vm8, %v591_v48, %v593_v7  ;;  %v625_v10 = vrot.slane %v576_v57, 4  ;;  %v550_v17 = vsel %vm5652_vm6, %v545_v32, %v3618_v59 }
 0x146   :  { %v599_v20 = vsel %vm4114_vm10, %v595_v9, 0.0  ;;  %v554_v41 = vsel %vm4191_vm15, %v550_v17, 0.0  ;;  %vm5655_vm10 = vmmov %vm5649_vm3  ;;  %vm5657_vm15 = vcmp.lt.s32.totalorder %v4065_v15, 15  ;;  %vm5659_vm3 = vcmp.ge.s32.totalorder %v4061_v13, 1 }
 0x147   :  { %v635_v26 = vsel %vm5606_vm13, %v554_v41, %v625_v10  ;;  %v573_v29 = vsel %vm5655_vm10, %v3623_v30, %v3624_v4  ;;  %v637_v41 = vld [vmem:[%s5577_s1] sm:$0xf]  ;;  %vm5595_vm10 = vcmask 1031168  }
 0x148   :  { %v589_v63 = vpop.permute.xlu0 %588  ;;  %v577_v33 = vsel %vm5657_vm15, %v573_v29, 0.0  ;;  %v906_v29 = vld [vmem:[#allocation2 + $0xc] sm:$0xf]  ;;  %vm823_vm15 = vcmp.lt.s32.totalorder %v4067_v16, 14 }
 0x149   :  { %v594_v5 = vsel %vm255_vm8, %v589_v63, %v591_v48  ;;  %vm5653_vm8 = vmmov %vm5652_vm6  ;;  %v626_v34 = vrot.slane %v577_v33, 4  ;;  %v529_v63 = vsel %vm5650_vm11, %v3613_v52, %v3614_v31  ;;  %vm5600_vm11 = vcmask 244736  }
 0x14a   :  { %v354_v37 = vpop.f32.mrf.mxu1  ;;  %v598_v18 = vsel %vm4165_vm2, %v594_v5, 0.0  ;;  %v551_v22 = vsel %vm5653_vm8, %v3618_v59, %v3619_v40  ;;  %vm5654_vm2 = vcmask 121856   ;;  %vm5663_vm8 = vcmp.ge.s32.totalorder %v4067_v16, 1 }
 0x14b   :  { %v355_v46 = vadd.f32 %v354_v37, %v305_v47  ;;  %vm5661_vm6 = vmmov %vm5654_vm2 }
 0x14c   :  { %v3627_v61 = vpop.permute.xlu1 %3626  ;;  %v485_v44 = vsel %vm5661_vm6, %v3603_v11, %v3604_v21  ;;  %v365_v21 = vld [vmem:[%s5578_s2] sm:$0xf]  ;;  %vm5597_vm6 = vcmp.lt.s32.totalorder %v4061_v13, 14 }
 0x14d   :  { %v358_v38 = vmax.f32 %v355_v46, 0.0  ;;  %v3629_v28 = vunpack.i.h.bf16 %v3627_v61  ;;  %v3628_v32 = vunpack.i.l.bf16 %v3627_v61 }
 0x14f   :  { %3432 = vmatpush.msk.msra.mxu3 %vm5606_vm13, %v358_v38  ;;  %v361_v56 = vrot.slane %v358_v38, 4  ;;  %v441_v57 = vsel %vm56_vm1, %v3628_v32, %v3629_v28 }
 0x150   :  { %v479_v60 = vpop.permute.xlu0 %478 }
 0x151   :  { %3437 = vmatpush.msk.msrb.mxu3 %vm5606_vm13, %v599_v20  ;;  %v484_v25 = vsel %vm5654_vm2, %v479_v60, %v3603_v11 }
 0x152   :  { %v488_v37 = vsel %vm4240_vm4, %v484_v25, 0.0  ;;  %v879_v25 = vld [vmem:[#allocation2 + $0xc] sm:$0xf] }
 0x154   :  { %v334_v58 = vpop.f32.mrf.mxu0  ;;  %v435_v35 = vpop.permute.xlu1 %434 }
 0x155   :  { %v335_v0 = vadd.f32 %v334_v58, %v305_v47  ;;  %v457_v47 = vpop.permute.xlu2 %456  ;;  %v440_v38 = vsel %vm56_vm1, %v435_v35, %v3628_v32  ;;  %vm5593_vm1 = vcmask 31744  }
 0x156   :  { %v462_v36 = vsel %vm5656_vm12, %v457_v47, %v3598_v42  ;;  %v444_v62 = vsel %vm4229_vm0, %v440_v38, 0.0  ;;  %vm5665_vm0 = vcmp.ge.s32.totalorder %v4065_v15, 1  ;;  %3433 = vmatmul.msk.f32.vlgmr.msra.gmra.mxu3 %vm5593_vm1, %v365_v21 }
 0x157   :  { %v357_v51 = vmax.f32 %v335_v0, 0.0  ;;  %v466_v50 = vsel %vm32_vm5, %v462_v36, 0.0  ;;  %vm5660_vm5 = vcmp.lt.s32.totalorder %v4067_v16, 15  ;;  %v614_v0 = vld.sshfl [vmem:[#allocation1 + $0x8] sm:$0xff pattern:$0x75316420] }
 0x158   :  { %v602_v7 = vrot.slane %v466_v50, 4  ;;  %v937_v50 = vld [vmem:[#allocation2 + $0xc] sm:$0xf] }
 0x159   :  { %v4301_v19 = vsel %vm5606_vm13, %v357_v51, %v361_v56  ;;  %3430 = vmatpush.msk.msra.mxu2 %vm5606_vm13, %v357_v51  ;;  %v533_v56 = vsel %vm5660_vm5, %v529_v63, 0.0  ;;  %v445_v51 = vsel %vm4178_vm7, %v441_v57, 0.0  ;;  %vm5666_vm7 = vcmask 293888  }
 0x15a   :  { %v4310_v23 = vadd.f32 %v4301_v19, %v3982_v1  ;;  %v555_v1 = vsel %vm4096_vm9, %v551_v22, 0.0  ;;  %vm5658_vm9 = vcmask 7168   ;;  %v620_v58 = vrot.slane %v533_v56, 4  ;;  %3431 = vmatmul.msk.f32.vlgmr.msra.gmra.mxu2 %vm5593_vm1, %v365_v21  ;;  %vm5667_vm2 = vmmov %vm5666_vm7 }
 0x15b   :  { %3435 = vmatpush.msk.msrb.mxu2 %vm5606_vm13, %v598_v18  ;;  %v506_v46 = vsel %vm5658_vm9, %v4272_v2, %v3608_v6  ;;  %v636_v30 = vsel %vm5606_vm13, %v555_v1, %v626_v34  ;;  %v489_v2 = vsel %vm4139_vm14, %v485_v44, 0.0  ;;  %vm5662_vm4 = vmmov %vm5658_vm9  ;;  %v629_v5 = vsel %vm5606_vm13, %v444_v62, %v602_v7  ;;  %v964_v7 = vld [vmem:[#allocation2 + $0xc] sm:$0xf] }
 0x15c   :  { %759 = vst [vmem:[#allocation2 + $0x4] sm:$0xff] %v4310_v23  ;;  %v510_v48 = vsel %vm5659_vm3, %v506_v46, 0.0  ;;  %685 = vmatpush.msrb.mxu3 %v636_v30  ;;  %v507_v59 = vsel %vm5662_vm4, %v3608_v6, %v3609_v12  ;;  %v634_v61 = vsel %vm5606_vm13, %v614_v0, %v620_v58  ;;  %vm5664_vm14 = vmmov %vm5656_vm12  ;;  %vm5607_vm12 = vcmask 15360  }
 0x15d   :  { %665 = vmatpush.msrb.mxu2 %v635_v26  ;;  %v608_v49 = vrot.slane %v510_v48, 4  ;;  %v511_v4 = vsel %vm5663_vm8, %v507_v59, 0.0  ;;  %v463_v43 = vsel %vm5664_vm14, %v3598_v42, %v3599_v39  ;;  %vm5594_vm3 = vcmask 785408  }
 0x15e   :  { %v609_v3 = vrot.slane %v511_v4, 4  ;;  %686 = vmatpush.msrb.mxu3 %v634_v61  ;;  %v467_v54 = vsel %vm5665_vm0, %v463_v43, 0.0  ;;  %vm5596_vm5 = vcmp.lt.s32.totalorder %v4079_v24, 14  ;;  %vm5599_vm4 = vcmp.lt.s32.totalorder %v4065_v15, 14 }
 0x15f   :  { %666 = vmatpush.msrb.mxu2 %v633_v27  ;;  %v631_v52 = vsel %vm5606_vm13, %v488_v37, %v608_v49  ;;  %v603_v8 = vrot.slane %v467_v54, 4  ;;  %vm5605_vm8 = vcmp.ge.s32.totalorder %v4061_v13, 2  ;;  %vm5601_vm14 = vcmask 801792   ;;  %vm4474_vm9 = vmand %vm5599_vm4, %vm823_vm15 }
 0x160   :  { %v632_v40 = vsel %vm5606_vm13, %v489_v2, %v609_v3  ;;  %vm5603_vm0 = vcmp.ge.s32.totalorder %v4079_v24, 2  ;;  %vm5598_vm1 = vcmask 769024  }
 0x161   :  { %667 = vmatpush.msrb.mxu2 %v631_v52  ;;  %687 = vmatpush.msrb.mxu3 %v632_v40  ;;  %v630_v55 = vsel %vm5606_vm13, %v445_v51, %v603_v8 }
 0x163   :  { %v760_v31 = vld [vmem:[#allocation2] sm:$0xff]  ;;  %v761_v6 = vld [vmem:[#allocation2 + $0x8] sm:$0xf]  ;;  %668 = vmatpush.msrb.mxu2 %v629_v5  ;;  %688 = vmatpush.msrb.mxu3 %v630_v55 }
 0x164   :  { %774 = vst [vmem:[#allocation1] ss:$2 sm:$0xff] %v760_v31  ;;  %v794_v39 = vld [vmem:[#allocation2 + $0x8] sm:$0xf]  ;;  %3436 = vmatmul.msk.f32.vlgmr.msrb.gmra.mxu2 %vm5666_vm7, %v637_v41  ;;  %3438 = vmatmul.msk.f32.vlgmr.msrb.gmra.mxu3 %vm5667_vm2, %v637_v41  ;;  %vm4441_vm7 = vmand %vm5596_vm5, %vm5605_vm8  ;;  %vm765_vm2 = vcmp.ge.s32.totalorder %v4067_v16, 2 }
 0x165   :  { %776 = vst [vmem:[#allocation1 + $0x10] ss:$2 sm:$0xff] %v761_v6  ;;  %v821_v11 = vld [vmem:[#allocation2 + $0x8] sm:$0xf] }
 0x166   :  { %v852_v20 = vld [vmem:[#allocation2 + $0x8] sm:$0xf] }
 0x16b   :  { %v4365_v42 = vld.sshfl [vmem:[#allocation1] sm:$0xff pattern:$0x75316420]  ;;  %v4367_v9 = vld.sshfl [vmem:[#allocation1 + $0x8] sm:$0xff pattern:$0x75316420] }
 0x16c   :  { %v4369_v10 = vld.sshfl [vmem:[#allocation1 + $0x10] sm:$0xff pattern:$0x75316420]  ;;  %801 = vst [vmem:[#allocation1] ss:$2 sm:$0xff] %v760_v31 }
 0x16d   :  { %803 = vst [vmem:[#allocation1 + $0x10] ss:$2 sm:$0xff] %v794_v39  ;;  %v3660_v58 = vpack.i.bf16 %v4369_v10, %v4367_v9 }
 0x173   :  { %v4371_v12 = vld.sshfl [vmem:[#allocation1] sm:$0xff pattern:$0x75316420]  ;;  %v805_v45 = vld.sshfl [vmem:[#allocation1 + $0x8] sm:$0xff pattern:$0x75316420] }
 0x174   :  { %v806_v14 = vld.sshfl [vmem:[#allocation1 + $0x10] sm:$0xff pattern:$0x75316420]  ;;  %832 = vst [vmem:[#allocation1] ss:$2 sm:$0xff] %v760_v31 }
 0x175   :  { %834 = vst [vmem:[#allocation1 + $0x10] ss:$2 sm:$0xff] %v821_v11  ;;  %v3630_v18 = vpack.i.bf16 %v806_v14, %v805_v45 }
 0x177   :  { %3631 = vrot.lane.b32.xlu0 %v3630_v18, %s3931_s5 }
 0x17b   :  { %v4374_v60 = vld.sshfl [vmem:[#allocation1] sm:$0xff pattern:$0x75316420]  ;;  %v836_v17 = vld.sshfl [vmem:[#allocation1 + $0x8] sm:$0xff pattern:$0x75316420] }
 0x17c   :  { %v837_v22 = vld.sshfl [vmem:[#allocation1 + $0x10] sm:$0xff pattern:$0x75316420]  ;;  %859 = vst [vmem:[#allocation1] ss:$2 sm:$0xff] %v760_v31 }
 0x17d   :  { %861 = vst [vmem:[#allocation1 + $0x10] ss:$2 sm:$0xff] %v852_v20  ;;  %v3635_v53 = vpack.i.bf16 %v837_v22, %v836_v17 }
 0x17f   :  { %3636 = vrot.lane.b32.xlu1 %v3635_v53, %s3932_s8 }
 0x183   :  { %v862_v26 = vld.sshfl [vmem:[#allocation1] sm:$0xff pattern:$0x75316420]  ;;  %v863_v47 = vld.sshfl [vmem:[#allocation1 + $0x8] sm:$0xff pattern:$0x75316420] }
 0x184   :  { %v864_v27 = vld.sshfl [vmem:[#allocation1 + $0x10] sm:$0xff pattern:$0x75316420]  ;;  %886 = vst [vmem:[#allocation1] ss:$2 sm:$0xff] %v4310_v23  ;;  %865 = vrot.lane.b32.xlu2 %v862_v26, %s3933_s11 }
 0x185   :  { %888 = vst [vmem:[#allocation1 + $0x10] ss:$2 sm:$0xff] %v879_v25  ;;  %v3640_v1 = vpack.i.bf16 %v864_v27, %v863_v47 }
 0x187   :  { %3641 = vrot.lane.b32.xlu0 %v3640_v1, %s3933_s11 }
 0x18b   :  { %v889_v28 = vld.sshfl [vmem:[#allocation1] sm:$0xff pattern:$0x75316420]  ;;  %v890_v32 = vld.sshfl [vmem:[#allocation1 + $0x8] sm:$0xff pattern:$0x75316420] }
 0x18c   :  { %v891_v36 = vld.sshfl [vmem:[#allocation1 + $0x10] sm:$0xff pattern:$0x75316420]  ;;  %917 = vst [vmem:[#allocation1] ss:$2 sm:$0xff] %v4310_v23  ;;  %892 = vrot.lane.b32.xlu1 %v889_v28, %s3934_s12 }
 0x18d   :  { %v3645_v33 = vpack.i.bf16 %v891_v36, %v890_v32  ;;  %919 = vst [vmem:[#allocation1 + $0x10] ss:$2 sm:$0xff] %v906_v29 }
 0x18f   :  { %3646 = vrot.lane.b32.xlu2 %v3645_v33, %s3934_s12 }
 0x193   :  { %v920_v34 = vld.sshfl [vmem:[#allocation1] sm:$0xff pattern:$0x75316420]  ;;  %v921_v35 = vld.sshfl [vmem:[#allocation1 + $0x8] sm:$0xff pattern:$0x75316420] }
 0x194   :  { %944 = vst [vmem:[#allocation1] ss:$2 sm:$0xff] %v4310_v23  ;;  %v922_v37 = vld.sshfl [vmem:[#allocation1 + $0x10] sm:$0xff pattern:$0x75316420] }
 0x195   :  { %v3650_v46 = vpack.i.bf16 %v922_v37, %v921_v35  ;;  %946 = vst [vmem:[#allocation1 + $0x10] ss:$2 sm:$0xff] %v937_v50 }
 0x197   :  { %3651 = vrot.lane.b32.xlu0 %v3650_v46, %s3935_s13  ;;  %923 = vrot.lane.b32.xlu2 %v920_v34, %s3935_s13 }
 0x19b   :  { %v947_v38 = vld.sshfl [vmem:[#allocation1] sm:$0xff pattern:$0x75316420]  ;;  %v948_v48 = vld.sshfl [vmem:[#allocation1 + $0x8] sm:$0xff pattern:$0x75316420] }
 0x19c   :  { %973 = vst [vmem:[#allocation1] ss:$2 sm:$0xff] %v4310_v23  ;;  %950 = vrot.lane.b32.xlu1 %v947_v38, %s3936_s14  ;;  %v949_v63 = vld.sshfl [vmem:[#allocation1 + $0x10] sm:$0xff pattern:$0x75316420] }
 0x19d   :  { %v3655_v30 = vpack.i.bf16 %v949_v63, %v948_v48  ;;  %975 = vst [vmem:[#allocation1 + $0x10] ss:$2 sm:$0xff] %v964_v7 }
 0x19f   :  { %3656 = vrot.lane.b32.xlu2 %v3655_v30, %s3936_s14 }
 0x1a3   :  { %v977_v49 = vld.sshfl [vmem:[#allocation1 + $0x8] sm:$0xff pattern:$0x75316420]  ;;  %v976_v56 = vld.sshfl [vmem:[#allocation1] sm:$0xff pattern:$0x75316420] }
 0x1a4   :  { %v978_v44 = vld.sshfl [vmem:[#allocation1 + $0x10] sm:$0xff pattern:$0x75316420]  ;;  %981 = vrot.lane.b32.xlu0 %v977_v49, %s3937_s15  ;;  %1004 = vst [vmem:[#allocation1] ss:$2 sm:$0xff] %v4310_v23 }
 0x1a5   :  { %983 = vrot.lane.b32.xlu1 %v978_v44, %s3937_s15  ;;  %v638_v23 = vld [vmem:[%s5576_s3] sm:$0xf] }
 0x1a7   :  { %979 = vrot.lane.b32.xlu2 %v976_v56, %s3937_s15 }
 0x1ac   :  { %3661 = vrot.lane.b32.xlu0 %v3660_v58, %s3938_s16 }
 0x1ad   :  { %807 = vrot.lane.b32.xlu1 %v4371_v12, %s3931_s5 }
 0x1af   :  { %838 = vrot.lane.b32.xlu2 %v4374_v60, %s3932_s8 }
 0x1b4   :  { %780 = vrot.lane.b32.xlu0 %v4365_v42, %s3938_s16 }
 0x1b5   :  { %641 = vperm.xlu1 %3665, %v638_v23  }
 0x1d9   :  { %v411_v61 = vpop.f32.mrf.mxu3 }
 0x1da   :  { %v415_v3 = vsel %vm5606_vm13, %v411_v61, 0.0 }
 0x1dd   :  { %v391_v5 = vpop.f32.mrf.mxu2 }
 0x1de   :  { %v866_v2 = vpop.permute.xlu2 %865  ;;  %v414_v57 = vsel %vm5606_vm13, %v391_v5, 0.0  ;;  %v1005_v5 = vld.sshfl [vmem:[#allocation1] sm:$0xff pattern:$0x75316420] }
 0x1df   :  { %v4421_v43 = vadd.f32 %v415_v3, %v414_v57 }
 0x1e9   :  { %v3647_v59 = vpop.permute.xlu2 %3646  ;;  %v4415_v0 = vpop.permute.xlu0 %3631 }
 0x1ea   :  { %v3649_v54 = vunpack.i.h.bf16 %v3647_v59  ;;  %v3648_v40 = vunpack.i.l.bf16 %v3647_v59  ;;  %v3634_v53 = vunpack.i.h.bf16 %v4415_v0  ;;  %v3633_v26 = vunpack.i.l.bf16 %v4415_v0 }
 0x1ec   :  { %v900_v9 = vsel %vm5595_vm10, %v3648_v40, %v3649_v54 }
 0x1ed   :  { %v904_v20 = vsel %vm823_vm15, %v900_v9, 0.0 }
 0x1ee   :  { %v1012_v28 = vrot.slane %v904_v20, 4 }
 0x1f1   :  { %v924_v62 = vpop.permute.xlu2 %923  ;;  %v4417_v52 = vpop.permute.xlu1 %3636 }
 0x1f2   :  { %v3638_v47 = vunpack.i.l.bf16 %v4417_v52  ;;  %v3639_v37 = vunpack.i.h.bf16 %v4417_v52 }
 0x1f4   :  { %v846_v61 = vsel %vm5600_vm11, %v3638_v47, %v3639_v37 }
 0x1f9   :  { %v3657_v4 = vpop.permute.xlu2 %3656  ;;  %v3642_v31 = vpop.permute.xlu0 %3641 }
 0x1fa   :  { %v3658_v8 = vunpack.i.l.bf16 %v3657_v4  ;;  %v3659_v42 = vunpack.i.h.bf16 %v3657_v4  ;;  %v3644_v10 = vunpack.i.h.bf16 %v3642_v31  ;;  %v3643_v11 = vunpack.i.l.bf16 %v3642_v31 }
 0x1fc   :  { %v958_v60 = vsel %vm5594_vm3, %v3658_v8, %v3659_v42  ;;  %v873_v21 = vsel %vm5607_vm12, %v3643_v11, %v3644_v10  ;;  %v872_v32 = vsel %vm5607_vm12, %v866_v2, %v3643_v11 }
 0x1fd   :  { %v962_v35 = vsel %vm5599_vm4, %v958_v60, 0.0  ;;  %v877_v48 = vsel %vm765_vm2, %v873_v21, 0.0  ;;  %v876_v59 = vsel %vm5605_vm8, %v872_v32, 0.0  ;;  %v3443_v60 = vld [vmem:[%s5577_s1 + $0x4] sm:$0xf]  ;;  %v670_v21 = vpop.f32.mrf.mxu2 }
 0x1fe   :  { %v893_v6 = vpop.permute.xlu1 %892  ;;  %v1018_v2 = vrot.slane %v962_v35, 4  ;;  %v1001_v3 = vrot.slane %v877_v48, 4  ;;  %v1000_v54 = vrot.slane %v876_v59, 4 }
 0x1ff   :  { %v899_v45 = vsel %vm5595_vm10, %v893_v6, %v3648_v40  ;;  %vm4464_vm10 = vmand %vm5596_vm5, %vm5597_vm6  ;;  %v1006_v6 = vld.sshfl [vmem:[#allocation1 + $0x8] sm:$0xff pattern:$0x75316420] }
 0x200   :  { %v903_v25 = vsel %vm5597_vm6, %v899_v45, 0.0  ;;  %v1026_v40 = vsel %vm5606_vm13, %v1006_v6, %v1012_v28 }
 0x201   :  { %v980_v51 = vpop.permute.xlu2 %979  ;;  %v1011_v46 = vrot.slane %v903_v25, 4  ;;  %v690_v25 = vpop.f32.mrf.mxu3 }
 0x203   :  { %v1025_v31 = vsel %vm5606_vm13, %v1005_v5, %v1011_v46  ;;  %v3939_v46 = vmov 1  }
 0x204   :  { %3666 = vset.pattern.permute.xlu2 %v3939_v46 }
 0x209   :  { %v3652_v55 = vpop.permute.xlu0 %3651  ;;  %v839_v27 = vpop.permute.xlu2 %838 }
 0x20a   :  { %v3654_v14 = vunpack.i.h.bf16 %v3652_v55  ;;  %v3653_v18 = vunpack.i.l.bf16 %v3652_v55  ;;  %v845_v30 = vsel %vm5600_vm11, %v839_v27, %v3638_v47 }
 0x20c   :  { %v931_v29 = vsel %vm5601_vm14, %v3653_v18, %v3654_v14  ;;  %v930_v34 = vsel %vm5601_vm14, %v924_v62, %v3653_v18  ;;  %vm5683_vm14 = vcmask 261120  }
 0x20d   :  { %v934_v23 = vsel %vm4441_vm7, %v930_v34, 0.0 }
 0x20e   :  { %v951_v39 = vpop.permute.xlu1 %950 }
 0x20f   :  { %v957_v12 = vsel %vm5594_vm3, %v951_v39, %v3658_v8  ;;  %vm4454_vm3 = vmand %vm5599_vm4, %vm765_vm2 }
 0x210   :  { %v961_v17 = vsel %vm5596_vm5, %v957_v12, 0.0  ;;  %vm4489_vm5 = vmand %vm5603_vm0, %vm5597_vm6  ;;  %v935_v44 = vsel %vm4454_vm3, %v931_v29, 0.0  ;;  %vm5678_vm6 = vcmask 261120  }
 0x211   :  { %v1017_v36 = vrot.slane %v961_v17, 4  ;;  %v815_v62 = vsel %vm5678_vm6, %v3633_v26, %v3634_v53  ;;  %v849_v52 = vsel %vm4489_vm5, %v845_v30, 0.0  ;;  %v1028_v4 = vsel %vm5606_vm13, %v935_v44, %v1018_v2 }
 0x212   :  { %v1023_v8 = vsel %vm5606_vm13, %v849_v52, %v1000_v54  ;;  %vm5604_vm6 = vcmask 277504  }
 0x213   :  { %v1027_v0 = vsel %vm5606_vm13, %v934_v23, %v1017_v36 }
 0x216   :  { %v982_v50 = vpop.permute.xlu0 %981 }
 0x217   :  { %v984_v7 = vpop.permute.xlu1 %983  ;;  %v986_v38 = vsel %vm5598_vm1, %v980_v51, %v982_v50 }
 0x218   :  { %v987_v49 = vsel %vm5598_vm1, %v982_v50, %v984_v7  ;;  %v990_v56 = vsel %vm4464_vm10, %v986_v38, 0.0  ;;  %vm5602_vm1 = vcmp.ge.s32.totalorder %v4065_v15, 2  ;;  %v1031_v7 = vld [vmem:[%s5576_s3] sm:$0xf]  ;;  %v4568_v38 = vld [vmem:[%s5575_s0 + $0x8] sm:$0xff] }
 0x219   :  { %v991_v58 = vsel %vm4474_vm9, %v987_v49, 0.0  ;;  %3444 = vmatpush.msk.msra.mxu2 %vm5606_vm13, %v990_v56  ;;  %vm4517_vm4 = vmand %vm5602_vm1, %vm823_vm15  ;;  %v819_v39 = vsel %vm5602_vm1, %v815_v62, 0.0  ;;  %1034 = vperm.xlu2 %3666, %v1031_v7  }
 0x21a   :  { %3446 = vmatpush.msk.msra.mxu3 %vm5606_vm13, %v991_v58  ;;  %v850_v55 = vsel %vm4517_vm4, %v846_v61, 0.0  ;;  %vm4534_vm11 = vmand %vm5602_vm1, %vm765_vm2  ;;  %v995_v18 = vrot.slane %v819_v39, 4  ;;  %vm5686_vm1 = vcmask 293888  }
 0x21b   :  { %1058 = vmatpush.msra.mxu2 %v1027_v0  ;;  %v1024_v11 = vsel %vm5606_vm13, %v850_v55, %v1001_v3 }
 0x21c   :  { %1078 = vmatpush.msra.mxu3 %v1028_v4 }
 0x21d   :  { %1059 = vmatpush.msra.mxu2 %v1025_v31 }
 0x21e   :  { %1079 = vmatpush.msra.mxu3 %v1026_v40  ;;  %v3662_v51 = vpop.permute.xlu0 %3661  ;;  %v1243_v40 = vld [vmem:[#allocation2 + $0x1c] sm:$0xf] }
 0x21f   :  { %v808_v42 = vpop.permute.xlu1 %807  ;;  %v3664_v9 = vunpack.i.h.bf16 %v3662_v51  ;;  %v3663_v10 = vunpack.i.l.bf16 %v3662_v51  ;;  %1060 = vmatpush.msra.mxu2 %v1023_v8 }
 0x220   :  { %1080 = vmatpush.msra.mxu3 %v1024_v11  ;;  %v814_v45 = vsel %vm5683_vm14, %v808_v42, %v3633_v26  ;;  %vm4552_vm14 = vmand %vm5603_vm0, %vm5605_vm8  ;;  %v1265_v42 = vld [vmem:[#allocation2 + $0x1c] sm:$0xf]  ;;  %vm5692_vm8 = vcmask 801792  }
 0x221   :  { %v788_v14 = vsel %vm5604_vm6, %v3663_v10, %v3664_v9  ;;  %v818_v53 = vsel %vm5603_vm0, %v814_v45, 0.0  ;;  %vm5687_vm0 = vmmov %vm5686_vm1 }
 0x222   :  { %v792_v20 = vsel %vm4534_vm11, %v788_v14, 0.0  ;;  %v994_v27 = vrot.slane %v818_v53, 4  ;;  %v1287_v14 = vld [vmem:[#allocation2 + $0x1c] sm:$0xf] }
 0x223   :  { %v1022_v17 = vsel %vm5606_vm13, %v792_v20, %v995_v18  ;;  %v1309_v53 = vld [vmem:[#allocation2 + $0x1c] sm:$0xf] }
 0x224   :  { %1081 = vmatpush.msra.mxu3 %v1022_v17 }
 0x225   :  { %3447 = vmatmul.msk.f32.vlgmr.msra.gmra.mxu3 %vm5686_vm1, %v3443_v60  ;;  %vm5688_vm1 = vcmask 1031168  }
 0x226   :  { %v781_v47 = vpop.permute.xlu0 %780 }
 0x227   :  { %v642_v29 = vpop.permute.xlu1 %641  ;;  %v787_v28 = vsel %vm5604_vm6, %v781_v47, %v3663_v10 }
 0x228   :  { %v671_v32 = vadd.f32 %v670_v21, %v642_v29  ;;  %v691_v36 = vadd.f32 %v690_v25, %v642_v29  ;;  %v791_v50 = vsel %vm4552_vm14, %v787_v28, 0.0 }
 0x229   :  { %v1021_v34 = vsel %vm5606_vm13, %v791_v50, %v994_v27 }
 0x22a   :  { %v693_v35 = vmax.f32 %v671_v32, 0.0  ;;  %v694_v37 = vmax.f32 %v691_v36, 0.0  ;;  %1061 = vmatpush.msra.mxu2 %v1021_v34 }
 0x22b   :  { %3445 = vmatmul.msk.f32.vlgmr.msra.gmra.mxu2 %vm5687_vm0, %v3443_v60  ;;  %vm5689_vm0 = vmmov %vm5688_vm1 }
 0x22c   :  { %v697_v48 = vrot.slane %v694_v37, 4  ;;  %3439 = vmatpush.msk.msrb.mxu0 %vm5606_vm13, %v693_v35  ;;  %3441 = vmatpush.msk.msrb.mxu1 %vm5606_vm13, %v694_v37 }
 0x22e   :  { %v4573_v30 = vsel %vm5606_vm13, %v693_v35, %v697_v48 }
 0x22f   :  { %v4577_v49 = vadd.f32 %v4568_v38, %v4573_v30 }
 0x231   :  { %1153 = vst [vmem:[#allocation2 + $0x14] sm:$0xff] %v4577_v49 }
 0x238   :  { %v1154_v56 = vld [vmem:[#allocation2 + $0x10] sm:$0xff]  ;;  %v1155_v44 = vld [vmem:[#allocation2 + $0x18] sm:$0xf] }
 0x239   :  { %1158 = vst [vmem:[#allocation1] ss:$2 sm:$0xff] %v1154_v56  ;;  %v1177_v58 = vld [vmem:[#allocation2 + $0x18] sm:$0xf] }
 0x23a   :  { %1160 = vst [vmem:[#allocation1 + $0x10] ss:$2 sm:$0xff] %v1155_v44  ;;  %v1199_v62 = vld [vmem:[#allocation2 + $0x18] sm:$0xf] }
 0x23b   :  { %v1221_v61 = vld [vmem:[#allocation2 + $0x18] sm:$0xf] }
 0x240   :  { %v4580_v23 = vld.sshfl [vmem:[#allocation1] sm:$0xff pattern:$0x75316420]  ;;  %v4582_v2 = vld.sshfl [vmem:[#allocation1 + $0x8] sm:$0xff pattern:$0x75316420] }
 0x241   :  { %v4584_v59 = vld.sshfl [vmem:[#allocation1 + $0x10] sm:$0xff pattern:$0x75316420]  ;;  %1180 = vst [vmem:[#allocation1] ss:$2 sm:$0xff] %v1154_v56 }
 0x242   :  { %1182 = vst [vmem:[#allocation1 + $0x10] ss:$2 sm:$0xff] %v1177_v58  ;;  %v3697_v36 = vpack.i.bf16 %v4584_v59, %v4582_v2 }
 0x248   :  { %v1184_v0 = vld.sshfl [vmem:[#allocation1 + $0x8] sm:$0xff pattern:$0x75316420]  ;;  %v1183_v52 = vld.sshfl [vmem:[#allocation1] sm:$0xff pattern:$0x75316420] }
 0x249   :  { %v1185_v4 = vld.sshfl [vmem:[#allocation1 + $0x10] sm:$0xff pattern:$0x75316420]  ;;  %1202 = vst [vmem:[#allocation1] ss:$2 sm:$0xff] %v1154_v56 }
 0x24a   :  { %1204 = vst [vmem:[#allocation1 + $0x10] ss:$2 sm:$0xff] %v1199_v62  ;;  %v3667_v5 = vpack.i.bf16 %v1185_v4, %v1184_v0 }
 0x24c   :  { %3668 = vrot.lane.b32.xlu1 %v3667_v5, %s3931_s5 }
 0x250   :  { %v1206_v3 = vld.sshfl [vmem:[#allocation1 + $0x8] sm:$0xff pattern:$0x75316420]  ;;  %v1205_v31 = vld.sshfl [vmem:[#allocation1] sm:$0xff pattern:$0x75316420] }
 0x251   :  { %v1207_v6 = vld.sshfl [vmem:[#allocation1 + $0x10] sm:$0xff pattern:$0x75316420]  ;;  %1224 = vst [vmem:[#allocation1] ss:$2 sm:$0xff] %v1154_v56  ;;  %v4615_v56 = vld [vmem:[%s5575_s0] sm:$0xff] }
 0x252   :  { %1226 = vst [vmem:[#allocation1 + $0x10] ss:$2 sm:$0xff] %v1221_v61  ;;  %v3672_v54 = vpack.i.bf16 %v1207_v6, %v1206_v3 }
 0x254   :  { %3673 = vrot.lane.b32.xlu2 %v3672_v54, %s3932_s8 }
 0x258   :  { %v1227_v51 = vld.sshfl [vmem:[#allocation1] sm:$0xff pattern:$0x75316420]  ;;  %v1228_v8 = vld.sshfl [vmem:[#allocation1 + $0x8] sm:$0xff pattern:$0x75316420] }
 0x259   :  { %1230 = vrot.lane.b32.xlu0 %v1227_v51, %s3933_s11  ;;  %v1229_v55 = vld.sshfl [vmem:[#allocation1 + $0x10] sm:$0xff pattern:$0x75316420]  ;;  %1246 = vst [vmem:[#allocation1] ss:$2 sm:$0xff] %v4577_v49 }
 0x25a   :  { %v3677_v39 = vpack.i.bf16 %v1229_v55, %v1228_v8  ;;  %1248 = vst [vmem:[#allocation1 + $0x10] ss:$2 sm:$0xff] %v1243_v40 }
 0x25c   :  { %3678 = vrot.lane.b32.xlu1 %v3677_v39, %s3933_s11 }
 0x260   :  { %v1249_v9 = vld.sshfl [vmem:[#allocation1] sm:$0xff pattern:$0x75316420]  ;;  %v1250_v10 = vld.sshfl [vmem:[#allocation1 + $0x8] sm:$0xff pattern:$0x75316420] }
 0x261   :  { %1252 = vrot.lane.b32.xlu2 %v1249_v9, %s3934_s12  ;;  %v1251_v11 = vld.sshfl [vmem:[#allocation1 + $0x10] sm:$0xff pattern:$0x75316420]  ;;  %1268 = vst [vmem:[#allocation1] ss:$2 sm:$0xff] %v4577_v49 }
 0x262   :  { %v3682_v45 = vpack.i.bf16 %v1251_v11, %v1250_v10  ;;  %1270 = vst [vmem:[#allocation1 + $0x10] ss:$2 sm:$0xff] %v1265_v42 }
 0x264   :  { %3683 = vrot.lane.b32.xlu0 %v3682_v45, %s3934_s12 }
 0x268   :  { %v1272_v18 = vld.sshfl [vmem:[#allocation1 + $0x8] sm:$0xff pattern:$0x75316420]  ;;  %v1271_v20 = vld.sshfl [vmem:[#allocation1] sm:$0xff pattern:$0x75316420] }
 0x269   :  { %v1273_v60 = vld.sshfl [vmem:[#allocation1 + $0x10] sm:$0xff pattern:$0x75316420]  ;;  %1290 = vst [vmem:[#allocation1] ss:$2 sm:$0xff] %v4577_v49 }
 0x26a   :  { %v3687_v17 = vpack.i.bf16 %v1273_v60, %v1272_v18  ;;  %1292 = vst [vmem:[#allocation1 + $0x10] ss:$2 sm:$0xff] %v1287_v14  ;;  %v1608_v14 = vld [vmem:[#allocation2 + $0xc] sm:$0xf] }
 0x26c   :  { %3688 = vrot.lane.b32.xlu1 %v3687_v17, %s3935_s13  ;;  %1274 = vrot.lane.b32.xlu0 %v1271_v20, %s3935_s13 }
 0x270   :  { %v1293_v21 = vld.sshfl [vmem:[#allocation1] sm:$0xff pattern:$0x75316420]  ;;  %v1294_v25 = vld.sshfl [vmem:[#allocation1 + $0x8] sm:$0xff pattern:$0x75316420] }
 0x271   :  { %1296 = vrot.lane.b32.xlu2 %v1293_v21, %s3936_s14  ;;  %v1295_v47 = vld.sshfl [vmem:[#allocation1 + $0x10] sm:$0xff pattern:$0x75316420]  ;;  %1312 = vst [vmem:[#allocation1] ss:$2 sm:$0xff] %v4577_v49 }
 0x272   :  { %v3692_v27 = vpack.i.bf16 %v1295_v47, %v1294_v25  ;;  %1314 = vst [vmem:[#allocation1 + $0x10] ss:$2 sm:$0xff] %v1309_v53 }
 0x273   :  { %v1035_v50 = vpop.permute.xlu2 %1034 }
 0x274   :  { %3693 = vrot.lane.b32.xlu0 %v3692_v27, %s3936_s14 }
 0x278   :  { %v1316_v29 = vld.sshfl [vmem:[#allocation1 + $0x8] sm:$0xff pattern:$0x75316420]  ;;  %v1315_v28 = vld.sshfl [vmem:[#allocation1] sm:$0xff pattern:$0x75316420] }
 0x279   :  { %v1317_v32 = vld.sshfl [vmem:[#allocation1 + $0x10] sm:$0xff pattern:$0x75316420]  ;;  %1320 = vrot.lane.b32.xlu1 %v1316_v29, %s3937_s15  ;;  %1342 = vst [vmem:[#allocation1] ss:$2 sm:$0xff] %v4577_v49 }
 0x27a   :  { %1322 = vrot.lane.b32.xlu2 %v1317_v32, %s3937_s15  ;;  %v1635_v32 = vld [vmem:[#allocation2 + $0xc] sm:$0xf] }
 0x27c   :  { %1318 = vrot.lane.b32.xlu0 %v1315_v28, %s3937_s15 }
 0x280   :  { %v4628_v2 = vld.sshfl [vmem:[#allocation1 + $0x8] sm:$0xff pattern:$0x75316420] }
 0x281   :  { %3698 = vrot.lane.b32.xlu1 %v3697_v36, %s3938_s16 }
 0x282   :  { %1186 = vrot.lane.b32.xlu2 %v1183_v52, %s3931_s5 }
 0x284   :  { %1208 = vrot.lane.b32.xlu0 %v1205_v31, %s3932_s8  ;;  %s3944_s8 = smov 60  }
 0x289   :  { %1164 = vrot.lane.b32.xlu1 %v4580_v23, %s3938_s16  ;;  %v4626_v23 = vld.sshfl [vmem:[#allocation1] sm:$0xff pattern:$0x75316420] }
 0x2a8   :  { %v1083_v34 = vpop.f32.mrf.mxu3 }
 0x2a9   :  { %v1084_v35 = vadd.f32 %v1083_v34, %v1035_v50 }
 0x2ab   :  { %v1087_v37 = vmax.f32 %v1084_v35, 0.0 }
 0x2ad   :  { %3451 = vmatpush.msk.msra.mxu1 %vm5606_vm13, %v1087_v37  ;;  %v1090_v7 = vrot.slane %v1087_v37, 4 }
 0x2ae   :  { %v1063_v46 = vpop.f32.mrf.mxu2  ;;  %v4640_v40 = vpop.permute.xlu2 %3673 }
 0x2af   :  { %v1064_v48 = vadd.f32 %v1063_v46, %v1035_v50 }
 0x2b1   :  { %v1086_v49 = vmax.f32 %v1064_v48, 0.0 }
 0x2b3   :  { %v4618_v44 = vsel %vm5606_vm13, %v1086_v49, %v1090_v7  ;;  %3449 = vmatpush.msk.msra.mxu0 %vm5606_vm13, %v1086_v49  ;;  %vm5693_vm13 = vcmp.lt.s32.totalorder %v4065_v15, 14 }
 0x2b4   :  { %v4623_v58 = vadd.f32 %v4615_v56, %v4618_v44 }
 0x2b6   :  { %1489 = vst [vmem:[#allocation2 + $0x4] sm:$0xff] %v4623_v58 }
 0x2bb   :  { %v1253_v11 = vpop.permute.xlu2 %1252 }
 0x2bd   :  { %v1490_v59 = vld [vmem:[#allocation2] sm:$0xff]  ;;  %v1491_v62 = vld [vmem:[#allocation2 + $0x8] sm:$0xf] }
 0x2be   :  { %1504 = vst [vmem:[#allocation1] ss:$2 sm:$0xff] %v1490_v59  ;;  %v1524_v0 = vld [vmem:[#allocation2 + $0x8] sm:$0xf]  ;;  %v4643_v8 = vpop.permute.xlu1 %3668 }
 0x2bf   :  { %1506 = vst [vmem:[#allocation1 + $0x10] ss:$2 sm:$0xff] %v1491_v62  ;;  %v1551_v61 = vld [vmem:[#allocation2 + $0x8] sm:$0xf] }
 0x2c0   :  { %v1582_v55 = vld [vmem:[#allocation2 + $0x8] sm:$0xf] }
 0x2c5   :  { %v4630_v52 = vld.sshfl [vmem:[#allocation1] sm:$0xff pattern:$0x75316420]  ;;  %v4632_v4 = vld.sshfl [vmem:[#allocation1 + $0x8] sm:$0xff pattern:$0x75316420] }
 0x2c6   :  { %1531 = vst [vmem:[#allocation1] ss:$2 sm:$0xff] %v1490_v59  ;;  %v4634_v5 = vld.sshfl [vmem:[#allocation1 + $0x10] sm:$0xff pattern:$0x75316420] }
 0x2c7   :  { %1533 = vst [vmem:[#allocation1 + $0x10] ss:$2 sm:$0xff] %v1524_v0  ;;  %v3676_v0 = vunpack.i.h.bf16 %v4640_v40  ;;  %v3742_v26 = vpack.i.bf16 %v4634_v5, %v4632_v4 }
 0x2cb   :  { %v4638_v6 = vpop.permute.xlu0 %1230  ;;  %v1297_v21 = vpop.permute.xlu2 %1296 }
 0x2cd   :  { %v1535_v3 = vld.sshfl [vmem:[#allocation1 + $0x8] sm:$0xff pattern:$0x75316420]  ;;  %v4636_v31 = vld.sshfl [vmem:[#allocation1] sm:$0xff pattern:$0x75316420] }
 0x2ce   :  { %v1536_v54 = vld.sshfl [vmem:[#allocation1 + $0x10] sm:$0xff pattern:$0x75316420]  ;;  %1562 = vst [vmem:[#allocation1] ss:$2 sm:$0xff] %v1490_v59  ;;  %v3679_v45 = vpop.permute.xlu1 %3678 }
 0x2cf   :  { %v3702_v51 = vpack.i.bf16 %v1536_v54, %v1535_v3  ;;  %1564 = vst [vmem:[#allocation1 + $0x10] ss:$2 sm:$0xff] %v1551_v61  ;;  %v3681_v25 = vunpack.i.h.bf16 %v3679_v45  ;;  %v3680_v47 = vunpack.i.l.bf16 %v3679_v45  ;;  %v3675_v61 = vunpack.i.l.bf16 %v4640_v40  ;;  %v3454_v40 = vld [vmem:[%s5577_s1 + $0x4] sm:$0xf] }
 0x2d0   :  { %v3671_v3 = vunpack.i.h.bf16 %v4643_v8 }
 0x2d1   :  { %3703 = vrot.lane.b32.xlu1 %v3702_v51, %s3940_s27  ;;  %v1237_v36 = vsel %vm5607_vm12, %v3680_v47, %v3681_v25  ;;  %vm5694_vm12 = vcmp.lt.s32.totalorder %v4079_v24, 14 }
 0x2d2   :  { %v1241_v54 = vsel %vm765_vm2, %v1237_v36, 0.0  ;;  %vm5695_vm2 = vcmask 769024  }
 0x2d4   :  { %v1323_v51 = vpop.permute.xlu2 %1322 }
 0x2d5   :  { %v4645_v39 = vld.sshfl [vmem:[#allocation1] sm:$0xff pattern:$0x75316420]  ;;  %v4647_v42 = vld.sshfl [vmem:[#allocation1 + $0x8] sm:$0xff pattern:$0x75316420] }
 0x2d6   :  { %v3684_v9 = vpop.permute.xlu0 %3683  ;;  %1589 = vst [vmem:[#allocation1] ss:$2 sm:$0xff] %v1490_v59  ;;  %v4649_v10 = vld.sshfl [vmem:[#allocation1 + $0x10] sm:$0xff pattern:$0x75316420] }
 0x2d7   :  { %1591 = vst [vmem:[#allocation1 + $0x10] ss:$2 sm:$0xff] %v1582_v55  ;;  %v3686_v27 = vunpack.i.h.bf16 %v3684_v9  ;;  %v3685_v29 = vunpack.i.l.bf16 %v3684_v9 }
 0x2d9   :  { %v1259_v35 = vsel %vm5688_vm1, %v3685_v29, %v3686_v27  ;;  %v1258_v55 = vsel %vm5689_vm0, %v1253_v11, %v3685_v29  ;;  %vm5690_vm1 = vcmask 785408   ;;  %vm5702_vm0 = vmmov %vm5695_vm2 }
 0x2da   :  { %vm5691_vm6 = vmmov %vm5690_vm1 }
 0x2dd   :  { %v1592_v18 = vld.sshfl [vmem:[#allocation1] sm:$0xff pattern:$0x75316420]  ;;  %v1593_v20 = vld.sshfl [vmem:[#allocation1 + $0x8] sm:$0xff pattern:$0x75316420] }
 0x2de   :  { %v1275_v60 = vpop.permute.xlu0 %1274  ;;  %v1594_v17 = vld.sshfl [vmem:[#allocation1 + $0x10] sm:$0xff pattern:$0x75316420]  ;;  %v3707_v53 = vpack.i.bf16 %v1593_v20, %v1592_v18  ;;  %1615 = vst [vmem:[#allocation1] ss:$2 sm:$0xff] %v4623_v58  ;;  %v3689_v28 = vpop.permute.xlu1 %3688  ;;  %v3670_v18 = vunpack.i.l.bf16 %v4643_v8 }
 0x2df   :  { %1599 = vrot.lane.b32.xlu0 %v1594_v17, %s3941_s28  ;;  %1617 = vst [vmem:[#allocation1 + $0x10] ss:$2 sm:$0xff] %v1608_v14  ;;  %v3691_v37 = vunpack.i.h.bf16 %v3689_v28  ;;  %v3690_v46 = vunpack.i.l.bf16 %v3689_v28  ;;  %v1263_v14 = vsel %vm823_vm15, %v1259_v35, 0.0  ;;  %v1339_v28 = vrot.slane %v1241_v54, 4  ;;  %vm5699_vm15 = vmmov %vm5692_vm8 }
 0x2e0   :  { %3708 = vrot.lane.b32.xlu2 %v3707_v53, %s3941_s28 }
 0x2e1   :  { %v1281_v20 = vsel %vm5692_vm8, %v3690_v46, %v3691_v37  ;;  %vm5700_vm8 = vcmask 1043456  }
 0x2e2   :  { %v1285_v36 = vsel %vm4454_vm3, %v1281_v20, 0.0  ;;  %vm5703_vm3 = vmmov %vm5700_vm8 }
 0x2e5   :  { %v1618_v50 = vld.sshfl [vmem:[#allocation1] sm:$0xff pattern:$0x75316420]  ;;  %v1619_v34 = vld.sshfl [vmem:[#allocation1 + $0x8] sm:$0xff pattern:$0x75316420] }
 0x2e6   :  { %v3694_v7 = vpop.permute.xlu0 %3693  ;;  %v3712_v48 = vpack.i.bf16 %v1619_v34, %v1618_v50  ;;  %1646 = vst [vmem:[#allocation1] ss:$2 sm:$0xff] %v4623_v58  ;;  %v1620_v49 = vld.sshfl [vmem:[#allocation1 + $0x10] sm:$0xff pattern:$0x75316420] }
 0x2e7   :  { %v3696_v59 = vunpack.i.h.bf16 %v3694_v7  ;;  %v3695_v62 = vunpack.i.l.bf16 %v3694_v7  ;;  %1648 = vst [vmem:[#allocation1 + $0x10] ss:$2 sm:$0xff] %v1635_v32  ;;  %v1665_v32 = vld [vmem:[#allocation2 + $0xc] sm:$0xf]  ;;  %v1280_v7 = vsel %vm5699_vm15, %v1275_v60, %v3690_v46  ;;  %vm5712_vm15 = vcmask 277504  }
 0x2e8   :  { %3713 = vrot.lane.b32.xlu1 %v3712_v48, %s3942_s29  ;;  %1625 = vrot.lane.b32.xlu2 %v1620_v49, %s3942_s29 }
 0x2e9   :  { %v1302_v9 = vsel %vm5690_vm1, %v1297_v21, %v3695_v62  ;;  %v1303_v45 = vsel %vm5691_vm6, %v3695_v62, %v3696_v59  ;;  %v1350_v21 = vrot.slane %v1263_v14, 4  ;;  %vm5696_vm6 = vcmp.lt.s32.totalorder %v4061_v13, 14  ;;  %vm5704_vm1 = vmmov %vm5703_vm3 }
 0x2ea   :  { %v1307_v17 = vsel %vm5693_vm13, %v1303_v45, 0.0  ;;  %v1306_v53 = vsel %vm5694_vm12, %v1302_v9, 0.0  ;;  %v1262_v29 = vsel %vm5696_vm6, %v1258_v55, 0.0  ;;  %vm5697_vm13 = vcmask 261120   ;;  %vm5706_vm6 = vmmov %vm5704_vm1 }
 0x2eb   :  { %v1321_v25 = vpop.permute.xlu1 %1320  ;;  %v1356_v27 = vrot.slane %v1307_v17, 4  ;;  %v1355_v34 = vrot.slane %v1306_v53, 4  ;;  %v1193_v35 = vsel %vm5697_vm13, %v3670_v18, %v3671_v3  ;;  %vm5698_vm12 = vcmask 15360   ;;  %vm5709_vm13 = vmmov %vm5704_vm1  ;;  %v1691_v17 = vld [vmem:[#allocation2 + $0xc] sm:$0xf] }
 0x2ec   :  { %v1325_v11 = vsel %vm5695_vm2, %v1321_v25, %v1323_v51  ;;  %v1236_v37 = vsel %vm5698_vm12, %v4638_v6, %v3680_v47  ;;  %v1349_v60 = vrot.slane %v1262_v29, 4  ;;  %v1284_v47 = vsel %vm4441_vm7, %v1280_v7, 0.0  ;;  %vm5705_vm2 = vmmov %vm5704_vm1  ;;  %v1187_v51 = vpop.permute.xlu2 %1186 }
 0x2ed   :  { %v1329_v8 = vsel %vm4474_vm9, %v1325_v11, 0.0  ;;  %v1649_v50 = vld.sshfl [vmem:[#allocation1] sm:$0xff pattern:$0x75316420]  ;;  %vm5701_vm9 = vcmask 244736   ;;  %v1366_v62 = vsel %vm5703_vm3, %v1285_v36, %v1356_v27  ;;  %v1365_v46 = vsel %vm5706_vm6, %v1284_v47, %v1355_v34  ;;  %vm5710_vm12 = vmmov %vm5704_vm1 }
 0x2ee   :  { %v1319_v48 = vpop.permute.xlu0 %1318  ;;  %3457 = vmatpush.msk.msrb.mxu3 %vm5700_vm8, %v1329_v8  ;;  %v1651_v49 = vld.sshfl [vmem:[#allocation1 + $0x10] sm:$0xff pattern:$0x75316420]  ;;  %v1650_v59 = vld.sshfl [vmem:[#allocation1 + $0x8] sm:$0xff pattern:$0x75316420]  ;;  %v1215_v33 = vsel %vm5701_vm9, %v3675_v61, %v3676_v0  ;;  %v1363_v14 = vsel %vm5710_vm12, %v4626_v23, %v1349_v60  ;;  %vm5713_vm8 = vmmov %vm5701_vm9 }
 0x2ef   :  { %v1324_v41 = vsel %vm5702_vm0, %v1319_v48, %v1321_v25  ;;  %v3722_v3 = vpack.i.bf16 %v4630_v52, %v1651_v49  ;;  %v3717_v54 = vpack.i.bf16 %v1650_v59, %v1649_v50  ;;  %1672 = vst [vmem:[#allocation1] ss:$2 sm:$0xff] %v4623_v58  ;;  %v1364_v52 = vsel %vm5705_vm2, %v4628_v2, %v1350_v21  ;;  %vm5714_vm9 = vmmov %vm5704_vm1 }
 0x2f0   :  { %v1328_v6 = vsel %vm4464_vm10, %v1324_v41, 0.0  ;;  %1415 = vmatpush.msrb.mxu3 %v1366_v62  ;;  %1674 = vst [vmem:[#allocation1 + $0x10] ss:$2 sm:$0xff] %v1665_v32  ;;  %v1219_v1 = vsel %vm4517_vm4, %v1215_v33, 0.0  ;;  %vm5707_vm10 = vcmp.ge.s32.totalorder %v4061_v13, 2  ;;  %vm5708_vm7 = vcmp.ge.s32.totalorder %v4065_v15, 2  ;;  %vm5718_vm3 = vmmov %vm5712_vm15 }
 0x2f1   :  { %3455 = vmatpush.msk.msrb.mxu2 %vm5704_vm1, %v1328_v6  ;;  %3723 = vrot.lane.b32.xlu1 %v3722_v3, %s3943_s30  ;;  %v1240_v22 = vsel %vm5707_vm10, %v1236_v37, 0.0  ;;  %v1197_v0 = vsel %vm5708_vm7, %v1193_v35, 0.0  ;;  %v1362_v9 = vsel %vm5709_vm13, %v1219_v1, %v1339_v28  ;;  %vm5711_vm4 = vcmask 261120  }
 0x2f2   :  { %3718 = vrot.lane.b32.xlu0 %v3717_v54, %s3943_s30  ;;  %1416 = vmatpush.msrb.mxu3 %v1364_v52  ;;  %v1338_v57 = vrot.slane %v1240_v22, 4  ;;  %v1333_v20 = vrot.slane %v1197_v0, 4  ;;  %v1192_v53 = vsel %vm5711_vm4, %v1187_v51, %v3670_v18  ;;  %vm5715_vm0 = vcmp.ge.s32.totalorder %v4079_v24, 2 }
 0x2f3   :  { %1395 = vmatpush.msrb.mxu2 %v1365_v46  ;;  %v3699_v55 = vpop.permute.xlu1 %3698  ;;  %v1196_v12 = vsel %vm5715_vm0, %v1192_v53, 0.0  ;;  %v3737_v49 = vpack.i.bf16 %v4647_v42, %v4645_v39  ;;  %v702_v42 = vld [vmem:[%s5578_s2] sm:$0xf]  ;;  %vm1543_vm10 = vcmask 523264   ;;  %vm5611_vm7 = vcmask 1014784  }
 0x2f4   :  { %v3701_v2 = vunpack.i.h.bf16 %v3699_v55  ;;  %v3700_v45 = vunpack.i.l.bf16 %v3699_v55  ;;  %1417 = vmatpush.msrb.mxu3 %v1362_v9  ;;  %vm5609_vm13 = vcmp.lt.s32.totalorder %v4079_v24, 12  ;;  %vm5616_vm12 = vcmp.ge.s32.totalorder %v4061_v13, 4 }
 0x2f5   :  { %1396 = vmatpush.msrb.mxu2 %v1363_v14  ;;  %vm5617_vm4 = vcmask 556032   ;;  %vm5613_vm0 = vcmp.ge.s32.totalorder %v4079_v24, 4 }
 0x2f6   :  { %v1209_v25 = vpop.permute.xlu0 %1208  ;;  %v1171_v27 = vsel %vm5712_vm15, %v3700_v45, %v3701_v2  ;;  %v1675_v11 = vld.sshfl [vmem:[#allocation1] sm:$0xff pattern:$0x75316420]  ;;  %v1676_v21 = vld.sshfl [vmem:[#allocation1 + $0x8] sm:$0xff pattern:$0x75316420] }
 0x2f7   :  { %v1214_v29 = vsel %vm5713_vm8, %v1209_v25, %v3675_v61  ;;  %v1175_v28 = vsel %vm4534_vm11, %v1171_v27, 0.0  ;;  %v1677_v23 = vld.sshfl [vmem:[#allocation1 + $0x10] sm:$0xff pattern:$0x75316420]  ;;  %v3727_v32 = vpack.i.bf16 %v1676_v21, %v1675_v11  ;;  %1700 = vst [vmem:[#allocation1] ss:$2 sm:$0xff] %v4623_v58  ;;  %vm5716_vm11 = vmmov %vm5704_vm1 }
 0x2f8   :  { %v1218_v8 = vsel %vm4489_vm5, %v1214_v29, 0.0  ;;  %v1360_v18 = vsel %vm5714_vm9, %v1175_v28, %v1333_v20  ;;  %v3732_v36 = vpack.i.bf16 %v4636_v31, %v1677_v23  ;;  %1702 = vst [vmem:[#allocation1 + $0x10] ss:$2 sm:$0xff] %v1691_v17  ;;  %vm5717_vm5 = vcmask 293888  }
 0x2f9   :  { %v1361_v61 = vsel %vm5716_vm11, %v1218_v8, %v1338_v57  ;;  %1418 = vmatpush.msrb.mxu3 %v1360_v18  ;;  %3728 = vrot.lane.b32.xlu2 %v3727_v32, %s3940_s27  ;;  %v1332_v31 = vrot.slane %v1196_v12, 4  ;;  %vm5719_vm2 = vmmov %vm5717_vm5  ;;  %vm5608_vm15 = vcmp.lt.s32.totalorder %v4061_v13, 12  ;;  %vm5612_vm8 = vcmask 490496  }
 0x2fa   :  { %1397 = vmatpush.msrb.mxu2 %v1361_v61  ;;  %3733 = vrot.lane.b32.xlu0 %v3732_v36, %s3940_s27  ;;  %vm1553_vm9 = vcmp.lt.s32.totalorder %v4067_v16, 12  ;;  %vm4789_vm11 = vmand %vm5609_vm13, %vm5616_vm12 }
 0x2fb   :  { %3458 = vmatmul.msk.f32.vlgmr.msrb.gmra.mxu3 %vm5717_vm5, %v3454_v40  ;;  %v1165_v63 = vpop.permute.xlu1 %1164  ;;  %vm4800_vm5 = vmand %vm5609_vm13, %vm5608_vm15 }
 0x2fc   :  { %v1170_v50 = vsel %vm5718_vm3, %v1165_v63, %v3700_v45  ;;  %vm5610_vm3 = vcmp.lt.s32.totalorder %v4065_v15, 12 }
 0x2fd   :  { %v1174_v34 = vsel %vm4552_vm14, %v1170_v50, 0.0  ;;  %vm5720_vm14 = vcmask 31744  }
 0x2fe   :  { %v1359_v35 = vsel %vm5704_vm1, %v1174_v34, %v1332_v31  ;;  %v1703_v37 = vld.sshfl [vmem:[#allocation1] sm:$0xff pattern:$0x75316420]  ;;  %v1704_v7 = vld.sshfl [vmem:[#allocation1 + $0x8] sm:$0xff pattern:$0x75316420]  ;;  %3442 = vmatmul.msk.f32.vlgmr.msrb.gmra.mxu1 %vm5720_vm14, %v702_v42  ;;  %vm5721_vm6 = vmmov %vm5720_vm14 }
 0x2ff   :  { %1398 = vmatpush.msrb.mxu2 %v1359_v35  ;;  %1706 = vrot.lane.b32.xlu1 %v1703_v37, %s3944_s8  ;;  %v1705_v48 = vld.sshfl [vmem:[#allocation1 + $0x10] sm:$0xff pattern:$0x75316420]  ;;  %1730 = vst [vmem:[#allocation1] ss:$2 sm:$0xff] %v4623_v58  ;;  %vm5726_vm1 = vmmov %vm5721_vm6  ;;  %v3945_v34 = vmov 2  }
 0x300   :  { %3456 = vmatmul.msk.f32.vlgmr.msrb.gmra.mxu2 %vm5719_vm2, %v3454_v40  ;;  %v1368_v58 = vld [vmem:[%s5576_s3] sm:$0xf]  ;;  %3440 = vmatmul.msk.f32.vlgmr.msrb.gmra.mxu0 %vm5721_vm6, %v702_v42  ;;  %vm5615_vm2 = vcmp.ge.s32.totalorder %v4067_v16, 4  ;;  %vm4819_vm14 = vmand %vm5613_vm0, %vm5608_vm15 }
 0x301   :  { %1708 = vrot.lane.b32.xlu2 %v1704_v7, %s3944_s8  ;;  %vm4829_vm6 = vmand %vm5610_vm3, %vm1553_vm9  ;;  %3747 = vset.pattern.permute.xlu0 %v3945_v34  ;;  %v1757_v35 = vld [vmem:[%s5576_s3] sm:$0xf] }
 0x302   :  { %1710 = vrot.lane.b32.xlu0 %v1705_v48, %s3944_s8 }
 0x307   :  { %3743 = vrot.lane.b32.xlu1 %v3742_v26, %s3943_s30 }
 0x309   :  { %3738 = vrot.lane.b32.xlu2 %v3737_v49, %s3944_s8 }
 0x30a   :  { %1572 = vrot.lane.b32.xlu0 %v4649_v10, %s3944_s8 }
 0x311   :  { %1371 = vperm.xlu2 %3666, %v1368_v58  }
 0x312   :  { %1760 = vperm.xlu0 %3747, %v1757_v35  }
 0x319   :  { %3793 = vset.pattern.permute.xlu2 %v3945_v34 }
 0x33a   :  { %v4754_v59 = vpop.permute.xlu2 %3708 }
 0x33b   :  { %v3711_v22 = vunpack.i.h.bf16 %v4754_v59  ;;  %v3710_v55 = vunpack.i.l.bf16 %v4754_v59 }
 0x33d   :  { %v1601_v29 = vsel %vm5726_vm1, %v3710_v55, %v3711_v22  ;;  %vm5731_vm1 = vcmask 1043456  }
 0x33e   :  { %v1605_v58 = vsel %vm5616_vm12, %v1601_v29, 0.0 }
 0x342   :  { %v1626_v33 = vpop.permute.xlu2 %1625 }
 0x343   :  { %v4756_v41 = vpop.permute.xlu1 %3703 }
 0x344   :  { %v3705_v37 = vunpack.i.l.bf16 %v4756_v41  ;;  %v3706_v59 = vunpack.i.h.bf16 %v4756_v41 }
 0x351   :  { %v4758_v5 = vpop.permute.xlu0 %1599 }
 0x353   :  { %v3729_v4 = vpop.permute.xlu2 %3728 }
 0x354   :  { %v3731_v3 = vunpack.i.h.bf16 %v3729_v4  ;;  %v3730_v54 = vunpack.i.l.bf16 %v3729_v4 }
 0x356   :  { %v1684_v52 = vsel %vm1543_vm10, %v3730_v54, %v3731_v3 }
 0x357   :  { %v1688_v45 = vsel %vm5609_vm13, %v1684_v52, 0.0  ;;  %vm5734_vm13 = vcmask 31744   ;;  %v1545_v52 = vsel %vm1543_vm10, %v3705_v37, %v3706_v59 }
 0x358   :  { %v1743_v23 = vrot.slane %v1688_v45, 4 }
 0x35a   :  { %v3714_v62 = vpop.permute.xlu1 %3713 }
 0x35b   :  { %v4760_v39 = vpop.permute.xlu2 %1708  ;;  %v3716_v6 = vunpack.i.h.bf16 %v3714_v62  ;;  %v3715_v60 = vunpack.i.l.bf16 %v3714_v62 }
 0x35d   :  { %v1628_v9 = vsel %vm5611_vm7, %v3715_v60, %v3716_v6  ;;  %v1629_v25 = vsel %vm5611_vm7, %v3716_v6, %v1626_v33  ;;  %v1602_v33 = vsel %vm5734_vm13, %v3711_v22, %v4758_v5  ;;  %vm5736_vm7 = vmmov %vm5731_vm1 }
 0x35e   :  { %v1632_v21 = vsel %vm5608_vm15, %v1628_v9, 0.0  ;;  %v1633_v50 = vsel %vm1553_vm9, %v1629_v25, 0.0  ;;  %vm4847_vm15 = vmand %vm5610_vm3, %vm5615_vm2 }
 0x35f   :  { %v1737_v63 = vrot.slane %v1632_v21, 4  ;;  %v1738_v6 = vrot.slane %v1633_v50, 4  ;;  %vm5737_vm13 = vmmov %vm5731_vm1 }
 0x363   :  { %v4767_v47 = vpop.permute.xlu1 %3723  ;;  %v4772_v0 = vpop.permute.xlu2 %3738 }
 0x364   :  { %v3719_v10 = vpop.permute.xlu0 %3718  ;;  %v3741_v14 = vunpack.i.h.bf16 %v4772_v0  ;;  %v3740_v57 = vunpack.i.l.bf16 %v4772_v0  ;;  %v3725_v27 = vunpack.i.l.bf16 %v4767_v47 }
 0x365   :  { %v3721_v46 = vunpack.i.h.bf16 %v3719_v10  ;;  %v3720_v1 = vunpack.i.l.bf16 %v3719_v10 }
 0x366   :  { %v1575_v31 = vsel %vm5612_vm8, %v3740_v57, %v3741_v14 }
 0x367   :  { %v1658_v53 = vsel %vm5617_vm4, %v3720_v1, %v3721_v46  ;;  %v1659_v26 = vsel %vm5617_vm4, %v3721_v46, %v3725_v27  ;;  %v1579_v54 = vsel %vm4819_vm14, %v1575_v31, 0.0  ;;  %v1606_v46 = vsel %vm5615_vm2, %v1602_v33, 0.0 }
 0x368   :  { %v1662_v36 = vsel %vm4789_vm11, %v1658_v53, 0.0  ;;  %v1663_v5 = vsel %vm4847_vm15, %v1659_v26, 0.0 }
 0x369   :  { %v1753_v62 = vsel %vm5731_vm1, %v1662_v36, %v1743_v23  ;;  %v1727_v23 = vrot.slane %v1606_v46, 4 }
 0x36c   :  { %v3734_v51 = vpop.permute.xlu0 %3733 }
 0x36d   :  { %v3735_v2 = vunpack.i.l.bf16 %v3734_v51  ;;  %v3736_v8 = vunpack.i.h.bf16 %v3734_v51  ;;  %v1732_v51 = vld.sshfl [vmem:[#allocation1 + $0x8] sm:$0xff pattern:$0x75316420] }
 0x36f   :  { %v1685_v20 = vsel %vm1543_vm10, %v3731_v3, %v3735_v2  ;;  %v1544_v42 = vsel %vm1543_vm10, %v3736_v8, %v3705_v37  ;;  %v1731_v3 = vld.sshfl [vmem:[#allocation1] sm:$0xff pattern:$0x75316420]  ;;  %v3726_v2 = vunpack.i.h.bf16 %v4767_v47 }
 0x370   :  { %v1689_v32 = vsel %vm5610_vm3, %v1685_v20, 0.0  ;;  %vm5735_vm3 = vmmov %vm5731_vm1  ;;  %v1751_v41 = vsel %vm5736_vm7, %v1731_v3, %v1737_v63  ;;  %v1548_v9 = vsel %vm5613_vm0, %v1544_v42, 0.0 }
 0x371   :  { %v1707_v28 = vpop.permute.xlu1 %1706  ;;  %v1744_v49 = vrot.slane %v1689_v32, 4  ;;  %v1752_v20 = vsel %vm5735_vm3, %v1732_v51, %v1738_v6  ;;  %v1720_v21 = vrot.slane %v1548_v9, 4 }
 0x372   :  { %v1712_v18 = vsel %vm5612_vm8, %v1707_v28, %v4760_v39 }
 0x373   :  { %v1716_v12 = vsel %vm4800_vm5, %v1712_v18, 0.0  ;;  %v1754_v60 = vsel %vm5737_vm13, %v1663_v5, %v1744_v49  ;;  %v1372_v18 = vpop.permute.xlu2 %1371 }
 0x374   :  { %v1711_v7 = vpop.permute.xlu0 %1710  ;;  %3465 = vmatpush.msk.msra.mxu2 %vm5731_vm1, %v1716_v12  ;;  %vm5614_vm1 = vcmp.ge.s32.totalorder %v4065_v15, 4 }
 0x375   :  { %v1713_v4 = vsel %vm5612_vm8, %v4760_v39, %v1711_v7  ;;  %v1726_v39 = vrot.slane %v1605_v58, 4  ;;  %vm5738_vm8 = vmmov %vm5735_vm3  ;;  %v1549_v28 = vsel %vm5614_vm1, %v1545_v52, 0.0 }
 0x376   :  { %v1717_v10 = vsel %vm4829_vm6, %v1713_v4, 0.0  ;;  %1784 = vmatpush.msra.mxu2 %v1753_v62  ;;  %vm4879_vm7 = vmand %vm5614_vm1, %vm1553_vm9  ;;  %v1721_v0 = vrot.slane %v1549_v28, 4 }
 0x377   :  { %3467 = vmatpush.msk.msra.mxu3 %vm5735_vm3, %v1717_v10  ;;  %v1749_v22 = vsel %vm5738_vm8, %v1579_v54, %v1726_v39  ;;  %vm4891_vm8 = vmand %vm5613_vm0, %vm5616_vm12  ;;  %vm5745_vm3 = vcmask 490496   ;;  %vm5746_vm0 = vcmask 1043456  }
 0x378   :  { %1785 = vmatpush.msra.mxu2 %v1751_v41  ;;  %vm4899_vm13 = vmand %vm5614_vm1, %vm5615_vm2 }
 0x379   :  { %1804 = vmatpush.msra.mxu3 %v1754_v60  ;;  %v3744_v1 = vpop.permute.xlu1 %3743  ;;  %vm5747_vm1 = vmmov %vm5746_vm0 }
 0x37a   :  { %v3746_v45 = vunpack.i.h.bf16 %v3744_v1  ;;  %v3745_v57 = vunpack.i.l.bf16 %v3744_v1  ;;  %1786 = vmatpush.msra.mxu2 %v1749_v22  ;;  %vm5749_vm2 = vmmov %vm5746_vm0  ;;  %v1969_v22 = vld [vmem:[#allocation2 + $0x1c] sm:$0xf] }
 0x37b   :  { %1805 = vmatpush.msra.mxu3 %v1752_v20 }
 0x37c   :  { %v1573_v25 = vpop.permute.xlu0 %1572  ;;  %v1517_v27 = vsel %vm5617_vm4, %v3726_v2, %v3745_v57  ;;  %v1518_v29 = vsel %vm5617_vm4, %v3745_v57, %v3746_v45  ;;  %vm5752_vm4 = vmmov %vm5746_vm0  ;;  %v1991_v57 = vld [vmem:[#allocation2 + $0x1c] sm:$0xf] }
 0x37d   :  { %v1576_v32 = vsel %vm5745_vm3, %v3741_v14, %v1573_v25  ;;  %v1521_v8 = vsel %vm4891_vm8, %v1517_v27, 0.0  ;;  %v1522_v31 = vsel %vm4899_vm13, %v1518_v29, 0.0  ;;  %v3464_v14 = vld [vmem:[%s5577_s1 + $0x8] sm:$0xf]  ;;  %vm5748_vm3 = vcmask 293888  }
 0x37e   :  { %v1580_v36 = vsel %vm4879_vm7, %v1576_v32, 0.0  ;;  %v1420_v12 = vpop.f32.mrf.mxu3  ;;  %v1747_v63 = vsel %vm5746_vm0, %v1521_v8, %v1720_v21  ;;  %v1748_v37 = vsel %vm5749_vm2, %v1522_v31, %v1721_v0  ;;  %vm5750_vm12 = vmmov %vm5748_vm3  ;;  %v2013_v29 = vld [vmem:[#allocation2 + $0x1c] sm:$0xf] }
 0x37f   :  { %v1421_v50 = vadd.f32 %v1420_v12, %v1372_v18  ;;  %1787 = vmatpush.msra.mxu2 %v1747_v63  ;;  %v1750_v34 = vsel %vm5747_vm1, %v1580_v36, %v1727_v23  ;;  %vm5751_vm1 = vmmov %vm5746_vm0  ;;  %v2035_v36 = vld [vmem:[#allocation2 + $0x1c] sm:$0xf] }
 0x380   :  { %1806 = vmatpush.msra.mxu3 %v1750_v34  ;;  %3466 = vmatmul.msk.f32.vlgmr.msra.gmra.mxu2 %vm5748_vm3, %v3464_v14  ;;  %vm5756_vm3 = vmmov %vm5746_vm0 }
 0x381   :  { %v1424_v35 = vmax.f32 %v1421_v50, 0.0 }
 0x382   :  { %1807 = vmatpush.msra.mxu3 %v1748_v37 }
 0x383   :  { %3462 = vmatpush.msk.msrb.mxu1 %vm5746_vm0, %v1424_v35  ;;  %3468 = vmatmul.msk.f32.vlgmr.msra.gmra.mxu3 %vm5750_vm12, %v3464_v14  ;;  %v1400_v7 = vpop.f32.mrf.mxu2  ;;  %v1427_v49 = vrot.slane %v1424_v35, 4  ;;  %vm5753_vm12 = vmmov %vm5746_vm0 }
 0x384   :  { %v1401_v26 = vadd.f32 %v1400_v7, %v1372_v18 }
 0x386   :  { %v1423_v58 = vmax.f32 %v1401_v26, 0.0 }
 0x388   :  { %v4926_v59 = vsel %vm5751_vm1, %v1423_v58, %v1427_v49  ;;  %3460 = vmatpush.msk.msrb.mxu0 %vm5752_vm4, %v1423_v58  ;;  %v1761_v49 = vpop.permute.xlu0 %1760  ;;  %vm5754_vm4 = vcmask 31744  }
 0x389   :  { %v4931_v33 = vadd.f32 %v4568_v38, %v4926_v59  ;;  %vm5755_vm2 = vmmov %vm5754_vm4 }
 0x38a   :  { %vm5757_vm1 = vmmov %vm5755_vm2 }
 0x38b   :  { %1879 = vst [vmem:[#allocation2 + $0x14] sm:$0xff] %v4931_v33 }
 0x392   :  { %v1880_v4 = vld [vmem:[#allocation2 + $0x10] sm:$0xff]  ;;  %v1881_v62 = vld [vmem:[#allocation2 + $0x18] sm:$0xf] }
 0x393   :  { %1884 = vst [vmem:[#allocation1] ss:$2 sm:$0xff] %v1880_v4  ;;  %v1903_v42 = vld [vmem:[#allocation2 + $0x18] sm:$0xf] }
 0x394   :  { %1886 = vst [vmem:[#allocation1 + $0x10] ss:$2 sm:$0xff] %v1881_v62  ;;  %v1925_v6 = vld [vmem:[#allocation2 + $0x18] sm:$0xf] }
 0x395   :  { %v1947_v60 = vld [vmem:[#allocation2 + $0x18] sm:$0xf] }
 0x39a   :  { %v1887_v10 = vld.sshfl [vmem:[#allocation1] sm:$0xff pattern:$0x75316420]  ;;  %v4934_v3 = vld.sshfl [vmem:[#allocation1 + $0x8] sm:$0xff pattern:$0x75316420] }
 0x39b   :  { %1906 = vst [vmem:[#allocation1] ss:$2 sm:$0xff] %v1880_v4  ;;  %v4936_v54 = vld.sshfl [vmem:[#allocation1 + $0x10] sm:$0xff pattern:$0x75316420] }
 0x39c   :  { %1908 = vst [vmem:[#allocation1 + $0x10] ss:$2 sm:$0xff] %v1903_v42  ;;  %v3788_v7 = vpack.i.bf16 %v4936_v54, %v4934_v3  ;;  %v2094_v3 = vld [vmem:[%s5576_s3] sm:$0xf]  ;;  %v3448_v54 = vld [vmem:[%s5578_s2 + $0x4] sm:$0xf] }
 0x39d   :  { %3450 = vmatmul.msk.f32.vlgmr.msra.gmra.mxu0 %vm5754_vm4, %v3448_v54  ;;  %3452 = vmatmul.msk.f32.vlgmr.msra.gmra.mxu1 %vm5755_vm2, %v3448_v54  ;;  %vm5759_vm4 = vmmov %vm5757_vm1 }
 0x39e   :  { %vm5760_vm2 = vmmov %vm5757_vm1 }
 0x3a2   :  { %v1910_v41 = vld.sshfl [vmem:[#allocation1 + $0x8] sm:$0xff pattern:$0x75316420]  ;;  %v1909_v5 = vld.sshfl [vmem:[#allocation1] sm:$0xff pattern:$0x75316420] }
 0x3a3   :  { %v1911_v39 = vld.sshfl [vmem:[#allocation1 + $0x10] sm:$0xff pattern:$0x75316420]  ;;  %1928 = vst [vmem:[#allocation1] ss:$2 sm:$0xff] %v1880_v4 }
 0x3a4   :  { %1930 = vst [vmem:[#allocation1 + $0x10] ss:$2 sm:$0xff] %v1925_v6  ;;  %v3748_v38 = vpack.i.bf16 %v1911_v39, %v1910_v41 }
 0x3a6   :  { %3749 = vrot.lane.b32.xlu1 %v3748_v38, %s3940_s27 }
 0x3aa   :  { %v1931_v52 = vld.sshfl [vmem:[#allocation1] sm:$0xff pattern:$0x75316420]  ;;  %v1932_v46 = vld.sshfl [vmem:[#allocation1 + $0x8] sm:$0xff pattern:$0x75316420] }
 0x3ab   :  { %1950 = vst [vmem:[#allocation1] ss:$2 sm:$0xff] %v1880_v4  ;;  %v1933_v1 = vld.sshfl [vmem:[#allocation1 + $0x10] sm:$0xff pattern:$0x75316420]  ;;  %v3783_v37 = vpack.i.bf16 %v1932_v46, %v1931_v52 }
 0x3ac   :  { %1952 = vst [vmem:[#allocation1 + $0x10] ss:$2 sm:$0xff] %v1947_v60 }
 0x3b2   :  { %v1953_v51 = vld.sshfl [vmem:[#allocation1] sm:$0xff pattern:$0x75316420]  ;;  %v1954_v9 = vld.sshfl [vmem:[#allocation1 + $0x8] sm:$0xff pattern:$0x75316420] }
 0x3b3   :  { %v1955_v2 = vld.sshfl [vmem:[#allocation1 + $0x10] sm:$0xff pattern:$0x75316420]  ;;  %v3753_v45 = vpack.i.bf16 %v1954_v9, %v1953_v51  ;;  %1972 = vst [vmem:[#allocation1] ss:$2 sm:$0xff] %v4931_v33 }
 0x3b4   :  { %1960 = vrot.lane.b32.xlu0 %v1955_v2, %s3941_s28  ;;  %1974 = vst [vmem:[#allocation1 + $0x10] ss:$2 sm:$0xff] %v1969_v22  ;;  %v3459_v2 = vld [vmem:[%s5578_s2 + $0x4] sm:$0xf] }
 0x3b5   :  { %3754 = vrot.lane.b32.xlu2 %v3753_v45, %s3941_s28  ;;  %3461 = vmatmul.msk.f32.vlgmr.msrb.gmra.mxu0 %vm5757_vm1, %v3459_v2  ;;  %s3948_s28 = smov 122  }
 0x3ba   :  { %v1975_v20 = vld.sshfl [vmem:[#allocation1] sm:$0xff pattern:$0x75316420]  ;;  %v1976_v25 = vld.sshfl [vmem:[#allocation1 + $0x8] sm:$0xff pattern:$0x75316420] }
 0x3bb   :  { %v3758_v27 = vpack.i.bf16 %v1976_v25, %v1975_v20  ;;  %1994 = vst [vmem:[#allocation1] ss:$2 sm:$0xff] %v4931_v33  ;;  %v1977_v21 = vld.sshfl [vmem:[#allocation1 + $0x10] sm:$0xff pattern:$0x75316420] }
 0x3bc   :  { %1996 = vst [vmem:[#allocation1 + $0x10] ss:$2 sm:$0xff] %v1991_v57 }
 0x3bd   :  { %3759 = vrot.lane.b32.xlu1 %v3758_v27, %s3942_s29  ;;  %1982 = vrot.lane.b32.xlu2 %v1977_v21, %s3942_s29  ;;  %s3949_s29 = smov 38  }
 0x3c2   :  { %v1997_v28 = vld.sshfl [vmem:[#allocation1] sm:$0xff pattern:$0x75316420]  ;;  %v1998_v23 = vld.sshfl [vmem:[#allocation1 + $0x8] sm:$0xff pattern:$0x75316420] }
 0x3c3   :  { %v1999_v32 = vld.sshfl [vmem:[#allocation1 + $0x10] sm:$0xff pattern:$0x75316420]  ;;  %v3763_v8 = vpack.i.bf16 %v1998_v23, %v1997_v28  ;;  %2016 = vst [vmem:[#allocation1] ss:$2 sm:$0xff] %v4931_v33 }
 0x3c4   :  { %v3768_v18 = vpack.i.bf16 %v1887_v10, %v1999_v32  ;;  %2018 = vst [vmem:[#allocation1 + $0x10] ss:$2 sm:$0xff] %v2013_v29  ;;  %v3469_v28 = vld [vmem:[%s5578_s2 + $0x8] sm:$0xf] }
 0x3c5   :  { %3764 = vrot.lane.b32.xlu0 %v3763_v8, %s3943_s30 }
 0x3c6   :  { %3769 = vrot.lane.b32.xlu1 %v3768_v18, %s3943_s30 }
 0x3ca   :  { %v2019_v12 = vld.sshfl [vmem:[#allocation1] sm:$0xff pattern:$0x75316420]  ;;  %v2020_v63 = vld.sshfl [vmem:[#allocation1 + $0x8] sm:$0xff pattern:$0x75316420] }
 0x3cb   :  { %v2021_v31 = vld.sshfl [vmem:[#allocation1 + $0x10] sm:$0xff pattern:$0x75316420]  ;;  %v3773_v50 = vpack.i.bf16 %v2020_v63, %v2019_v12  ;;  %2038 = vst [vmem:[#allocation1] ss:$2 sm:$0xff] %v4931_v33 }
 0x3cc   :  { %v3778_v34 = vpack.i.bf16 %v1909_v5, %v2021_v31  ;;  %2040 = vst [vmem:[#allocation1 + $0x10] ss:$2 sm:$0xff] %v2035_v36  ;;  %v2334_v63 = vld [vmem:[#allocation2 + $0xc] sm:$0xf] }
 0x3ce   :  { %3779 = vrot.lane.b32.xlu2 %v3778_v34, %s3940_s27  ;;  %3774 = vrot.lane.b32.xlu1 %v3773_v50, %s3940_s27  ;;  %s3947_s27 = smov 6  }
 0x3d2   :  { %v2042_v0 = vld.sshfl [vmem:[#allocation1 + $0x8] sm:$0xff pattern:$0x75316420]  ;;  %v2041_v14 = vld.sshfl [vmem:[#allocation1] sm:$0xff pattern:$0x75316420] }
 0x3d3   :  { %v2043_v35 = vld.sshfl [vmem:[#allocation1 + $0x10] sm:$0xff pattern:$0x75316420]  ;;  %2068 = vst [vmem:[#allocation1] ss:$2 sm:$0xff] %v4931_v33 }
 0x3d4   :  { %2048 = vrot.lane.b32.xlu0 %v2043_v35, %s3944_s8 }
 0x3d6   :  { %2046 = vrot.lane.b32.xlu2 %v2042_v0, %s3944_s8  ;;  %2044 = vrot.lane.b32.xlu1 %v2041_v14, %s3944_s8 }
 0x3da   :  { %v4980_v5 = vld.sshfl [vmem:[#allocation1 + $0x8] sm:$0xff pattern:$0x75316420] }
 0x3dc   :  { %1938 = vrot.lane.b32.xlu0 %v1933_v1, %s3944_s8 }
 0x3de   :  { %3784 = vrot.lane.b32.xlu2 %v3783_v37, %s3944_s8  ;;  %3789 = vrot.lane.b32.xlu1 %v3788_v7, %s3943_s30  ;;  %s3951_s8 = smov 102  }
 0x3e6   :  { %2097 = vperm.xlu2 %3793, %v2094_v3  }
 0x403   :  { %v1789_v26 = vpop.f32.mrf.mxu2 }
 0x404   :  { %v1790_v58 = vadd.f32 %v1789_v26, %v1761_v49 }
 0x406   :  { %v1809_v33 = vpop.f32.mrf.mxu3  ;;  %v1812_v42 = vmax.f32 %v1790_v58, 0.0 }
 0x407   :  { %v1810_v4 = vadd.f32 %v1809_v33, %v1761_v49  ;;  %v2361_v49 = vld [vmem:[#allocation2 + $0xc] sm:$0xf] }
 0x408   :  { %3470 = vmatpush.msk.msra.mxu0 %vm5756_vm3, %v1812_v42  ;;  %vm5761_vm3 = vcmask 1014784  }
 0x409   :  { %v1813_v62 = vmax.f32 %v1810_v4, 0.0  ;;  %3471 = vmatmul.msk.f32.vlgmr.msra.gmra.mxu0 %vm5759_vm4, %v3469_v28  ;;  %vm5765_vm4 = vmmov %vm5760_vm2 }
 0x40b   :  { %v1816_v10 = vrot.slane %v1813_v62, 4  ;;  %3472 = vmatpush.msk.msra.mxu1 %vm5746_vm0, %v1813_v62  ;;  %vm5762_vm0 = vmmov %vm5761_vm3 }
 0x40d   :  { %v4961_v6 = vsel %vm5753_vm12, %v1812_v42, %v1816_v10  ;;  %vm5758_vm12 = vmmov %vm5757_vm1  ;;  %vm5763_vm1 = vcmp.lt.s32.totalorder %v4065_v15, 12 }
 0x40e   :  { %v4965_v41 = vadd.f32 %v4961_v6, %v4615_v56  ;;  %v4978_v56 = vld.sshfl [vmem:[#allocation1] sm:$0xff pattern:$0x75316420]  ;;  %3463 = vmatmul.msk.f32.vlgmr.msrb.gmra.mxu1 %vm5758_vm12, %v3459_v2  ;;  %vm5764_vm12 = vcmp.lt.s32.totalorder %v4079_v24, 12 }
 0x40f   :  { %v4982_v60 = vpop.permute.xlu2 %3754 }
 0x410   :  { %2215 = vst [vmem:[#allocation2 + $0x4] sm:$0xff] %v4965_v41  ;;  %v3757_v62 = vunpack.i.h.bf16 %v4982_v60  ;;  %v3756_v54 = vunpack.i.l.bf16 %v4982_v60 }
 0x416   :  { %3473 = vmatmul.msk.f32.vlgmr.msra.gmra.mxu1 %vm5760_vm2, %v3469_v28  ;;  %vm5766_vm2 = vcmp.lt.s32.totalorder %v4061_v13, 12 }
 0x417   :  { %v2216_v39 = vld [vmem:[#allocation2] sm:$0xff]  ;;  %v2217_v38 = vld [vmem:[#allocation2 + $0x8] sm:$0xf]  ;;  %v1983_v51 = vpop.permute.xlu2 %1982 }
 0x418   :  { %2230 = vst [vmem:[#allocation1] ss:$2 sm:$0xff] %v2216_v39  ;;  %v2250_v52 = vld [vmem:[#allocation2 + $0x8] sm:$0xf]  ;;  %v4993_v45 = vpop.permute.xlu1 %3749 }
 0x419   :  { %2232 = vst [vmem:[#allocation1 + $0x10] ss:$2 sm:$0xff] %v2217_v38  ;;  %v2276_v9 = vld [vmem:[#allocation2 + $0x8] sm:$0xf] }
 0x41a   :  { %v2307_v21 = vld [vmem:[#allocation2 + $0x8] sm:$0xf] }
 0x41f   :  { %v4984_v46 = vld.sshfl [vmem:[#allocation1] sm:$0xff pattern:$0x75316420]  ;;  %v4986_v1 = vld.sshfl [vmem:[#allocation1 + $0x8] sm:$0xff pattern:$0x75316420] }
 0x420   :  { %v4988_v22 = vld.sshfl [vmem:[#allocation1 + $0x10] sm:$0xff pattern:$0x75316420]  ;;  %2257 = vst [vmem:[#allocation1] ss:$2 sm:$0xff] %v2216_v39 }
 0x421   :  { %2259 = vst [vmem:[#allocation1 + $0x10] ss:$2 sm:$0xff] %v2250_v52 }
 0x426   :  { %v1961_v12 = vpop.permute.xlu0 %1960 }
 0x427   :  { %v2260_v57 = vld.sshfl [vmem:[#allocation1] sm:$0xff pattern:$0x75316420]  ;;  %v2261_v20 = vld.sshfl [vmem:[#allocation1 + $0x8] sm:$0xff pattern:$0x75316420] }
 0x428   :  { %v2262_v25 = vld.sshfl [vmem:[#allocation1 + $0x10] sm:$0xff pattern:$0x75316420]  ;;  %v3794_v27 = vpack.i.bf16 %v2261_v20, %v2260_v57  ;;  %2287 = vst [vmem:[#allocation1] ss:$2 sm:$0xff] %v2216_v39  ;;  %v4999_v29 = vpop.permute.xlu2 %3779 }
 0x429   :  { %2267 = vrot.lane.b32.xlu0 %v2262_v25, %s3936_s14  ;;  %2289 = vst [vmem:[#allocation1 + $0x10] ss:$2 sm:$0xff] %v2276_v9 }
 0x42a   :  { %3795 = vrot.lane.b32.xlu2 %v3794_v27, %s3936_s14 }
 0x42f   :  { %v3760_v23 = vpop.permute.xlu1 %3759  ;;  %v2290_v32 = vld.sshfl [vmem:[#allocation1] sm:$0xff pattern:$0x75316420]  ;;  %v2291_v8 = vld.sshfl [vmem:[#allocation1 + $0x8] sm:$0xff pattern:$0x75316420] }
 0x430   :  { %v5006_v18 = vld.sshfl [vmem:[#allocation1 + $0x10] sm:$0xff pattern:$0x75316420]  ;;  %v3799_v36 = vpack.i.bf16 %v2291_v8, %v2290_v32  ;;  %2314 = vst [vmem:[#allocation1] ss:$2 sm:$0xff] %v2216_v39  ;;  %v5009_v34 = vpop.permute.xlu2 %2046  ;;  %v3762_v37 = vunpack.i.h.bf16 %v3760_v23  ;;  %v3761_v7 = vunpack.i.l.bf16 %v3760_v23  ;;  %v3781_v39 = vunpack.i.l.bf16 %v4999_v29 }
 0x431   :  { %2316 = vst [vmem:[#allocation1 + $0x10] ss:$2 sm:$0xff] %v2307_v21  ;;  %v1962_v23 = vsel %vm5765_vm4, %v3756_v54, %v3757_v62 }
 0x432   :  { %3800 = vrot.lane.b32.xlu1 %v3799_v36, %s3946_s26  ;;  %v1985_v58 = vsel %vm5761_vm3, %v3762_v37, %v1983_v51  ;;  %v1984_v9 = vsel %vm5762_vm0, %v3761_v7, %v3762_v37  ;;  %v2392_v37 = vld [vmem:[#allocation2 + $0xc] sm:$0xf]  ;;  %v3752_v7 = vunpack.i.h.bf16 %v4993_v45  ;;  %vm5768_vm3 = vcmask 490496   ;;  %vm5769_vm0 = vmmov %vm5765_vm4 }
 0x433   :  { %v1989_v60 = vsel %vm1553_vm9, %v1985_v58, 0.0  ;;  %v1988_v36 = vsel %vm5766_vm2, %v1984_v9, 0.0  ;;  %vm5767_vm9 = vcmask 556032   ;;  %vm5772_vm4 = vcmask 1043456  }
 0x434   :  { %v2076_v8 = vrot.slane %v1989_v60, 4  ;;  %vm5773_vm2 = vcmp.ge.s32.totalorder %v4061_v13, 4 }
 0x437   :  { %v2317_v31 = vld.sshfl [vmem:[#allocation1] sm:$0xff pattern:$0x75316420]  ;;  %v2318_v50 = vld.sshfl [vmem:[#allocation1 + $0x8] sm:$0xff pattern:$0x75316420]  ;;  %v3765_v26 = vpop.permute.xlu0 %3764 }
 0x438   :  { %v5011_v0 = vpop.permute.xlu1 %3769  ;;  %v3804_v14 = vpack.i.bf16 %v2318_v50, %v2317_v31  ;;  %2341 = vst [vmem:[#allocation1] ss:$2 sm:$0xff] %v4965_v41  ;;  %v2319_v35 = vld.sshfl [vmem:[#allocation1 + $0x10] sm:$0xff pattern:$0x75316420]  ;;  %v3767_v2 = vunpack.i.h.bf16 %v3765_v26  ;;  %v5023_v57 = vpop.permute.xlu2 %3784  ;;  %v3766_v27 = vunpack.i.l.bf16 %v3765_v26  ;;  %v3751_v26 = vunpack.i.l.bf16 %v4993_v45 }
 0x439   :  { %2343 = vst [vmem:[#allocation1 + $0x10] ss:$2 sm:$0xff] %v2334_v63  ;;  %v3771_v51 = vunpack.i.l.bf16 %v5011_v0  ;;  %v3787_v32 = vunpack.i.h.bf16 %v5023_v57  ;;  %v3786_v63 = vunpack.i.l.bf16 %v5023_v57 }
 0x43a   :  { %3805 = vrot.lane.b32.xlu0 %v3804_v14, %s3947_s27  ;;  %2324 = vrot.lane.b32.xlu1 %v2319_v35, %s3947_s27  ;;  %v1919_v48 = vsel %vm1543_vm10, %v3751_v26, %v3752_v7 }
 0x43b   :  { %v2007_v50 = vsel %vm5767_vm9, %v3767_v2, %v3771_v51 }
 0x43f   :  { %v2344_v33 = vld.sshfl [vmem:[#allocation1] sm:$0xff pattern:$0x75316420]  ;;  %v2345_v4 = vld.sshfl [vmem:[#allocation1 + $0x8] sm:$0xff pattern:$0x75316420] }
 0x440   :  { %v3775_v42 = vpop.permute.xlu1 %3774  ;;  %v2346_v10 = vld.sshfl [vmem:[#allocation1 + $0x10] sm:$0xff pattern:$0x75316420]  ;;  %v3809_v3 = vpack.i.bf16 %v2345_v4, %v2344_v33  ;;  %2372 = vst [vmem:[#allocation1] ss:$2 sm:$0xff] %v4965_v41 }
 0x441   :  { %v3777_v38 = vunpack.i.h.bf16 %v3775_v42  ;;  %v3776_v52 = vunpack.i.l.bf16 %v3775_v42  ;;  %2374 = vst [vmem:[#allocation1 + $0x10] ss:$2 sm:$0xff] %v2361_v49  ;;  %v3782_v49 = vunpack.i.h.bf16 %v4999_v29  ;;  %v1963_v42 = vsel %vm5769_vm0, %v3757_v62, %v1961_v12 }
 0x442   :  { %2351 = vrot.lane.b32.xlu0 %v2346_v10, %s3948_s28  ;;  %3810 = vrot.lane.b32.xlu2 %v3809_v3, %s3948_s28  ;;  %v2011_v29 = vsel %vm4847_vm15, %v2007_v50, 0.0  ;;  %v1966_v12 = vsel %vm5773_vm2, %v1962_v23, 0.0  ;;  %vm5776_vm15 = vcmp.ge.s32.totalorder %v4067_v16, 4  ;;  %v2418_v23 = vld [vmem:[#allocation2 + $0xc] sm:$0xf] }
 0x443   :  { %v2029_v20 = vsel %vm1543_vm10, %v3777_v38, %v3781_v39  ;;  %v2028_v25 = vsel %vm1543_vm10, %v3776_v52, %v3777_v38  ;;  %v2075_v52 = vrot.slane %v1988_v36, 4  ;;  %v1967_v9 = vsel %vm5776_vm15, %v1963_v42, 0.0 }
 0x444   :  { %v2033_v21 = vsel %vm5763_vm1, %v2029_v20, 0.0  ;;  %v2032_v28 = vsel %vm5764_vm12, %v2028_v25, 0.0  ;;  %vm5770_vm1 = vmmov %vm5767_vm9  ;;  %v1918_v51 = vsel %vm1543_vm10, %v3782_v49, %v3751_v26  ;;  %v2064_v20 = vrot.slane %v1966_v12, 4 }
 0x445   :  { %v2082_v14 = vrot.slane %v2033_v21, 4  ;;  %v2081_v35 = vrot.slane %v2032_v28, 4  ;;  %v2006_v39 = vsel %vm5770_vm1, %v3766_v27, %v3767_v2  ;;  %vm5771_vm12 = vmmov %vm5768_vm3  ;;  %v2065_v25 = vrot.slane %v1967_v9, 4 }
 0x446   :  { %v2049_v31 = vpop.permute.xlu0 %2048  ;;  %vm5775_vm9 = vmmov %vm5768_vm3  ;;  %v2010_v11 = vsel %vm4789_vm11, %v2006_v39, 0.0  ;;  %vm5781_vm1 = vcmp.ge.s32.totalorder %v4079_v24, 4  ;;  %vm5782_vm11 = vcmp.ge.s32.totalorder %v4065_v15, 4  ;;  %vm5790_vm15 = vcmask 293888   ;;  %v747_v39 = vpop.f32.mrf.mxu1 }
 0x447   :  { %v2051_v58 = vsel %vm5768_vm3, %v5009_v34, %v2049_v31  ;;  %v2375_v33 = vld.sshfl [vmem:[#allocation1] sm:$0xff pattern:$0x75316420]  ;;  %v2376_v4 = vld.sshfl [vmem:[#allocation1 + $0x8] sm:$0xff pattern:$0x75316420]  ;;  %vm5777_vm3 = vmmov %vm5772_vm4 }
 0x448   :  { %v2055_v10 = vsel %vm4829_vm6, %v2051_v58, 0.0  ;;  %v2045_v3 = vpop.permute.xlu1 %2044  ;;  %v3814_v54 = vpack.i.bf16 %v2376_v4, %v2375_v33  ;;  %2399 = vst [vmem:[#allocation1] ss:$2 sm:$0xff] %v4965_v41  ;;  %v2377_v38 = vld.sshfl [vmem:[#allocation1 + $0x10] sm:$0xff pattern:$0x75316420]  ;;  %vm5774_vm6 = vmmov %vm5772_vm4 }
 0x449   :  { %v2050_v45 = vsel %vm5771_vm12, %v2045_v3, %v5009_v34  ;;  %3478 = vmatpush.msk.msrb.mxu1 %vm5772_vm4, %v2055_v10  ;;  %2401 = vst [vmem:[#allocation1 + $0x10] ss:$2 sm:$0xff] %v2392_v37  ;;  %v2092_v62 = vsel %vm5774_vm6, %v2011_v29, %v2082_v14  ;;  %v1940_v34 = vsel %vm5775_vm9, %v3786_v63, %v3787_v32  ;;  %vm5779_vm0 = vmmov %vm5777_vm3  ;;  %v1922_v17 = vsel %vm5781_vm1, %v1918_v51, 0.0  ;;  %v3475_v33 = vld [vmem:[%s5577_s1 + $0x8] sm:$0xf] }
 0x44a   :  { %v2054_v61 = vsel %vm4800_vm5, %v2050_v45, 0.0  ;;  %3815 = vrot.lane.b32.xlu1 %v3814_v54, %s3949_s29  ;;  %2382 = vrot.lane.b32.xlu2 %v2377_v38, %s3949_s29  ;;  %vm5778_vm5 = vmmov %vm5777_vm3  ;;  %v2090_v57 = vsel %vm5779_vm0, %v4980_v5, %v2076_v8  ;;  %v1944_v60 = vsel %vm4819_vm14, %v1940_v34, 0.0  ;;  %v1923_v28 = vsel %vm5782_vm11, %v1919_v48, 0.0  ;;  %v727_v54 = vpop.f32.mrf.mxu0 }
 0x44b   :  { %3476 = vmatpush.msk.msrb.mxu0 %vm5777_vm3, %v2054_v61  ;;  %2141 = vmatpush.msrb.mxu1 %v2092_v62  ;;  %v2091_v2 = vsel %vm5778_vm5, %v2010_v11, %v2081_v35  ;;  %vm5780_vm10 = vmmov %vm5779_vm0  ;;  %v3772_v14 = vunpack.i.h.bf16 %v5011_v0  ;;  %v2058_v7 = vrot.slane %v1922_v17, 4  ;;  %v2059_v49 = vrot.slane %v1923_v28, 4  ;;  %v5123_v61 = vpop.permute.xlu2 %2097 }
 0x44c   :  { %v2089_v21 = vsel %vm5780_vm10, %v4978_v56, %v2075_v52  ;;  %vm5783_vm12 = vmmov %vm5775_vm9  ;;  %v3824_v3 = vpack.i.bf16 %v4986_v1, %v4984_v46 }
 0x44d   :  { %2121 = vmatpush.msrb.mxu0 %v2091_v2  ;;  %2142 = vmatpush.msrb.mxu1 %v2090_v57  ;;  %vm5784_vm14 = vmmov %vm5779_vm0 }
 0x44e   :  { %v1939_v27 = vpop.permute.xlu0 %1938  ;;  %v2087_v31 = vsel %vm5784_vm14, %v1944_v60, %v2064_v20  ;;  %vm5785_vm4 = vmmov %vm5779_vm0  ;;  %v1141_v12 = vpop.f32.mrf.mxu1  ;;  %vm5625_vm14 = vcmask 998400  }
 0x44f   :  { %v1941_v5 = vsel %vm5783_vm12, %v3787_v32, %v1939_v27  ;;  %2122 = vmatpush.msrb.mxu0 %v2089_v21  ;;  %v2402_v8 = vld.sshfl [vmem:[#allocation1] sm:$0xff pattern:$0x75316420]  ;;  %v2403_v36 = vld.sshfl [vmem:[#allocation1 + $0x8] sm:$0xff pattern:$0x75316420]  ;;  %vm5788_vm6 = vmmov %vm5779_vm0 }
 0x450   :  { %v1945_v40 = vsel %vm4879_vm7, %v1941_v5, 0.0  ;;  %v3790_v63 = vpop.permute.xlu1 %3789  ;;  %v2404_v50 = vld.sshfl [vmem:[#allocation1 + $0x10] sm:$0xff pattern:$0x75316420]  ;;  %v3819_v56 = vpack.i.bf16 %v2403_v36, %v2402_v8  ;;  %2427 = vst [vmem:[#allocation1] ss:$2 sm:$0xff] %v4965_v41  ;;  %vm5789_vm9 = vmmov %vm5779_vm0 }
 0x451   :  { %v3792_v35 = vunpack.i.h.bf16 %v3790_v63  ;;  %v3791_v37 = vunpack.i.l.bf16 %v3790_v63  ;;  %2123 = vmatpush.msrb.mxu0 %v2087_v31  ;;  %v2088_v32 = vsel %vm5785_vm4, %v1945_v40, %v2065_v25  ;;  %2429 = vst [vmem:[#allocation1 + $0x10] ss:$2 sm:$0xff] %v2418_v23  ;;  %vm5786_vm7 = vcmask 556032   ;;  %vm5791_vm3 = vmmov %vm5790_vm15 }
 0x452   :  { %2143 = vmatpush.msrb.mxu1 %v2088_v32  ;;  %2409 = vrot.lane.b32.xlu1 %v2404_v50, %s3931_s5  ;;  %vm5787_vm2 = vmmov %vm5786_vm7  ;;  %v1121_v29 = vpop.f32.mrf.mxu0  ;;  %v1145_v46 = vsel %vm5779_vm0, %v1141_v12, 0.0  ;;  %vm5627_vm4 = vcmp.lt.s32.totalorder %v4061_v13, 10 }
 0x453   :  { %3820 = vrot.lane.b32.xlu0 %v3819_v56, %s3931_s5  ;;  %v1896_v55 = vsel %vm5786_vm7, %v3772_v14, %v3791_v37  ;;  %v1897_v26 = vsel %vm5787_vm2, %v3791_v37, %v3792_v35  ;;  %vm5794_vm5 = vmmov %vm5779_vm0  ;;  %vm5618_vm7 = vcmask 48128   ;;  %vm5799_vm2 = vcmask 785408  }
 0x454   :  { %v1900_v0 = vsel %vm4891_vm8, %v1896_v55, 0.0  ;;  %v1901_v58 = vsel %vm4899_vm13, %v1897_v26, 0.0  ;;  %vm5792_vm8 = vmmov %vm5779_vm0 }
 0x455   :  { %v2085_v4 = vsel %vm5788_vm6, %v1900_v0, %v2058_v7  ;;  %v2086_v42 = vsel %vm5789_vm9, %v1901_v58, %v2059_v49  ;;  %vm5793_vm13 = vmmov %vm5779_vm0  ;;  %vm5630_vm6 = vcmp.ge.s32.totalorder %v4067_v16, 6  ;;  %vm5622_vm9 = vcmp.lt.s32.totalorder %v4067_v16, 10  ;;  %v2485_v0 = vld [vmem:[%s5576_s3] sm:$0xf] }
 0x456   :  { %2124 = vmatpush.msrb.mxu0 %v2085_v4  ;;  %2144 = vmatpush.msrb.mxu1 %v2086_v42  ;;  %v751_v38 = vsel %vm5793_vm13, %v747_v39, 0.0  ;;  %vm5795_vm10 = vmmov %vm5779_vm0  ;;  %vm5623_vm13 = vcmp.lt.s32.totalorder %v4065_v15, 10 }
 0x457   :  { %3477 = vmatmul.msk.f32.vlgmr.msrb.gmra.mxu0 %vm5790_vm15, %v3475_v33  ;;  %3479 = vmatmul.msk.f32.vlgmr.msrb.gmra.mxu1 %vm5791_vm3, %v3475_v33  ;;  %v2430_v10 = vld.sshfl [vmem:[#allocation1] sm:$0xff pattern:$0x75316420]  ;;  %v2431_v53 = vld.sshfl [vmem:[#allocation1 + $0x8] sm:$0xff pattern:$0x75316420]  ;;  %vm5796_vm1 = vmmov %vm5779_vm0 }
 0x458   :  { %2433 = vrot.lane.b32.xlu2 %v2430_v10, %s3950_s7  ;;  %v2432_v47 = vld.sshfl [vmem:[#allocation1 + $0x10] sm:$0xff pattern:$0x75316420]  ;;  %2458 = vst [vmem:[#allocation1] ss:$2 sm:$0xff] %v4965_v41  ;;  %v750_v41 = vsel %vm5792_vm8, %v727_v54, 0.0  ;;  %vm5797_vm11 = vmmov %vm5779_vm0 }
 0x459   :  { %v5117_v45 = vadd.f32 %v751_v38, %v750_v41  ;;  %vm5798_vm12 = vmmov %vm5779_vm0  ;;  %vm2220_vm15 = vcmp.ge.s32.totalorder %v4061_v13, 6  ;;  %vm5626_vm3 = vcmp.ge.s32.totalorder %v4065_v15, 6  ;;  %vm5624_vm8 = vcmp.lt.s32.totalorder %v4079_v24, 10 }
 0x45a   :  { %2437 = vrot.lane.b32.xlu1 %v2432_v47, %s3950_s7  ;;  %vm5800_vm0 = vcmask 261120  }
 0x45b   :  { %2435 = vrot.lane.b32.xlu0 %v2431_v53, %s3950_s7  ;;  %v3952_v53 = vmov 3  }
 0x45c   :  { %3829 = vset.pattern.permute.xlu2 %v3952_v53 }
 0x460   :  { %2297 = vrot.lane.b32.xlu2 %v5006_v18, %s3946_s26  ;;  %v1144_v18 = vsel %vm5794_vm5, %v1121_v29, 0.0  ;;  %vm5629_vm5 = vcmp.ge.s32.totalorder %v4079_v24, 6 }
 0x461   :  { %v5121_v1 = vadd.f32 %v1145_v46, %v1144_v18 }
 0x462   :  { %2240 = vrot.lane.b32.xlu1 %v4988_v22, %s3951_s8  ;;  %v1457_v22 = vpop.f32.mrf.mxu0 }
 0x463   :  { %3825 = vrot.lane.b32.xlu0 %v3824_v3, %s3951_s8  ;;  %v1480_v52 = vsel %vm5795_vm10, %v1457_v22, 0.0  ;;  %vm5801_vm10 = vmmov %vm5800_vm0 }
 0x468   :  { %2488 = vperm.xlu2 %3829, %v2485_v0  }
 0x484   :  { %v3796_v20 = vpop.permute.xlu2 %3795 }
 0x485   :  { %v3798_v31 = vunpack.i.h.bf16 %v3796_v20  ;;  %v3797_v50 = vunpack.i.l.bf16 %v3796_v20 }
 0x486   :  { %v1847_v11 = vpop.f32.mrf.mxu0 }
 0x487   :  { %v1870_v57 = vsel %vm5797_vm11, %v1847_v11, 0.0  ;;  %v5140_v26 = vsel %vm5799_vm2, %v3797_v50, %v3798_v31  ;;  %vm5621_vm11 = vcmask 736256  }
 0x48b   :  { %v1477_v62 = vpop.f32.mrf.mxu1 }
 0x48c   :  { %v1481_v34 = vsel %vm5796_vm1, %v1477_v62, 0.0  ;;  %vm5802_vm1 = vmmov %vm5799_vm2  ;;  %vm5620_vm2 = vcmask 211968  }
 0x48d   :  { %v5129_v9 = vadd.f32 %v1481_v34, %v1480_v52 }
 0x493   :  { %v1867_v2 = vpop.f32.mrf.mxu1 }
 0x494   :  { %v1871_v60 = vsel %vm5798_vm12, %v1867_v2, 0.0  ;;  %vm5619_vm12 = vcmask 310272  }
 0x495   :  { %v5133_v25 = vadd.f32 %v1871_v60, %v1870_v57 }
 0x49b   :  { %v2268_v51 = vpop.permute.xlu0 %2267 }
 0x49c   :  { %v3811_v17 = vpop.permute.xlu2 %3810  ;;  %v5165_v41 = vsel %vm5802_vm1, %v3798_v31, %v2268_v51  ;;  %vm5206_vm1 = vmand %vm5624_vm8, %vm5627_vm4 }
 0x49d   :  { %v3813_v40 = vunpack.i.h.bf16 %v3811_v17  ;;  %v3812_v63 = vunpack.i.l.bf16 %v3811_v17 }
 0x49f   :  { %v2354_v32 = vsel %vm5625_vm14, %v3812_v63, %v3813_v40 }
 0x4a0   :  { %v5150_v49 = vsel %vm5627_vm4, %v2354_v32, 0.0 }
 0x4a1   :  { %v2465_v46 = vrot.slane %v5150_v49, 4  ;;  %v3495_v49 = vld [vmem:[%s5575_s0 + $0x8] sm:$0xff] }
 0x4a4   :  { %v5127_v48 = vpop.permute.xlu1 %3800  ;;  %v2383_v5 = vpop.permute.xlu2 %2382 }
 0x4a5   :  { %v3802_v58 = vunpack.i.l.bf16 %v5127_v48  ;;  %v3803_v38 = vunpack.i.h.bf16 %v5127_v48 }
 0x4a7   :  { %v5196_v51 = vsel %vm5621_vm11, %v3802_v58, %v3803_v38 }
 0x4ac   :  { %v2325_v27 = vpop.permute.xlu1 %2324  ;;  %v3806_v21 = vpop.permute.xlu0 %3805 }
 0x4ad   :  { %v3808_v14 = vunpack.i.h.bf16 %v3806_v21  ;;  %v3807_v55 = vunpack.i.l.bf16 %v3806_v21 }
 0x4af   :  { %v2328_v33 = vsel %vm5618_vm7, %v3808_v14, %v2325_v27  ;;  %v2327_v39 = vsel %vm5618_vm7, %v3807_v55, %v3808_v14  ;;  %vm5218_vm7 = vmand %vm5623_vm13, %vm5622_vm9 }
 0x4b0   :  { %v5183_v22 = vsel %vm5630_vm6, %v2328_v33, 0.0  ;;  %v5200_v11 = vsel %vm2220_vm15, %v2327_v39, 0.0 }
 0x4b1   :  { %v2455_v33 = vrot.slane %v5183_v22, 4  ;;  %v2454_v39 = vrot.slane %v5200_v11, 4 }
 0x4b2   :  { %v2434_v56 = vpop.permute.xlu2 %2433 }
 0x4b4   :  { %v2352_v23 = vpop.permute.xlu0 %2351 }
 0x4b5   :  { %v2355_v47 = vsel %vm5625_vm14, %v3813_v40, %v2352_v23 }
 0x4b6   :  { %v2359_v62 = vsel %vm5622_vm9, %v2355_v47, 0.0  ;;  %v2273_v47 = vsel %vm5629_vm5, %v5140_v26, 0.0 }
 0x4b7   :  { %v2466_v14 = vrot.slane %v2359_v62, 4 }
 0x4ba   :  { %v2298_v2 = vpop.permute.xlu2 %2297 }
 0x4bc   :  { %v5135_v28 = vpop.permute.xlu1 %3815 }
 0x4bd   :  { %v3818_v3 = vunpack.i.h.bf16 %v5135_v28  ;;  %v3817_v54 = vunpack.i.l.bf16 %v5135_v28 }
 0x4bf   :  { %v2385_v21 = vsel %vm5619_vm12, %v3817_v54, %v3818_v3  ;;  %v2386_v17 = vsel %vm5619_vm12, %v3818_v3, %v2383_v5  ;;  %vm5228_vm12 = vmand %vm5626_vm3, %vm5622_vm9  ;;  %v2459_v54 = vld.sshfl [vmem:[#allocation1] sm:$0xff pattern:$0x75316420] }
 0x4c0   :  { %vm5266_vm3 = vmand %vm5629_vm5, %vm2220_vm15 }
 0x4c4   :  { %v2410_v36 = vpop.permute.xlu1 %2409 }
 0x4c5   :  { %v3821_v8 = vpop.permute.xlu0 %3820 }
 0x4c6   :  { %v3823_v35 = vunpack.i.h.bf16 %v3821_v8  ;;  %v3822_v37 = vunpack.i.l.bf16 %v3821_v8 }
 0x4c8   :  { %v2412_v4 = vsel %vm5800_vm0, %v3823_v35, %v2410_v36  ;;  %v2411_v42 = vsel %vm5801_vm10, %v3822_v37, %v3823_v35  ;;  %vm5172_vm0 = vmand %vm5624_vm8, %vm2220_vm15  ;;  %v2301_v35 = vsel %vm5621_vm11, %v3803_v38, %v2298_v2  ;;  %vm5813_vm11 = vcmask 1043456  }
 0x4c9   :  { %v2415_v18 = vsel %vm5624_vm8, %v2411_v42, 0.0  ;;  %v2416_v12 = vsel %vm5623_vm13, %v2412_v4, 0.0  ;;  %vm5191_vm10 = vmand %vm5623_vm13, %vm5630_vm6  ;;  %v2389_v37 = vsel %vm5172_vm0, %v2385_v21, 0.0  ;;  %v2305_v22 = vsel %vm5228_vm12, %v2301_v35, 0.0 }
 0x4ca   :  { %v2471_v36 = vrot.slane %v2415_v18, 4  ;;  %v2472_v40 = vrot.slane %v2416_v12, 4  ;;  %vm5814_vm9 = vmmov %vm5813_vm11  ;;  %v2390_v0 = vsel %vm5191_vm10, %v2386_v17, 0.0 }
 0x4cb   :  { %vm5253_vm13 = vmand %vm5629_vm5, %vm5627_vm4 }
 0x4cc   :  { %v2438_v10 = vpop.permute.xlu1 %2437  ;;  %vm5817_vm8 = vmmov %vm5814_vm9 }
 0x4cd   :  { %v2436_v7 = vpop.permute.xlu0 %2435  ;;  %vm5818_vm14 = vmmov %vm5817_vm8 }
 0x4ce   :  { %v2440_v23 = vsel %vm5620_vm2, %v2434_v56, %v2436_v7  ;;  %v2441_v8 = vsel %vm5620_vm2, %v2436_v7, %v2438_v10  ;;  %v3480_v56 = vld [vmem:[%s5578_s2 + $0x8] sm:$0xf]  ;;  %vm5628_vm2 = vcmask 834560   ;;  %vm5823_vm4 = vmmov %vm5817_vm8 }
 0x4cf   :  { %v2444_v32 = vsel %vm5206_vm1, %v2440_v23, 0.0  ;;  %v2445_v55 = vsel %vm5218_vm7, %v2441_v8, 0.0 }
 0x4d4   :  { %v2126_v52 = vpop.f32.mrf.mxu0  ;;  %v2146_v34 = vpop.f32.mrf.mxu1 }
 0x4d5   :  { %v2127_v60 = vadd.f32 %v2126_v52, %v5123_v61  ;;  %v2147_v20 = vadd.f32 %v2146_v34, %v5123_v61  ;;  %v3826_v27 = vpop.permute.xlu0 %3825  ;;  %v2241_v4 = vpop.permute.xlu1 %2240  ;;  %v2460_v52 = vld.sshfl [vmem:[#allocation1 + $0x8] sm:$0xff pattern:$0x75316420]  ;;  %v2304_v34 = vsel %vm5253_vm13, %v5196_v51, 0.0  ;;  %v2448_v51 = vrot.slane %v2273_v47, 4 }
 0x4d6   :  { %v3828_v31 = vunpack.i.h.bf16 %v3826_v27  ;;  %v3827_v50 = vunpack.i.l.bf16 %v3826_v27 }
 0x4d7   :  { %v2149_v61 = vmax.f32 %v2127_v60, 0.0  ;;  %v2150_v63 = vmax.f32 %v2147_v20, 0.0 }
 0x4d8   :  { %v2243_v38 = vsel %vm5628_vm2, %v3827_v50, %v3828_v31  ;;  %v2244_v26 = vsel %vm5628_vm2, %v3828_v31, %v2241_v4  ;;  %vm5836_vm2 = vcmask 293888  }
 0x4d9   :  { %v2153_v7 = vrot.slane %v2150_v63, 4  ;;  %3481 = vmatpush.msk.msrb.mxu2 %vm5813_vm11, %v2149_v61  ;;  %3483 = vmatpush.msk.msrb.mxu3 %vm5814_vm9, %v2150_v63  ;;  %vm5819_vm11 = vmmov %vm5817_vm8 }
 0x4da   :  { %v2481_v42 = vsel %vm5819_vm11, %v2389_v37, %v2471_v36  ;;  %vm5820_vm9 = vmmov %vm5817_vm8  ;;  %vm5826_vm11 = vcmp.ge.s32.totalorder %v4065_v15, 6 }
 0x4db   :  { %3486 = vmatpush.msk.msra.mxu2 %vm5817_vm8, %v2444_v32  ;;  %3488 = vmatpush.msk.msra.mxu3 %vm5818_vm14, %v2445_v55  ;;  %v2482_v10 = vsel %vm5820_vm9, %v2390_v0, %v2472_v40  ;;  %v5274_v3 = vsel %vm5823_vm4, %v2149_v61, %v2153_v7  ;;  %vm5824_vm14 = vcmask 31744   ;;  %vm5284_vm9 = vmand %vm5826_vm11, %vm5630_vm6  ;;  %vm5851_vm6 = vcmask 48128  }
 0x4dc   :  { %3482 = vmatmul.msk.f32.vlgmr.msrb.gmra.mxu2 %vm5824_vm14, %v3480_v56  ;;  %vm5825_vm8 = vmmov %vm5824_vm14  ;;  %v5295_v62 = vadd.f32 %v3495_v49, %v5274_v3  ;;  %vm5830_vm14 = vcmask 1043456   ;;  %v2248_v60 = vsel %vm5284_vm9, %v2244_v26, 0.0 }
 0x4dd   :  { %3484 = vmatmul.msk.f32.vlgmr.msrb.gmra.mxu3 %vm5825_vm8, %v3480_v56  ;;  %vm5829_vm4 = vmmov %vm5826_vm11  ;;  %2512 = vmatpush.msra.mxu2 %v2481_v42  ;;  %v2479_v11 = vsel %vm5830_vm14, %v2459_v54, %v2465_v46  ;;  %v3485_v46 = vld [vmem:[%s5577_s1 + $0xc] sm:$0xf]  ;;  %v2719_v54 = vld [vmem:[#allocation2 + $0x1c] sm:$0xf] }
 0x4de   :  { %v2274_v12 = vsel %vm5829_vm4, %v5165_v41, 0.0  ;;  %2532 = vmatpush.msra.mxu3 %v2482_v10  ;;  %vm5831_vm8 = vmmov %vm5830_vm14  ;;  %2607 = vst [vmem:[#allocation2 + $0x14] sm:$0xff] %v5295_v62  ;;  %v2247_v41 = vsel %vm5266_vm3, %v2243_v38, 0.0 }
 0x4df   :  { %v2480_v2 = vsel %vm5831_vm8, %v2460_v52, %v2466_v14  ;;  %2513 = vmatpush.msra.mxu2 %v2479_v11  ;;  %v2449_v20 = vrot.slane %v2274_v12, 4  ;;  %vm5832_vm11 = vmmov %vm5831_vm8 }
 0x4e0   :  { %2533 = vmatpush.msra.mxu3 %v2480_v2  ;;  %v2477_v27 = vsel %vm5832_vm11, %v2304_v34, %v2454_v39  ;;  %vm5833_vm4 = vmmov %vm5831_vm8 }
 0x4e1   :  { %v2478_v21 = vsel %vm5833_vm4, %v2305_v22, %v2455_v33  ;;  %2514 = vmatpush.msra.mxu2 %v2477_v27  ;;  %vm5834_vm14 = vmmov %vm5833_vm4  ;;  %v2697_v33 = vld [vmem:[#allocation2 + $0x1c] sm:$0xf] }
 0x4e2   :  { %2534 = vmatpush.msra.mxu3 %v2478_v21  ;;  %v2475_v17 = vsel %vm5834_vm14, %v2247_v41, %v2448_v51  ;;  %vm5835_vm8 = vmmov %vm5833_vm4  ;;  %v2741_v22 = vld [vmem:[#allocation2 + $0x1c] sm:$0xf]  ;;  %vm5842_vm14 = vcmask 31744  }
 0x4e3   :  { %v2476_v23 = vsel %vm5835_vm8, %v2248_v60, %v2449_v20  ;;  %2515 = vmatpush.msra.mxu2 %v2475_v17  ;;  %vm5837_vm5 = vmmov %vm5836_vm2  ;;  %v2763_v41 = vld [vmem:[#allocation2 + $0x1c] sm:$0xf] }
 0x4e4   :  { %2535 = vmatpush.msra.mxu3 %v2476_v23  ;;  %3487 = vmatmul.msk.f32.vlgmr.msra.gmra.mxu2 %vm5836_vm2, %v3485_v46  ;;  %vm5839_vm2 = vmmov %vm5833_vm4 }
 0x4e5   :  { %3489 = vmatmul.msk.f32.vlgmr.msra.gmra.mxu3 %vm5837_vm5, %v3485_v46  ;;  %v2608_v8 = vld [vmem:[#allocation2 + $0x10] sm:$0xff]  ;;  %v2609_v36 = vld [vmem:[#allocation2 + $0x18] sm:$0xf]  ;;  %vm5838_vm5 = vmmov %vm5833_vm4 }
 0x4e6   :  { %2614 = vst [vmem:[#allocation1 + $0x10] ss:$2 sm:$0xff] %v2609_v36  ;;  %v2631_v31 = vld [vmem:[#allocation2 + $0x18] sm:$0xf]  ;;  %vm5840_vm11 = vmmov %vm5839_vm2 }
 0x4e7   :  { %2612 = vst [vmem:[#allocation1] ss:$2 sm:$0xff] %v2608_v8  ;;  %v2653_v50 = vld [vmem:[#allocation2 + $0x18] sm:$0xf]  ;;  %vm5841_vm4 = vmmov %vm5839_vm2 }
 0x4e8   :  { %v2675_v32 = vld [vmem:[#allocation2 + $0x18] sm:$0xf]  ;;  %vm5843_vm8 = vmmov %vm5842_vm14 }
 0x4ed   :  { %v5316_v40 = vld.sshfl [vmem:[#allocation1 + $0x10] sm:$0xff pattern:$0x75316420] }
 0x4ee   :  { %v5318_v61 = vld.sshfl [vmem:[#allocation1] sm:$0xff pattern:$0x75316420]  ;;  %v5320_v63 = vld.sshfl [vmem:[#allocation1 + $0x8] sm:$0xff pattern:$0x75316420] }
 0x4ef   :  { %2634 = vst [vmem:[#allocation1] ss:$2 sm:$0xff] %v2608_v8  ;;  %v3860_v36 = vpack.i.bf16 %v5320_v63, %v5318_v61 }
 0x4f0   :  { %2636 = vst [vmem:[#allocation1 + $0x10] ss:$2 sm:$0xff] %v2631_v31 }
 0x4f6   :  { %v2637_v14 = vld.sshfl [vmem:[#allocation1] sm:$0xff pattern:$0x75316420]  ;;  %v2638_v35 = vld.sshfl [vmem:[#allocation1 + $0x8] sm:$0xff pattern:$0x75316420] }
 0x4f7   :  { %v2639_v56 = vld.sshfl [vmem:[#allocation1 + $0x10] sm:$0xff pattern:$0x75316420]  ;;  %v3830_v37 = vpack.i.bf16 %v2638_v35, %v2637_v14  ;;  %2656 = vst [vmem:[#allocation1] ss:$2 sm:$0xff] %v2608_v8 }
 0x4f8   :  { %2658 = vst [vmem:[#allocation1 + $0x10] ss:$2 sm:$0xff] %v2653_v50  ;;  %2644 = vrot.lane.b32.xlu0 %v2639_v56, %s3936_s14 }
 0x4f9   :  { %3831 = vrot.lane.b32.xlu2 %v3830_v37, %s3936_s14 }
 0x4fe   :  { %v2659_v55 = vld.sshfl [vmem:[#allocation1] sm:$0xff pattern:$0x75316420]  ;;  %v2660_v7 = vld.sshfl [vmem:[#allocation1 + $0x8] sm:$0xff pattern:$0x75316420] }
 0x4ff   :  { %v2661_v49 = vld.sshfl [vmem:[#allocation1 + $0x10] sm:$0xff pattern:$0x75316420]  ;;  %v3835_v0 = vpack.i.bf16 %v2660_v7, %v2659_v55  ;;  %2678 = vst [vmem:[#allocation1] ss:$2 sm:$0xff] %v2608_v8 }
 0x500   :  { %2680 = vst [vmem:[#allocation1 + $0x10] ss:$2 sm:$0xff] %v2675_v32  ;;  %v3490_v7 = vld [vmem:[%s5578_s2 + $0xc] sm:$0xf] }
 0x501   :  { %3836 = vrot.lane.b32.xlu1 %v3835_v0, %s3946_s26 }
 0x506   :  { %v2681_v4 = vld.sshfl [vmem:[#allocation1] sm:$0xff pattern:$0x75316420]  ;;  %v2682_v42 = vld.sshfl [vmem:[#allocation1 + $0x8] sm:$0xff pattern:$0x75316420] }
 0x507   :  { %v2683_v10 = vld.sshfl [vmem:[#allocation1 + $0x10] sm:$0xff pattern:$0x75316420]  ;;  %v3840_v47 = vpack.i.bf16 %v2682_v42, %v2681_v4  ;;  %2700 = vst [vmem:[#allocation1] ss:$2 sm:$0xff] %v5295_v62 }
 0x508   :  { %2702 = vst [vmem:[#allocation1 + $0x10] ss:$2 sm:$0xff] %v2697_v33 }
 0x509   :  { %2688 = vrot.lane.b32.xlu1 %v2683_v10, %s3947_s27  ;;  %3841 = vrot.lane.b32.xlu0 %v3840_v47, %s3947_s27 }
 0x50e   :  { %v2703_v39 = vld.sshfl [vmem:[#allocation1] sm:$0xff pattern:$0x75316420]  ;;  %v2704_v38 = vld.sshfl [vmem:[#allocation1 + $0x8] sm:$0xff pattern:$0x75316420] }
 0x50f   :  { %v2705_v26 = vld.sshfl [vmem:[#allocation1 + $0x10] sm:$0xff pattern:$0x75316420]  ;;  %v3845_v12 = vpack.i.bf16 %v2704_v38, %v2703_v39  ;;  %2722 = vst [vmem:[#allocation1] ss:$2 sm:$0xff] %v5295_v62 }
 0x510   :  { %2724 = vst [vmem:[#allocation1 + $0x10] ss:$2 sm:$0xff] %v2719_v54 }
 0x511   :  { %2710 = vrot.lane.b32.xlu0 %v2705_v26, %s3948_s28  ;;  %3846 = vrot.lane.b32.xlu2 %v3845_v12, %s3948_s28 }
 0x516   :  { %v2725_v52 = vld.sshfl [vmem:[#allocation1] sm:$0xff pattern:$0x75316420]  ;;  %v2726_v34 = vld.sshfl [vmem:[#allocation1 + $0x8] sm:$0xff pattern:$0x75316420] }
 0x517   :  { %v3850_v11 = vpack.i.bf16 %v2726_v34, %v2725_v52  ;;  %2744 = vst [vmem:[#allocation1] ss:$2 sm:$0xff] %v5295_v62  ;;  %v2727_v2 = vld.sshfl [vmem:[#allocation1 + $0x10] sm:$0xff pattern:$0x75316420] }
 0x518   :  { %2746 = vst [vmem:[#allocation1 + $0x10] ss:$2 sm:$0xff] %v2741_v22 }
 0x519   :  { %3851 = vrot.lane.b32.xlu1 %v3850_v11, %s3949_s29  ;;  %2732 = vrot.lane.b32.xlu2 %v2727_v2, %s3949_s29 }
 0x51e   :  { %v2747_v60 = vld.sshfl [vmem:[#allocation1] sm:$0xff pattern:$0x75316420]  ;;  %v2748_v20 = vld.sshfl [vmem:[#allocation1 + $0x8] sm:$0xff pattern:$0x75316420] }
 0x51f   :  { %v2749_v27 = vld.sshfl [vmem:[#allocation1 + $0x10] sm:$0xff pattern:$0x75316420]  ;;  %v3855_v21 = vpack.i.bf16 %v2748_v20, %v2747_v60  ;;  %2766 = vst [vmem:[#allocation1] ss:$2 sm:$0xff] %v5295_v62 }
 0x520   :  { %2768 = vst [vmem:[#allocation1 + $0x10] ss:$2 sm:$0xff] %v2763_v41 }
 0x521   :  { %2754 = vrot.lane.b32.xlu1 %v2749_v27, %s3931_s5  ;;  %3856 = vrot.lane.b32.xlu0 %v3855_v21, %s3931_s5 }
 0x526   :  { %v2769_v51 = vld.sshfl [vmem:[#allocation1] sm:$0xff pattern:$0x75316420]  ;;  %v2770_v46 = vld.sshfl [vmem:[#allocation1 + $0x8] sm:$0xff pattern:$0x75316420] }
 0x527   :  { %2772 = vrot.lane.b32.xlu2 %v2769_v51, %s3950_s7  ;;  %v2771_v17 = vld.sshfl [vmem:[#allocation1 + $0x10] sm:$0xff pattern:$0x75316420]  ;;  %2796 = vst [vmem:[#allocation1] ss:$2 sm:$0xff] %v5295_v62 }
 0x528   :  { %v2822_v62 = vld [vmem:[%s5576_s3] sm:$0xf] }
 0x529   :  { %2776 = vrot.lane.b32.xlu1 %v2771_v17, %s3950_s7  ;;  %2774 = vrot.lane.b32.xlu0 %v2770_v46, %s3950_s7 }
 0x52e   :  { %v5341_v23 = vld.sshfl [vmem:[#allocation1] sm:$0xff pattern:$0x75316420]  ;;  %v5343_v8 = vld.sshfl [vmem:[#allocation1 + $0x8] sm:$0xff pattern:$0x75316420] }
 0x52f   :  { %2666 = vrot.lane.b32.xlu2 %v2661_v49, %s3946_s26  ;;  %3053 = vst [vmem:[#allocation1] ss:$2 sm:$0xff] %v4301_v19 }
 0x531   :  { %2622 = vrot.lane.b32.xlu1 %v5316_v40, %s3951_s8  ;;  %3861 = vrot.lane.b32.xlu0 %v3860_v36, %s3951_s8 }
 0x536   :  { %v5355_v31 = vld.sshfl [vmem:[#allocation1] sm:$0xff pattern:$0x75316420]  ;;  %v5357_v50 = vld.sshfl [vmem:[#allocation1 + $0x8] sm:$0xff pattern:$0x75316420] }
 0x537   :  { %2825 = vperm.xlu2 %3829, %v2822_v62   ;;  %3069 = vst [vmem:[#allocation1] ss:$2 sm:$0xff] %v4618_v44  ;;  %v2489_v44 = vpop.permute.xlu2 %2488 }
 0x53e   :  { %v5360_v14 = vld.sshfl [vmem:[#allocation1] sm:$0xff pattern:$0x75316420]  ;;  %v5362_v61 = vld.sshfl [vmem:[#allocation1 + $0x8] sm:$0xff pattern:$0x75316420] }
 0x53f   :  { %3085 = vst [vmem:[#allocation1] ss:$2 sm:$0xff] %v4961_v6 }
 0x553   :  { %v3832_v0 = vpop.permute.xlu2 %3831 }
 0x55b   :  { %1147 = vadd.xlane.f32.xlu1 %v5121_v1  ;;  %417 = vadd.xlane.f32.xlu0 %v4421_v43 }
 0x55f   :  { %v2183_v19 = vpop.f32.mrf.mxu2 }
 0x560   :  { %v2203_v40 = vpop.f32.mrf.mxu3  ;;  %v2206_v63 = vsel %vm5838_vm5, %v2183_v19, 0.0  ;;  %1873 = vadd.xlane.f32.xlu2 %v5133_v25  ;;  %vm5844_vm5 = vmmov %vm5839_vm2  ;;  %v5384_v25 = vld.sshfl [vmem:[#allocation1 + $0x8] sm:$0xff pattern:$0x75316420]  ;;  %v3834_v19 = vunpack.i.h.bf16 %v3832_v0 }
 0x561   :  { %v2207_v35 = vsel %vm5839_vm2, %v2203_v40, 0.0  ;;  %vm5845_vm2 = vcmask 998400   ;;  %v3833_v40 = vunpack.i.l.bf16 %v3832_v0 }
 0x562   :  { %v5369_v56 = vadd.f32 %v2207_v35, %v2206_v63 }
 0x563   :  { %1483 = vadd.xlane.f32.xlu1 %v5129_v9  ;;  %753 = vadd.xlane.f32.xlu0 %v5117_v45  ;;  %v5382_v9 = vld.sshfl [vmem:[#allocation1] sm:$0xff pattern:$0x75316420] }
 0x567   :  { %v2517_v6 = vpop.f32.mrf.mxu2 }
 0x568   :  { %v2537_v37 = vpop.f32.mrf.mxu3  ;;  %v2518_v1 = vadd.f32 %v2517_v6, %v2489_v44 }
 0x569   :  { %v2538_v32 = vadd.f32 %v2537_v37, %v2489_v44 }
 0x56a   :  { %v2540_v43 = vmax.f32 %v2518_v1, 0.0  ;;  %v2645_v33 = vpop.permute.xlu0 %2644 }
 0x56b   :  { %v2541_v55 = vmax.f32 %v2538_v32, 0.0  ;;  %v3847_v42 = vpop.permute.xlu2 %3846 }
 0x56c   :  { %3491 = vmatpush.msk.msra.mxu0 %vm5840_vm11, %v2540_v43  ;;  %v3849_v12 = vunpack.i.h.bf16 %v3847_v42  ;;  %v3848_v22 = vunpack.i.l.bf16 %v3847_v42  ;;  %vm5846_vm11 = vcmask 261120  }
 0x56d   :  { %v2544_v49 = vrot.slane %v2541_v55, 4  ;;  %3493 = vmatpush.msk.msra.mxu1 %vm5841_vm4, %v2541_v55  ;;  %3492 = vmatmul.msk.f32.vlgmr.msra.gmra.mxu0 %vm5842_vm14, %v3490_v7  ;;  %vm5847_vm4 = vmmov %vm5846_vm11 }
 0x56e   :  { %3494 = vmatmul.msk.f32.vlgmr.msra.gmra.mxu1 %vm5843_vm8, %v3490_v7  ;;  %v2712_v20 = vsel %vm5845_vm2, %v3848_v22, %v3849_v12  ;;  %vm5848_vm14 = vmmov %vm5845_vm2  ;;  %vm5849_vm8 = vcmp.lt.s32.totalorder %v4079_v24, 10  ;;  %vm5852_vm2 = vcmp.lt.s32.totalorder %v4061_v13, 10 }
 0x56f   :  { %v2545_v45 = vsel %vm5844_vm5, %v2540_v43, %v2544_v49  ;;  %vm5850_vm5 = vcmp.lt.s32.totalorder %v4065_v15, 10  ;;  %v2716_v35 = vsel %vm5852_vm2, %v2712_v20, 0.0  ;;  %vm5859_vm2 = vcmask 736256  }
 0x570   :  { %3101 = vst [vmem:[#allocation1] ss:$2 sm:$0xff] %v2545_v45 }
 0x573   :  { %v3837_v4 = vpop.permute.xlu1 %3836  ;;  %v2733_v54 = vpop.permute.xlu2 %2732 }
 0x574   :  { %v3839_v44 = vunpack.i.h.bf16 %v3837_v4  ;;  %v3838_v6 = vunpack.i.l.bf16 %v3837_v4 }
 0x57b   :  { %v3842_v10 = vpop.permute.xlu0 %3841  ;;  %v2689_v47 = vpop.permute.xlu1 %2688 }
 0x57c   :  { %v3844_v41 = vunpack.i.h.bf16 %v3842_v10  ;;  %v3843_v60 = vunpack.i.l.bf16 %v3842_v10 }
 0x57e   :  { %v2690_v63 = vsel %vm5851_vm6, %v3843_v60, %v3844_v41 }
 0x57f   :  { %v2694_v4 = vsel %vm2220_vm15, %v2690_v63, 0.0  ;;  %vm5862_vm15 = vcmp.ge.s32.totalorder %v4067_v16, 6 }
 0x581   :  { %v2773_v26 = vpop.permute.xlu2 %2772 }
 0x583   :  { %v2711_v39 = vpop.permute.xlu0 %2710 }
 0x584   :  { %v2713_v51 = vsel %vm5848_vm14, %v3849_v12, %v2711_v39  ;;  %vm5855_vm14 = vcmask 310272   ;;  %v2803_v39 = vrot.slane %v2716_v35, 4 }
 0x589   :  { %v2667_v32 = vpop.permute.xlu2 %2666 }
 0x58b   :  { %v3852_v38 = vpop.permute.xlu1 %3851 }
 0x58c   :  { %v3854_v46 = vunpack.i.h.bf16 %v3852_v38  ;;  %v3853_v17 = vunpack.i.l.bf16 %v3852_v38  ;;  %v2669_v38 = vsel %vm5859_vm2, %v3839_v44, %v2667_v32 }
 0x58d   :  { %v2673_v29 = vsel %vm5228_vm12, %v2669_v38, 0.0 }
 0x58e   :  { %v2734_v7 = vsel %vm5855_vm14, %v3853_v17, %v3854_v46 }
 0x593   :  { %v2755_v52 = vpop.permute.xlu1 %2754  ;;  %v3857_v34 = vpop.permute.xlu0 %3856 }
 0x594   :  { %v3859_v11 = vunpack.i.h.bf16 %v3857_v34  ;;  %v3858_v2 = vunpack.i.l.bf16 %v3857_v34  ;;  %v2792_v34 = vrot.slane %v2694_v4, 4 }
 0x596   :  { %v2757_v27 = vsel %vm5846_vm11, %v3859_v11, %v2755_v52  ;;  %v2756_v21 = vsel %vm5847_vm4, %v3858_v2, %v3859_v11  ;;  %vm5853_vm11 = vmmov %vm5851_vm6  ;;  %vm5854_vm4 = vcmp.lt.s32.totalorder %v4067_v16, 10  ;;  %vm5857_vm6 = vcmask 211968  }
 0x597   :  { %v2760_v36 = vsel %vm5849_vm8, %v2756_v21, 0.0  ;;  %v2761_v62 = vsel %vm5850_vm5, %v2757_v27, 0.0  ;;  %v2691_v37 = vsel %vm5853_vm11, %v3844_v41, %v2689_v47  ;;  %v2717_v1 = vsel %vm5854_vm4, %v2713_v51, 0.0  ;;  %vm5856_vm8 = vmmov %vm5855_vm14 }
 0x598   :  { %v2809_v49 = vrot.slane %v2760_v36, 4  ;;  %v2735_v45 = vsel %vm5856_vm8, %v3854_v46, %v2733_v54  ;;  %v2810_v0 = vrot.slane %v2761_v62, 4  ;;  %vm5858_vm5 = vmmov %vm5857_vm6  ;;  %v2804_v47 = vrot.slane %v2717_v1, 4 }
 0x599   :  { %vm5860_vm11 = vcmask 1043456   ;;  %v2738_v54 = vsel %vm5172_vm0, %v2734_v7, 0.0  ;;  %v2739_v13 = vsel %vm5191_vm10, %v2735_v45, 0.0 }
 0x59a   :  { %vm5861_vm4 = vmmov %vm5860_vm11 }
 0x59b   :  { %v2777_v43 = vpop.permute.xlu1 %2776  ;;  %v2775_v55 = vpop.permute.xlu0 %2774  ;;  %vm5863_vm14 = vmmov %vm5861_vm4 }
 0x59c   :  { %v2778_v42 = vsel %vm5857_vm6, %v2773_v26, %v2775_v55  ;;  %v2779_v10 = vsel %vm5858_vm5, %v2775_v55, %v2777_v43  ;;  %v2695_v26 = vsel %vm5862_vm15, %v2691_v37, 0.0  ;;  %v2819_v52 = vsel %vm5863_vm14, %v2738_v54, %v2809_v49  ;;  %vm5864_vm8 = vmmov %vm5861_vm4  ;;  %v3501_v49 = vld [vmem:[%s5578_s2 + $0xc] sm:$0xf] }
 0x59d   :  { %v2782_v12 = vsel %vm5206_vm1, %v2778_v42, 0.0  ;;  %v2783_v22 = vsel %vm5218_vm7, %v2779_v10, 0.0  ;;  %v2820_v57 = vsel %vm5864_vm8, %v2739_v13, %v2810_v0  ;;  %vm5865_vm1 = vmmov %vm5859_vm2  ;;  %vm5866_vm7 = vcmask 785408  }
 0x59e   :  { %3497 = vmatpush.msk.msrb.mxu0 %vm5860_vm11, %v2782_v12  ;;  %3499 = vmatpush.msk.msrb.mxu1 %vm5861_vm4, %v2783_v22  ;;  %v2668_v28 = vsel %vm5865_vm1, %v3838_v6, %v3839_v44  ;;  %v2646_v11 = vsel %vm5866_vm7, %v3833_v40, %v3834_v19  ;;  %vm5867_vm6 = vmmov %vm5866_vm7  ;;  %v2793_v41 = vrot.slane %v2695_v26, 4  ;;  %vm5870_vm5 = vcmp.ge.s32.totalorder %v4065_v15, 6  ;;  %v2826_v6 = vpop.permute.xlu2 %2825 }
 0x59f   :  { %v2647_v2 = vsel %vm5867_vm6, %v3834_v19, %v2645_v33  ;;  %vm5868_vm0 = vmmov %vm5861_vm4  ;;  %v2672_v60 = vsel %vm5253_vm13, %v2668_v28, 0.0  ;;  %vm5873_vm11 = vcmp.ge.s32.totalorder %v4079_v24, 6  ;;  %vm5874_vm4 = vcmask 834560   ;;  %v3496_v24 = vld [vmem:[%s5577_s1 + $0xc] sm:$0xf] }
 0x5a0   :  { %2849 = vmatpush.msrb.mxu0 %v2819_v52  ;;  %2869 = vmatpush.msrb.mxu1 %v2820_v57  ;;  %v2817_v16 = vsel %vm5868_vm0, %v5341_v23, %v2803_v39  ;;  %vm5869_vm10 = vmmov %vm5868_vm0  ;;  %v2651_v33 = vsel %vm5870_vm5, %v2647_v2, 0.0  ;;  %v2650_v23 = vsel %vm5873_vm11, %v2646_v11, 0.0  ;;  %vm5878_vm8 = vcmask 293888  }
 0x5a1   :  { %v2818_v48 = vsel %vm5869_vm10, %v5343_v8, %v2804_v47  ;;  %vm5871_vm2 = vmmov %vm5868_vm0  ;;  %v2787_v46 = vrot.slane %v2651_v33, 4  ;;  %v2786_v17 = vrot.slane %v2650_v23, 4 }
 0x5a2   :  { %2850 = vmatpush.msrb.mxu0 %v2817_v16  ;;  %2870 = vmatpush.msrb.mxu1 %v2818_v48  ;;  %v2815_v5 = vsel %vm5871_vm2, %v2672_v60, %v2792_v34  ;;  %vm5872_vm12 = vmmov %vm5868_vm0 }
 0x5a3   :  { %v3862_v20 = vpop.permute.xlu0 %3861  ;;  %v2816_v27 = vsel %vm5872_vm12, %v2673_v29, %v2793_v41  ;;  %v2623_v8 = vpop.permute.xlu1 %2622  ;;  %vm5875_vm13 = vmmov %vm5874_vm4 }
 0x5a4   :  { %v3864_v21 = vunpack.i.h.bf16 %v3862_v20  ;;  %v3863_v51 = vunpack.i.l.bf16 %v3862_v20  ;;  %2851 = vmatpush.msrb.mxu0 %v2815_v5  ;;  %2871 = vmatpush.msrb.mxu1 %v2816_v27  ;;  %vm5876_vm15 = vmmov %vm5868_vm0 }
 0x5a5   :  { %vm5877_vm14 = vmmov %vm5868_vm0 }
 0x5a6   :  { %v2624_v58 = vsel %vm5874_vm4, %v3863_v51, %v3864_v21  ;;  %v2625_v15 = vsel %vm5875_vm13, %v3864_v21, %v2623_v8  ;;  %vm5879_vm1 = vmmov %vm5878_vm8 }
 0x5a7   :  { %v2628_v36 = vsel %vm5266_vm3, %v2624_v58, 0.0  ;;  %v2629_v62 = vsel %vm5284_vm9, %v2625_v15, 0.0  ;;  %vm5880_vm3 = vmmov %vm5868_vm0 }
 0x5a8   :  { %v2813_v19 = vsel %vm5876_vm15, %v2628_v36, %v2786_v17  ;;  %v2814_v40 = vsel %vm5877_vm14, %v2629_v62, %v2787_v46  ;;  %vm5881_vm7 = vmmov %vm5868_vm0 }
 0x5a9   :  { %2852 = vmatpush.msrb.mxu0 %v2813_v19  ;;  %2872 = vmatpush.msrb.mxu1 %v2814_v40  ;;  %vm5882_vm9 = vmmov %vm5868_vm0 }
 0x5aa   :  { %3498 = vmatmul.msk.f32.vlgmr.msrb.gmra.mxu0 %vm5878_vm8, %v3496_v24  ;;  %3500 = vmatmul.msk.f32.vlgmr.msrb.gmra.mxu1 %vm5879_vm1, %v3496_v24  ;;  %vm5883_vm6 = vmmov %vm5868_vm0  ;;  %vm5884_vm0 = vcmask 31744  }
 0x5ab   :  { %vm5885_vm10 = vmmov %vm5884_vm0 }
 0x5ac   :  { %vm5886_vm5 = vmmov %vm5871_vm2 }
 0x5ce   :  { %v1148_v0 = vpop.xlane.xlu1 %1147  ;;  %v418_v42 = vpop.xlane.xlu0 %417 }
 0x5cf   :  { %v3507_v39 = vmul.f32 -0.00390625, %v1148_v0  ;;  %v3506_v4 = vmul.f32 -0.00390625, %v418_v42 }
 0x5d1   :  { %v2960_v38 = vmul.f32 1.442695, %v3507_v39  ;;  %v2941_v12 = vmul.f32 1.442695, %v3506_v4 }
 0x5d3   :  { %v1874_v10 = vpop.xlane.xlu2 %1873  ;;  %3868 = vpow2.f32 %v2960_v38 }
 0x5d4   :  { %v3508_v47 = vmul.f32 -0.00390625, %v1874_v10  ;;  %3870 = vpow2.f32 %v2941_v12 }
 0x5d6   :  { %v2979_v22 = vmul.f32 1.442695, %v3508_v47 }
 0x5d8   :  { %3872 = vpow2.f32 %v2979_v22 }
 0x5d9   :  { %v3869_v54 = vpop.eup %3868 }
 0x5da   :  { %v3871_v13 = vpop.eup %3870  ;;  %v2962_v52 = vadd.f32 1.0, %v3869_v54 }
 0x5db   :  { %v2943_v57 = vadd.f32 1.0, %v3871_v13 }
 0x5dc   :  { %3874 = vrcp.f32 %v2962_v52  ;;  %vm2968_vm2 = vweird.f32 %v2962_v52  ;;  %v2972_v58 = vand.u32 2147483647, %v2962_v52  ;;  %v2974_v15 = vand.u32 2147483648, %v2962_v52 }
 0x5dd   :  { %3876 = vrcp.f32 %v2943_v57  ;;  %vm2949_vm11 = vweird.f32 %v2943_v57  ;;  %v2953_v36 = vand.u32 2147483647, %v2943_v57  ;;  %v2955_v40 = vand.u32 2147483648, %v2943_v57 }
 0x5de   :  { %v3873_v26 = vpop.eup %3872 }
 0x5df   :  { %v5464_v28 = vadd.f32 1.0, %v3873_v26 }
 0x5e1   :  { %3878 = vrcp.f32 %v5464_v28 }
 0x5e2   :  { %v3875_v29 = vpop.eup %3874 }
 0x5e3   :  { %v3877_v16 = vpop.eup %3876  ;;  %v2964_v41 = vmul.f32 %v3875_v29, %v2962_v52  ;;  %vm2969_vm12 = vweird.f32 %v3875_v29 }
 0x5e4   :  { %v2945_v60 = vmul.f32 %v3877_v16, %v2943_v57  ;;  %vm2950_vm4 = vweird.f32 %v3877_v16  ;;  %vm5469_vm15 = vmor %vm2968_vm2, %vm2969_vm12 }
 0x5e5   :  { %v2965_v27 = vsub.f32 1.0, %v2964_v41  ;;  %vm5474_vm1 = vmor %vm2949_vm11, %vm2950_vm4 }
 0x5e6   :  { %v2946_v23 = vsub.f32 1.0, %v2945_v60 }
 0x5e7   :  { %v3879_v48 = vpop.eup %3878  ;;  %v2966_v51 = vmul.f32 %v3875_v29, %v2965_v27 }
 0x5e8   :  { %v2983_v33 = vmul.f32 %v3879_v48, %v5464_v28  ;;  %v2947_v8 = vmul.f32 %v3877_v16, %v2946_v23  ;;  %vm2988_vm13 = vweird.f32 %v3879_v48 }
 0x5e9   :  { %v2967_v62 = vadd.f32 %v3875_v29, %v2966_v51 }
 0x5ea   :  { %v2575_v63 = vpop.f32.mrf.mxu0  ;;  %v2984_v21 = vsub.f32 1.0, %v2983_v33  ;;  %v2948_v24 = vadd.f32 %v3877_v16, %v2947_v8 }
 0x5eb   :  { %v2595_v53 = vpop.f32.mrf.mxu1  ;;  %v2598_v35 = vsel %vm5880_vm3, %v2575_v63, 0.0  ;;  %vm2987_vm3 = vweird.f32 %v5464_v28 }
 0x5ec   :  { %v2599_v18 = vsel %vm5881_vm7, %v2595_v53, 0.0  ;;  %v2985_v46 = vmul.f32 %v3879_v48, %v2984_v21  ;;  %vm5484_vm7 = vmor %vm2987_vm3, %vm2988_vm13  ;;  %vm5893_vm13 = vcmask 1043456  }
 0x5ed   :  { %v2600_v44 = vadd.f32 %v2599_v18, %v2598_v35 }
 0x5ee   :  { %v2986_v63 = vadd.f32 %v3879_v48, %v2985_v46 }
 0x5ef   :  { %2601 = vadd.xlane.f32.xlu2 %v2600_v44 }
 0x5f0   :  { %v2990_v42 = vsel %vm5484_vm7, %v3879_v48, %v2986_v63 }
 0x5f7   :  { %2209 = vadd.xlane.f32.xlu2 %v5369_v56 }
 0x627   :  { %v2854_v37 = vpop.f32.mrf.mxu0  ;;  %v2874_v1 = vpop.f32.mrf.mxu1 }
 0x628   :  { %v2855_v32 = vadd.f32 %v2854_v37, %v2826_v6  ;;  %v2875_v43 = vadd.f32 %v2874_v1, %v2826_v6  ;;  %v2993_v37 = vand.u32 2147483648, %v5464_v28  ;;  %v2971_v1 = vsel %vm5469_vm15, %v3875_v29, %v2967_v62  ;;  %v3049_v6 = vld [vmem:[%s5575_s0] sm:$0xff]  ;;  %vm5894_vm15 = vmmov %vm5893_vm13 }
 0x62a   :  { %v2877_v55 = vmax.f32 %v2855_v32, 0.0  ;;  %v2878_v7 = vmax.f32 %v2875_v43, 0.0  ;;  %v2952_v32 = vsel %vm5474_vm1, %v3877_v16, %v2948_v24  ;;  %v2994_v47 = vor.u32 1.1754944e-38, %v2993_v37 }
 0x62c   :  { %v2881_v45 = vrot.slane %v2878_v7, 4  ;;  %3502 = vmatpush.msk.msrb.mxu2 %vm5882_vm9, %v2877_v55  ;;  %3504 = vmatpush.msk.msrb.mxu3 %vm5883_vm6, %v2878_v7  ;;  %vm2973_vm9 = vcmp.eq.f32.partialorder %v2972_v58, 8.507059e+37 }
 0x62d   :  { %3503 = vmatmul.msk.f32.vlgmr.msrb.gmra.mxu2 %vm5884_vm0, %v3501_v49  ;;  %3505 = vmatmul.msk.f32.vlgmr.msrb.gmra.mxu3 %vm5885_vm10, %v3501_v49  ;;  %v2975_v49 = vor.u32 1.1754944e-38, %v2974_v15  ;;  %vm2954_vm0 = vcmp.eq.f32.partialorder %v2953_v36, 8.507059e+37 }
 0x62e   :  { %v5462_v56 = vsel %vm5886_vm5, %v2877_v55, %v2881_v45  ;;  %v2991_v55 = vand.u32 2147483647, %v5464_v28  ;;  %v2956_v45 = vor.u32 1.1754944e-38, %v2955_v40 }
 0x62f   :  { %v2976_v39 = vsel %vm2973_vm9, %v2975_v49, %v2971_v1 }
 0x630   :  { %v2957_v4 = vsel %vm2954_vm0, %v2956_v45, %v2952_v32  ;;  %vm2992_vm5 = vcmp.eq.f32.partialorder %v2991_v55, 8.507059e+37 }
 0x631   :  { %v2995_v12 = vsel %vm2992_vm5, %v2994_v47, %v2990_v42  ;;  %v3016_v54 = vmax.f32 %v2957_v4, %v2976_v39 }
 0x662   :  { %v2602_v34 = vpop.xlane.xlu2 %2601 }
 0x663   :  { %v3509_v11 = vmul.f32 -0.00390625, %v2602_v34 }
 0x665   :  { %v2998_v2 = vmul.f32 1.442695, %v3509_v11 }
 0x667   :  { %3880 = vpow2.f32 %v2998_v2 }
 0x66d   :  { %v3881_v20 = vpop.eup %3880 }
 0x66e   :  { %v3000_v5 = vadd.f32 1.0, %v3881_v20 }
 0x670   :  { %3882 = vrcp.f32 %v3000_v5  ;;  %v3012_v53 = vand.u32 2147483648, %v3000_v5  ;;  %vm3006_vm14 = vweird.f32 %v3000_v5  ;;  %v3010_v44 = vand.u32 2147483647, %v3000_v5 }
 0x672   :  { %v3013_v0 = vor.u32 1.1754944e-38, %v3012_v53  ;;  %vm3011_vm10 = vcmp.eq.f32.partialorder %v3010_v44, 8.507059e+37  ;;  %v3103_v44 = vld.sshfl [vmem:[#allocation1 + $0x8] sm:$0xff pattern:$0x75316420] }
 0x676   :  { %v3883_v17 = vpop.eup %3882 }
 0x677   :  { %v3002_v19 = vmul.f32 %v3883_v17, %v3000_v5  ;;  %vm3007_vm8 = vweird.f32 %v3883_v17 }
 0x678   :  { %vm3008_vm6 = vmor %vm3006_vm14, %vm3007_vm8 }
 0x679   :  { %v3003_v18 = vsub.f32 1.0, %v3002_v19  ;;  %vm5895_vm14 = vmmov %vm5893_vm13 }
 0x67a   :  { %vm5896_vm8 = vmmov %vm5893_vm13 }
 0x67b   :  { %v3004_v7 = vmul.f32 %v3883_v17, %v3003_v18  ;;  %vm5897_vm1 = vmmov %vm5896_vm8 }
 0x67c   :  { %vm5898_vm3 = vmmov %vm5897_vm1 }
 0x67d   :  { %v3005_v10 = vadd.f32 %v3883_v17, %v3004_v7  ;;  %vm5899_vm7 = vmmov %vm5897_vm1 }
 0x67e   :  { %vm5900_vm9 = vmmov %vm5897_vm1 }
 0x67f   :  { %v3009_v38 = vsel %vm3008_vm6, %v3883_v17, %v3005_v10 }
 0x680   :  { %v3014_v22 = vsel %vm3011_vm10, %v3013_v0, %v3009_v38 }
 0x681   :  { %v3017_v13 = vmax.f32 %v2995_v12, %v3014_v22 }
 0x683   :  { %v3018_v26 = vmax.f32 %v3016_v54, %v3017_v13 }
 0x685   :  { %v3019_v52 = vsub.f32 %v2957_v4, %v3018_v26  ;;  %v3022_v57 = vsub.f32 %v2976_v39, %v3018_v26  ;;  %v3025_v28 = vsub.f32 %v2995_v12, %v3018_v26  ;;  %v3028_v34 = vsub.f32 %v3014_v22, %v3018_v26  ;;  %v3102_v39 = vld.sshfl [vmem:[#allocation1] sm:$0xff pattern:$0x75316420] }
 0x687   :  { %v3020_v11 = vmul.f32 1.442695, %v3019_v52  ;;  %v3023_v2 = vmul.f32 1.442695, %v3022_v57  ;;  %v3026_v29 = vmul.f32 1.442695, %v3025_v28 }
 0x688   :  { %v3029_v16 = vmul.f32 1.442695, %v3028_v34 }
 0x689   :  { %3884 = vpow2.f32 %v3020_v11 }
 0x68a   :  { %3886 = vpow2.f32 %v3023_v2  ;;  %v1484_v2 = vpop.xlane.xlu1 %1483 }
 0x68b   :  { %3888 = vpow2.f32 %v3026_v29  ;;  %v3516_v29 = vmul.f32 -0.00390625, %v1484_v2 }
 0x68c   :  { %3890 = vpow2.f32 %v3029_v16 }
 0x68f   :  { %v3885_v48 = vpop.eup %3884 }
 0x690   :  { %v3887_v41 = vpop.eup %3886 }
 0x691   :  { %v3031_v60 = vadd.f32 %v3887_v41, %v3885_v48  ;;  %v3889_v33 = vpop.eup %3888 }
 0x692   :  { %v3891_v5 = vpop.eup %3890 }
 0x693   :  { %v3032_v20 = vadd.f32 %v3889_v33, %v3031_v60 }
 0x695   :  { %v3033_v27 = vadd.f32 %v3891_v5, %v3032_v20 }
 0x697   :  { %3892 = vrcp.f32 %v3033_v27  ;;  %v3045_v8 = vand.u32 2147483648, %v3033_v27  ;;  %v3043_v58 = vand.u32 2147483647, %v3033_v27  ;;  %vm3039_vm12 = vweird.f32 %v3033_v27 }
 0x699   :  { %v3046_v15 = vor.u32 1.1754944e-38, %v3045_v8  ;;  %vm3044_vm4 = vcmp.eq.f32.partialorder %v3043_v58, 8.507059e+37 }
 0x69d   :  { %v3893_v23 = vpop.eup %3892 }
 0x69e   :  { %v3035_v21 = vmul.f32 %v3893_v23, %v3033_v27  ;;  %vm3040_vm2 = vweird.f32 %v3893_v23 }
 0x69f   :  { %vm3041_vm11 = vmor %vm3039_vm12, %vm3040_vm2 }
 0x6a0   :  { %v3036_v51 = vsub.f32 1.0, %v3035_v21 }
 0x6a2   :  { %v3037_v46 = vmul.f32 %v3893_v23, %v3036_v51 }
 0x6a4   :  { %v3038_v17 = vadd.f32 %v3893_v23, %v3037_v46 }
 0x6a6   :  { %v3042_v36 = vsel %vm3041_vm11, %v3893_v23, %v3038_v17 }
 0x6a7   :  { %v3047_v62 = vsel %vm3044_vm4, %v3046_v15, %v3042_v36 }
 0x6a8   :  { %v3050_v24 = vmul.f32 %v3885_v48, %v3047_v62  ;;  %v3066_v19 = vmul.f32 %v3887_v41, %v3047_v62  ;;  %v3082_v40 = vmul.f32 %v3889_v33, %v3047_v62  ;;  %v3098_v63 = vmul.f32 %v3891_v5, %v3047_v62  ;;  %v2210_v48 = vpop.xlane.xlu2 %2209 }
 0x6a9   :  { %v3201_v41 = vmul.f32 1.442695, %v3516_v29  ;;  %v3517_v60 = vmul.f32 -0.00390625, %v2210_v48 }
 0x6aa   :  { %v3059_v53 = vmul.f32 %v5357_v50, %v3050_v24  ;;  %v3075_v35 = vmul.f32 %v5362_v61, %v3066_v19  ;;  %v3091_v18 = vmul.f32 %v5384_v25, %v3082_v40  ;;  %v3058_v37 = vmul.f32 %v5355_v31, %v3050_v24 }
 0x6ab   :  { %v3107_v43 = vmul.f32 %v3103_v44, %v3098_v63  ;;  %v3074_v7 = vmul.f32 %v5360_v14, %v3066_v19  ;;  %v3090_v25 = vmul.f32 %v5382_v9, %v3082_v40  ;;  %v3106_v38 = vmul.f32 %v3102_v39, %v3098_v63 }
 0x6ac   :  { %v3062_v1 = vrot.slane %v3059_v53, 4  ;;  %v3078_v32 = vrot.slane %v3075_v35, 4  ;;  %v3094_v49 = vrot.slane %v3091_v18, 4  ;;  %3894 = vpow2.f32 %v3201_v41 }
 0x6ad   :  { %v3110_v45 = vrot.slane %v3107_v43, 4  ;;  %v3220_v33 = vmul.f32 1.442695, %v3517_v60 }
 0x6ae   :  { %v3063_v55 = vsel %vm5893_vm13, %v3058_v37, %v3062_v1  ;;  %v3079_v61 = vsel %vm5894_vm15, %v3074_v7, %v3078_v32  ;;  %v3095_v47 = vsel %vm5897_vm1, %v3090_v25, %v3094_v49 }
 0x6af   :  { %v3065_v50 = vadd.f32 %v3063_v55, %v3049_v6  ;;  %v3111_v22 = vsel %vm5898_vm3, %v3106_v38, %v3110_v45 }
 0x6b0   :  { %v2911_v0 = vpop.f32.mrf.mxu2  ;;  %v2931_v42 = vpop.f32.mrf.mxu3 }
 0x6b1   :  { %v3081_v10 = vadd.f32 %v3079_v61, %v3065_v50  ;;  %v2934_v31 = vsel %vm5895_vm14, %v2911_v0, 0.0  ;;  %v2935_v4 = vsel %vm5896_vm8, %v2931_v42, 0.0 }
 0x6b2   :  { %v2936_v12 = vadd.f32 %v2935_v4, %v2934_v31  ;;  %v3895_v20 = vpop.eup %3894 }
 0x6b3   :  { %v3097_v14 = vadd.f32 %v3095_v47, %v3081_v10  ;;  %v3203_v5 = vadd.f32 1.0, %v3895_v20 }
 0x6b4   :  { %2937 = vadd.xlane.f32.xlu0 %v2936_v12 }
 0x6b5   :  { %v3113_v54 = vadd.f32 %v3111_v22, %v3097_v14  ;;  %vm3209_vm10 = vweird.f32 %v3203_v5  ;;  %v3213_v32 = vand.u32 2147483647, %v3203_v5  ;;  %v3215_v7 = vand.u32 2147483648, %v3203_v5 }
 0x6b7   :  { %3123 = vst [vmem:[#allocation1] ss:$2 sm:$0xff] %v3113_v54  ;;  %vm3214_vm15 = vcmp.eq.f32.partialorder %v3213_v32, 8.507059e+37  ;;  %v3216_v38 = vor.u32 1.1754944e-38, %v3215_v7 }
 0x6be   :  { %v3124_v9 = vld.sshfl [vmem:[#allocation1] sm:$0xff pattern:$0x75316420]  ;;  %v3125_v13 = vld.sshfl [vmem:[#allocation1 + $0x8] sm:$0xff pattern:$0x75316420] }
 0x6bf   :  { %3511 = vmatpush.msk.msra.mxu2 %vm5899_vm7, %v3124_v9  ;;  %3513 = vmatpush.msk.msra.mxu3 %vm5900_vm9, %v3125_v13  ;;  %3294 = vst [vmem:[#allocation1] ss:$2 sm:$0xff] %v4573_v30  ;;  %v754_v30 = vpop.xlane.xlu0 %753 }
 0x6c0   :  { %v3515_v16 = vmul.f32 -0.00390625, %v754_v30 }
 0x6c6   :  { %v5509_v26 = vld.sshfl [vmem:[#allocation1] sm:$0xff pattern:$0x75316420]  ;;  %v5511_v52 = vld.sshfl [vmem:[#allocation1 + $0x8] sm:$0xff pattern:$0x75316420] }
 0x6c7   :  { %3310 = vst [vmem:[#allocation1] ss:$2 sm:$0xff] %v4926_v59  ;;  %v3182_v59 = vmul.f32 1.442695, %v3515_v16 }
 0x6c9   :  { %3896 = vpow2.f32 %v3182_v59 }
 0x6ca   :  { %3898 = vpow2.f32 %v3220_v33 }
 0x6cb   :  { %3900 = vrcp.f32 %v3203_v5 }
 0x6ce   :  { %v5514_v57 = vld.sshfl [vmem:[#allocation1] sm:$0xff pattern:$0x75316420]  ;;  %v5516_v28 = vld.sshfl [vmem:[#allocation1 + $0x8] sm:$0xff pattern:$0x75316420] }
 0x6cf   :  { %3326 = vst [vmem:[#allocation1] ss:$2 sm:$0xff] %v5274_v3  ;;  %v3897_v3 = vpop.eup %3896 }
 0x6d0   :  { %v3899_v27 = vpop.eup %3898  ;;  %v3184_v23 = vadd.f32 1.0, %v3897_v3 }
 0x6d1   :  { %v3222_v21 = vadd.f32 1.0, %v3899_v27  ;;  %v3901_v46 = vpop.eup %3900 }
 0x6d2   :  { %3902 = vrcp.f32 %v3184_v23  ;;  %v3205_v17 = vmul.f32 %v3901_v46, %v3203_v5  ;;  %vm3210_vm6 = vweird.f32 %v3901_v46  ;;  %vm3190_vm2 = vweird.f32 %v3184_v23 }
 0x6d3   :  { %3904 = vrcp.f32 %v3222_v21  ;;  %vm5524_vm5 = vmor %vm3209_vm10, %vm3210_vm6  ;;  %v3194_v49 = vand.u32 2147483647, %v3184_v23  ;;  %v3196_v50 = vand.u32 2147483648, %v3184_v23  ;;  %vm3228_vm4 = vweird.f32 %v3222_v21 }
 0x6d4   :  { %v3206_v24 = vsub.f32 1.0, %v3205_v17  ;;  %v3234_v10 = vand.u32 2147483648, %v3222_v21  ;;  %v3232_v31 = vand.u32 2147483647, %v3222_v21  ;;  %vm5905_vm6 = vcmask 31744  }
 0x6d5   :  { %v3197_v12 = vor.u32 1.1754944e-38, %v3196_v50  ;;  %vm3195_vm8 = vcmp.eq.f32.partialorder %v3194_v49, 8.507059e+37 }
 0x6d6   :  { %v5519_v34 = vld.sshfl [vmem:[#allocation1] sm:$0xff pattern:$0x75316420]  ;;  %v5521_v11 = vld.sshfl [vmem:[#allocation1 + $0x8] sm:$0xff pattern:$0x75316420]  ;;  %v3207_v53 = vmul.f32 %v3901_v46, %v3206_v24 }
 0x6d7   :  { %3342 = vst [vmem:[#allocation1] ss:$2 sm:$0xff] %v5462_v56  ;;  %v3235_v13 = vor.u32 1.1754944e-38, %v3234_v10  ;;  %vm3233_vm7 = vcmp.eq.f32.partialorder %v3232_v31, 8.507059e+37 }
 0x6d8   :  { %v3903_v58 = vpop.eup %3902  ;;  %v3208_v44 = vadd.f32 %v3901_v46, %v3207_v53 }
 0x6d9   :  { %v3905_v15 = vpop.eup %3904  ;;  %v3186_v36 = vmul.f32 %v3903_v58, %v3184_v23  ;;  %vm3191_vm0 = vweird.f32 %v3903_v58 }
 0x6da   :  { %v3224_v19 = vmul.f32 %v3905_v15, %v3222_v21  ;;  %v3212_v61 = vsel %vm5524_vm5, %v3901_v46, %v3208_v44  ;;  %vm5530_vm12 = vmor %vm3190_vm2, %vm3191_vm0  ;;  %vm3229_vm11 = vweird.f32 %v3905_v15 }
 0x6db   :  { %v3187_v40 = vsub.f32 1.0, %v3186_v36  ;;  %vm3230_vm14 = vmor %vm3228_vm4, %vm3229_vm11  ;;  %v3217_v54 = vsel %vm3214_vm15, %v3216_v38, %v3212_v61  ;;  %v3510_v36 = vld [vmem:[%s5578_s2 + $0x10] sm:$0xf]  ;;  %vm5907_vm11 = vcmask 1043456   ;;  %v3920_v38 = vld [vmem:[%s5575_s0 + $0x8] sm:$0xff] }
 0x6dc   :  { %v3225_v35 = vsub.f32 1.0, %v3224_v19  ;;  %3514 = vmatmul.msk.f32.vlgmr.msra.gmra.mxu3 %vm5905_vm6, %v3510_v36  ;;  %vm5906_vm0 = vmmov %vm5905_vm6 }
 0x6dd   :  { %v3188_v18 = vmul.f32 %v3903_v58, %v3187_v40  ;;  %3512 = vmatmul.msk.f32.vlgmr.msra.gmra.mxu2 %vm5906_vm0, %v3510_v36  ;;  %v3116_v40 = vld [vmem:[%s5576_s3] sm:$0xf]  ;;  %vm5908_vm4 = vmmov %vm5907_vm11 }
 0x6de   :  { %v3226_v6 = vmul.f32 %v3905_v15, %v3225_v35  ;;  %v3953_v35 = vmov 4   ;;  %vm5910_vm15 = vmmov %vm5908_vm4 }
 0x6df   :  { %v3189_v1 = vadd.f32 %v3903_v58, %v3188_v18  ;;  %3865 = vset.pattern.permute.xlu1 %v3953_v35  ;;  %3866 = vset.pattern.permute.xlu2 %v3953_v35 }
 0x6e0   :  { %v3227_v45 = vadd.f32 %v3905_v15, %v3226_v6  ;;  %3119 = vperm.xlu1 %3865, %v3116_v40   ;;  %3867 = vset.pattern.permute.xlu0 %v3953_v35 }
 0x6e1   :  { %v3193_v42 = vsel %vm5530_vm12, %v3903_v58, %v3189_v1 }
 0x6e2   :  { %v3231_v14 = vsel %vm3230_vm14, %v3905_v15, %v3227_v45  ;;  %v3198_v9 = vsel %vm3195_vm8, %v3197_v12, %v3193_v42  ;;  %v3344_v45 = vld.sshfl [vmem:[#allocation1 + $0x8] sm:$0xff pattern:$0x75316420]  ;;  %vm5911_vm14 = vmmov %vm5908_vm4 }
 0x6e3   :  { %v3236_v29 = vsel %vm3233_vm7, %v3235_v13, %v3231_v14  ;;  %v3257_v48 = vmax.f32 %v3198_v9, %v3217_v54  ;;  %vm5912_vm8 = vmmov %vm5908_vm4 }
 0x6e4   :  { %vm5915_vm7 = vmmov %vm5908_vm4 }
 0x727   :  { %v2938_v56 = vpop.xlane.xlu0 %2937 }
 0x728   :  { %v3518_v51 = vmul.f32 -0.00390625, %v2938_v56 }
 0x72a   :  { %v3239_v8 = vmul.f32 1.442695, %v3518_v51 }
 0x72c   :  { %3906 = vpow2.f32 %v3239_v8 }
 0x732   :  { %v3907_v62 = vpop.eup %3906 }
 0x733   :  { %v3241_v63 = vadd.f32 1.0, %v3907_v62 }
 0x735   :  { %3908 = vrcp.f32 %v3241_v63  ;;  %v3253_v39 = vand.u32 2147483648, %v3241_v63  ;;  %v3251_v47 = vand.u32 2147483647, %v3241_v63  ;;  %vm3247_vm1 = vweird.f32 %v3241_v63 }
 0x737   :  { %v3254_v2 = vor.u32 1.1754944e-38, %v3253_v39  ;;  %vm3252_vm9 = vcmp.eq.f32.partialorder %v3251_v47, 8.507059e+37 }
 0x73b   :  { %v3909_v37 = vpop.eup %3908 }
 0x73c   :  { %v3243_v43 = vmul.f32 %v3909_v37, %v3241_v63  ;;  %vm3248_vm13 = vweird.f32 %v3909_v37  ;;  %v3356_v63 = vld [vmem:[%s5576_s3] sm:$0xf] }
 0x73d   :  { %vm3249_vm3 = vmor %vm3247_vm1, %vm3248_vm13  ;;  %3359 = vperm.xlu2 %3866, %v3356_v63  }
 0x73e   :  { %v3244_v0 = vsub.f32 1.0, %v3243_v43  ;;  %vm5909_vm13 = vmmov %vm5908_vm4 }
 0x73f   :  { %vm5913_vm1 = vmmov %vm5906_vm0 }
 0x740   :  { %v3245_v4 = vmul.f32 %v3909_v37, %v3244_v0 }
 0x742   :  { %v3246_v22 = vadd.f32 %v3909_v37, %v3245_v4 }
 0x744   :  { %v3250_v30 = vsel %vm3249_vm3, %v3909_v37, %v3246_v22  ;;  %vm5914_vm3 = vmmov %vm5906_vm0 }
 0x745   :  { %v3255_v16 = vsel %vm3252_vm9, %v3254_v2, %v3250_v30  ;;  %v3520_v2 = vld [vmem:[%s5578_s2 + $0x10] sm:$0xf]  ;;  %vm5916_vm9 = vmmov %vm5908_vm4 }
 0x746   :  { %v3258_v41 = vmax.f32 %v3236_v29, %v3255_v16 }
 0x748   :  { %v3259_v60 = vmax.f32 %v3257_v48, %v3258_v41 }
 0x74a   :  { %v3260_v59 = vsub.f32 %v3198_v9, %v3259_v60  ;;  %v3263_v33 = vsub.f32 %v3217_v54, %v3259_v60  ;;  %v3266_v20 = vsub.f32 %v3236_v29, %v3259_v60  ;;  %v3269_v3 = vsub.f32 %v3255_v16, %v3259_v60 }
 0x74c   :  { %v3261_v5 = vmul.f32 1.442695, %v3260_v59  ;;  %v3264_v27 = vmul.f32 1.442695, %v3263_v33  ;;  %v3267_v23 = vmul.f32 1.442695, %v3266_v20 }
 0x74d   :  { %v3270_v21 = vmul.f32 1.442695, %v3269_v3 }
 0x74e   :  { %3910 = vpow2.f32 %v3261_v5 }
 0x74f   :  { %3912 = vpow2.f32 %v3264_v27 }
 0x750   :  { %3914 = vpow2.f32 %v3267_v23 }
 0x751   :  { %3916 = vpow2.f32 %v3270_v21 }
 0x754   :  { %v3911_v56 = vpop.eup %3910 }
 0x755   :  { %v3913_v51 = vpop.eup %3912 }
 0x756   :  { %v3272_v8 = vadd.f32 %v3913_v51, %v3911_v56  ;;  %v3915_v46 = vpop.eup %3914 }
 0x757   :  { %v3917_v17 = vpop.eup %3916 }
 0x758   :  { %v3273_v58 = vadd.f32 %v3915_v46, %v3272_v8 }
 0x75a   :  { %v3274_v15 = vadd.f32 %v3917_v17, %v3273_v58 }
 0x75c   :  { %3918 = vrcp.f32 %v3274_v15  ;;  %v3286_v53 = vand.u32 2147483648, %v3274_v15  ;;  %v3284_v44 = vand.u32 2147483647, %v3274_v15  ;;  %vm3280_vm5 = vweird.f32 %v3274_v15 }
 0x75e   :  { %v3287_v37 = vor.u32 1.1754944e-38, %v3286_v53  ;;  %vm3285_vm12 = vcmp.eq.f32.partialorder %v3284_v44, 8.507059e+37 }
 0x75f   :  { %v3170_v16 = vpop.f32.mrf.mxu3 }
 0x760   :  { %v3150_v60 = vpop.f32.mrf.mxu2 }
 0x762   :  { %v3919_v62 = vpop.eup %3918 }
 0x763   :  { %v3276_v24 = vmul.f32 %v3919_v62, %v3274_v15  ;;  %vm3281_vm10 = vweird.f32 %v3919_v62 }
 0x764   :  { %vm3282_vm2 = vmor %vm3280_vm5, %vm3281_vm10 }
 0x765   :  { %v3277_v19 = vsub.f32 1.0, %v3276_v24 }
 0x767   :  { %v3278_v18 = vmul.f32 %v3919_v62, %v3277_v19 }
 0x769   :  { %v3279_v6 = vadd.f32 %v3919_v62, %v3278_v18 }
 0x76b   :  { %v3283_v1 = vsel %vm3282_vm2, %v3919_v62, %v3279_v6 }
 0x76c   :  { %v3288_v32 = vsel %vm3285_vm12, %v3287_v37, %v3283_v1 }
 0x76d   :  { %v3291_v43 = vmul.f32 %v3911_v56, %v3288_v32  ;;  %v3307_v55 = vmul.f32 %v3913_v51, %v3288_v32  ;;  %v3323_v7 = vmul.f32 %v3915_v46, %v3288_v32  ;;  %v3339_v49 = vmul.f32 %v3917_v17, %v3288_v32 }
 0x76f   :  { %v3300_v50 = vmul.f32 %v5511_v52, %v3291_v43  ;;  %v3316_v61 = vmul.f32 %v5516_v28, %v3307_v55  ;;  %v3332_v25 = vmul.f32 %v5521_v11, %v3323_v7  ;;  %v3299_v0 = vmul.f32 %v5509_v26, %v3291_v43  ;;  %v3343_v26 = vld.sshfl [vmem:[#allocation1] sm:$0xff pattern:$0x75316420] }
 0x770   :  { %v3348_v39 = vmul.f32 %v3344_v45, %v3339_v49  ;;  %v3315_v4 = vmul.f32 %v5514_v57, %v3307_v55  ;;  %v3331_v11 = vmul.f32 %v5519_v34, %v3323_v7  ;;  %v3347_v54 = vmul.f32 %v3343_v26, %v3339_v49  ;;  %v3120_v34 = vpop.permute.xlu1 %3119 }
 0x771   :  { %v3303_v42 = vrot.slane %v3300_v50, 4  ;;  %v3319_v10 = vrot.slane %v3316_v61, 4  ;;  %v3335_v47 = vrot.slane %v3332_v25, 4  ;;  %v3171_v48 = vadd.f32 %v3170_v16, %v3120_v34 }
 0x772   :  { %v3351_v12 = vrot.slane %v3348_v39, 4  ;;  %v3151_v33 = vadd.f32 %v3150_v60, %v3120_v34 }
 0x773   :  { %v3304_v31 = vsel %vm5907_vm11, %v3299_v0, %v3303_v42  ;;  %v3320_v28 = vsel %vm5908_vm4, %v3315_v4, %v3319_v10  ;;  %v3336_v22 = vsel %vm5909_vm13, %v3331_v11, %v3335_v47  ;;  %v3174_v41 = vmax.f32 %v3171_v48, 0.0 }
 0x774   :  { %v3306_v52 = vadd.f32 %v3920_v38, %v3304_v31  ;;  %v3352_v13 = vsel %vm5910_vm15, %v3347_v54, %v3351_v12  ;;  %v3173_v20 = vmax.f32 %v3151_v33, 0.0 }
 0x775   :  { %v3177_v59 = vrot.slane %v3174_v41, 4 }
 0x776   :  { %v3322_v14 = vadd.f32 %v3320_v28, %v3306_v52 }
 0x777   :  { %v3178_v3 = vsel %vm5915_vm7, %v3173_v20, %v3177_v59 }
 0x778   :  { %v3338_v9 = vadd.f32 %v3336_v22, %v3322_v14  ;;  %3180 = vst [vmem:[%s5579_s4] sm:$0xff] %v3178_v3 }
 0x77a   :  { %v3354_v57 = vadd.f32 %v3352_v13, %v3338_v9 }
 0x77c   :  { %3363 = vst [vmem:[#allocation1] ss:$2 sm:$0xff] %v3354_v57 }
 0x783   :  { %v3364_v30 = vld.sshfl [vmem:[#allocation1] sm:$0xff pattern:$0x75316420]  ;;  %v3365_v29 = vld.sshfl [vmem:[#allocation1 + $0x8] sm:$0xff pattern:$0x75316420] }
 0x784   :  { %3521 = vmatpush.msk.msra.mxu0 %vm5911_vm14, %v3364_v30  ;;  %3523 = vmatpush.msk.msra.mxu1 %vm5912_vm8, %v3365_v29 }
 0x785   :  { %3524 = vmatmul.msk.f32.vlgmr.msra.gmra.mxu1 %vm5913_vm1, %v3520_v2  ;;  %3522 = vmatmul.msk.f32.vlgmr.msra.gmra.mxu0 %vm5914_vm3, %v3520_v2 }
 0x797   :  { %v3360_v5 = vpop.permute.xlu2 %3359 }
 0x802   :  { %v3410_v27 = vpop.f32.mrf.mxu1  ;;  %v3390_v23 = vpop.f32.mrf.mxu0 }
 0x803   :  { %v3411_v21 = vadd.f32 %v3410_v27, %v3360_v5  ;;  %v3391_v56 = vadd.f32 %v3390_v23, %v3360_v5 }
 0x805   :  { %v3414_v51 = vmax.f32 %v3411_v21, 0.0  ;;  %v3413_v46 = vmax.f32 %v3391_v56, 0.0 }
 0x807   :  { %v3417_v8 = vrot.slane %v3414_v51, 4 }
 0x809   :  { %v3418_v58 = vsel %vm5916_vm9, %v3413_v46, %v3417_v8 }
 0x80a   :  { %3525 = vst [vmem:[%s5579_s4 + $0x8] sm:$0xff] %v3418_v58 }

</bundles_post_ra>
